<compile_context>
chip_gen: v6e
topology: v6e:2x2x1
jax: 0.10.0
libtpu: 0.0.40
codegen_flags: <defaults>
</compile_context>

<pallas_src>
import numpy as np
import jax
import jax.numpy as jnp
from jax.experimental import pallas as pl
from jax.experimental.pallas import tpu as pltpu


def _gate_update(gates, c_prev, H):
    # One sigmoid + one tanh over the full lane-dense (B, 4H) value, then slice
    # (i, f, o from the sigmoid; g from the tanh) -> 2 EUP pushes instead of 4.
    sig = jax.nn.sigmoid(gates)
    th = jnp.tanh(gates)
    i_g = sig[:, 0:H]
    f_g = sig[:, H:2 * H]
    o_g = sig[:, 3 * H:4 * H]
    g_g = th[:, 2 * H:3 * H]
    c_new = f_g * c_prev + i_g * g_g
    h_new = o_g * jnp.tanh(c_new)
    return h_new, c_new


def _make_kernel(num_layers, S, B, L, Df, E, H, A):
    G4 = 4 * H
    n_hi = (1 + 2 * (num_layers - 2)) if num_layers >= 2 else 0

    def kernel(*refs):
        (embg_ref, fproj_ref, feats_ref, va_ref, wc0_ref, wfused_ref) = refs[:6]
        hi_refs = refs[6:6 + n_hi]
        out_ref = refs[6 + n_hi]

        # Small time-invariant activations: load once.
        fproj = fproj_ref[...]          # (B, L, A) == feats @ Wf + ba (precomputed)
        feats = feats_ref[...]          # (B, L, Df)
        va = va_ref[...]                # (1, A)

        # Cross-step carries.  Only layer-0 state crosses time steps in the
        # reference (higher-layer cells chain within a step).  h0 itself is
        # carried only through its matmul products, produced by the fused dot.
        c0 = jnp.zeros((B, H), jnp.float32)
        h_proj = jnp.zeros((B, A), jnp.float32)    # h0 @ Wh    (h0_{-1} = 0)
        rec0 = jnp.zeros((B, G4), jnp.float32)     # h0 @ Whh0  (h0_{-1} = 0)

        outs = []
        # Fully-unrolled time loop (S small & static); all slices are static.
        for t in range(S):
            # ---- additive attention: VPU multiply + lane reduce (no MXU pass) ----
            proj = jnp.tanh(fproj + h_proj[:, None, :])              # (B, L, A)
            scores = jnp.sum(proj * va[None, :, :], axis=-1)         # (B, L)
            m = jnp.max(scores, axis=1, keepdims=True)
            e = jnp.exp(scores - m)
            denom = jnp.sum(e, axis=1, keepdims=True)
            alpha = e * pl.reciprocal(denom, approx=True)            # (B, L)
            ctx = jnp.sum(alpha[:, :, None] * feats, axis=1)         # (B, Df)

            # ---- layer-0 gates: hoisted emb part + ctx part + carried recurrent part ----
            gates0 = (embg_ref[t]                                    # emb@We0 + b0 (hoisted)
                      + jnp.dot(ctx, wc0_ref[...],
                                preferred_element_type=jnp.float32)  # ctx@Wc0
                      + rec0)                                        # h0_{t-1}@Whh0
            h0, c0 = _gate_update(gates0, c0, H)

            # ---- one wide matmul on the fresh h0:
            #      [Whh0 | (Wih+Whh)_1 | Wh] -> rec0_{t+1}, layer-1 gates_t, h_proj_{t+1}
            hx = jnp.dot(h0, wfused_ref[...], preferred_element_type=jnp.float32)
            rec0 = hx[:, 0:G4]                                       # 128-aligned slice
            if num_layers >= 2:
                g1_pre = hx[:, G4:2 * G4]                            # 128-aligned slice
                h_proj = hx[:, 2 * G4:2 * G4 + A]
            else:
                h_proj = hx[:, G4:G4 + A]

            # ---- higher layers: layer l consumes freshly-updated h[l-1] and the
            #      within-step chained cell (exactly as the PyTorch reference) ----
            h_prev, c_prev = h0, c0
            if num_layers >= 2:
                g1 = g1_pre + hi_refs[0][...]
                h_prev, c_prev = _gate_update(g1, c_prev, H)
                for l in range(2, num_layers):
                    w_ref = hi_refs[1 + 2 * (l - 2)]
                    b_ref = hi_refs[2 + 2 * (l - 2)]
                    g = (jnp.dot(h_prev, w_ref[...],
                                 preferred_element_type=jnp.float32) + b_ref[...])
                    h_prev, c_prev = _gate_update(g, c_prev, H)
            outs.append(h_prev)

        # Single lane-dense (B, S*H) store (S*H = 256 lanes), flushed once to HBM.
        out_ref[...] = jnp.concatenate(outs, axis=1).astype(out_ref.dtype)

    return kernel


def lstm_with_additive_attention(feats, embeddings, params, *, num_layers, hidden_size):
    """feats: (B, L, Df);  embeddings: (B, S, E)  ->  (B, S, H)."""
    B, S, E = embeddings.shape
    Bf, L, Df = feats.shape
    assert Bf == B
    H = hidden_size
    A = params['wf'].shape[1]

    # ---- wrapper-side, time-parallel preparation (outside the serial recurrence) ----
    emb_tm = jnp.transpose(embeddings, (1, 0, 2))                              # (S, B, E)
    # emb @ We0 + b0 hoisted: one parallel (S*B, E) x (E, 4H) matmul.
    emb_gates = jnp.einsum('sbe,eg->sbg', emb_tm, params['we0']) + params['b0']  # (S, B, 4H)
    # Time-invariant feature projection (includes attention bias ba).
    fproj = jnp.einsum('bld,da->bla', feats, params['wf']) + params['ba']      # (B, L, A)
    # All matmuls consuming h0 fused into one weight: [Whh0 | Wih_1+Whh_1 | Wh].
    blocks = [params['whh0']]
    if num_layers >= 2:
        blocks.append(params['wih_hi'][0] + params['whh_hi'][0])
    blocks.append(params['wh'])
    w_fused = jnp.concatenate(blocks, axis=1)                                  # (H, 4H[+4H]+A)

    inputs = [emb_gates, fproj, feats, params['va'], params['wc0'], w_fused]
    if num_layers >= 2:
        inputs.append(params['b_hi'][0])
        for l in range(1, num_layers - 1):
            # higher layers see the same tensor as input and hidden -> pre-add weights
            inputs += [params['wih_hi'][l] + params['whh_hi'][l], params['b_hi'][l]]

    def full_spec(x):
        nd = x.ndim
        return pl.BlockSpec(x.shape, lambda i, _nd=nd: (0,) * _nd)

    kernel = _make_kernel(num_layers, S, B, L, Df, E, H, A)

    # Single grid step: the whole sequence runs inside the kernel (latency-bound
    # recurrence; no per-step grid/DMA overhead).  At scaled B, tile the batch on
    # a "parallel" grid axis to occupy both v7x TensorCores and cap VMEM.
    out_flat = pl.pallas_call(
        kernel,
        out_shape=jax.ShapeDtypeStruct((B, S * H), jnp.float32),
        grid=(1,),
        in_specs=[full_spec(x) for x in inputs],
        out_specs=pl.BlockSpec((B, S * H), lambda i: (0, 0)),
        compiler_params=pltpu.CompilerParams(dimension_semantics=("arbitrary",)),
    )(*inputs)
    return out_flat.reshape(B, S, H)


# ----------------------- deterministic parameter init -----------------------

def init_params(key, *, embed_dim, feat_dim, hidden_size, attn_dim, num_layers):
    E, Df, H, A = embed_dim, feat_dim, hidden_size, attn_dim
    keys = iter(jax.random.split(key, 8 + 4 * num_layers))

    def u(shape, scale):
        return jax.random.uniform(next(keys), shape, jnp.float32, -scale, scale)

    kH = 1.0 / np.sqrt(H)
    params = {
        # additive attention: W_f: (Df -> A), W_h: (H -> A), v: (A -> 1)
        'wf': u((Df, A), 1.0 / np.sqrt(Df)),
        'wh': u((H, A), kH),
        'ba': u((1, A), kH),
        'va': u((1, A), 1.0 / np.sqrt(A)),
        'bv': u((1, 1), 1.0 / np.sqrt(A)),   # softmax-invariant; used only by the reference
        # LSTMCell 0: input = concat([embed (E), ctx (Df)]); weights pre-transposed,
        # gate order (i, f, g, o) along the 4H axis, b = b_ih + b_hh folded.
        'we0': u((E, 4 * H), kH),
        'wc0': u((Df, 4 * H), kH),
        'whh0': u((H, 4 * H), kH),
        'b0': u((1, 4 * H), kH),
        'wih_hi': [], 'whh_hi': [], 'b_hi': [],
    }
    for _ in range(num_layers - 1):
        params['wih_hi'].append(u((H, 4 * H), kH))
        params['whh_hi'].append(u((H, 4 * H), kH))
        params['b_hi'].append(u((1, 4 * H), kH))
    return params


# --------------------------- pure-JAX reference ---------------------------
# (uses the original, un-fused parameters — also validates the wrapper fusions)

def reference_forward(feats, embeddings, params, *, num_layers, hidden_size):
    B, S, E = embeddings.shape
    H = hidden_size
    h = [jnp.zeros((B, H), jnp.float32) for _ in range(num_layers)]
    c = [jnp.zeros((B, H), jnp.float32) for _ in range(num_layers)]

    def ref_gate_update(gates, c_prev):
        i_g = jax.nn.sigmoid(gates[:, 0:H])
        f_g = jax.nn.sigmoid(gates[:, H:2 * H])
        g_g = jnp.tanh(gates[:, 2 * H:3 * H])
        o_g = jax.nn.sigmoid(gates[:, 3 * H:4 * H])
        c_new = f_g * c_prev + i_g * g_g
        return o_g * jnp.tanh(c_new), c_new

    outs = []
    for t in range(S):
        emb = embeddings[:, t, :]
        f_proj = jnp.einsum('bld,da->bla', feats, params['wf'])
        h_proj = h[0] @ params['wh'] + params['ba']
        proj = jnp.tanh(f_proj + h_proj[:, None, :])
        scores = jnp.sum(proj * params['va'][None, :, :], axis=-1) + params['bv']
        alpha = jax.nn.softmax(scores, axis=1)
        ctx = jnp.sum(alpha[:, :, None] * feats, axis=1)
        gates0 = (emb @ params['we0'] + ctx @ params['wc0']
                  + h[0] @ params['whh0'] + params['b0'])
        h[0], c[0] = ref_gate_update(gates0, c[0])
        for l in range(1, num_layers):
            g = (h[l - 1] @ params['wih_hi'][l - 1]
                 + h[l - 1] @ params['whh_hi'][l - 1] + params['b_hi'][l - 1])
            h[l], c[l] = ref_gate_update(g, c[l - 1])
        outs.append(h[-1])
    return jnp.stack(outs, axis=1)


if __name__ == "__main__":
    B, S, E = 2, 8, 16          # batch, seq_len, embedding dim
    L, Df = 8, 32               # attended positions, feature dim of F
    H, A = 32, 32               # LSTM hidden size, attention projection dim
    NUM_LAYERS = 2              # input_size of LSTMCell 0 is E + Df = 48

    root = jax.random.PRNGKey(0)
    k_emb, k_feat, k_par = jax.random.split(root, 3)
    embeddings = jax.random.normal(k_emb, (B, S, E), jnp.float32)
    feats = jax.random.normal(k_feat, (B, L, Df), jnp.float32)
    params = init_params(k_par, embed_dim=E, feat_dim=Df, hidden_size=H,
                         attn_dim=A, num_layers=NUM_LAYERS)

    out = lstm_with_additive_attention(feats, embeddings, params,
                                       num_layers=NUM_LAYERS, hidden_size=H)
    out = jax.block_until_ready(out)

    ref = reference_forward(feats, embeddings, params,
                            num_layers=NUM_LAYERS, hidden_size=H)
    # tolerance covers the approx-reciprocal softmax and the wrapper-side weight
    # folding / fused accumulation orders, all << 2e-3 at these magnitudes.
    np.testing.assert_allclose(np.asarray(out), np.asarray(ref), rtol=2e-3, atol=2e-3)

    print("KERNEL_OK")
</pallas_src>

<mosaic_0001>
module attributes {stable_mosaic.version = 11 : i64} {
  func.func @kernel(%arg0: i32, %arg1: memref<8x2x128xf32, #tpu.memory_space<vmem>>, %arg2: memref<2x8x32xf32, #tpu.memory_space<vmem>>, %arg3: memref<2x8x32xf32, #tpu.memory_space<vmem>>, %arg4: memref<1x32xf32, #tpu.memory_space<vmem>>, %arg5: memref<32x128xf32, #tpu.memory_space<vmem>>, %arg6: memref<32x288xf32, #tpu.memory_space<vmem>>, %arg7: memref<1x128xf32, #tpu.memory_space<vmem>>, %arg8: memref<2x256xf32, #tpu.memory_space<vmem>>) attributes {dimension_semantics = [#tpu.dimension_semantics<arbitrary>], iteration_bounds = array<i64: 1>, scalar_prefetch = 0 : i64, scratch_operands = 0 : i64, tpu.core_type = #tpu.core_type<tc>, window_params = [{pipeline_mode = #tpu.pipeline_mode<synchronous>, transform_indices = @transform_0, window_bounds = array<i64: 8, 2, 128>}, {pipeline_mode = #tpu.pipeline_mode<synchronous>, transform_indices = @transform_1, window_bounds = array<i64: 2, 8, 32>}, {pipeline_mode = #tpu.pipeline_mode<synchronous>, transform_indices = @transform_2, window_bounds = array<i64: 2, 8, 32>}, {pipeline_mode = #tpu.pipeline_mode<synchronous>, transform_indices = @transform_3, window_bounds = array<i64: 1, 32>}, {pipeline_mode = #tpu.pipeline_mode<synchronous>, transform_indices = @transform_4, window_bounds = array<i64: 32, 128>}, {pipeline_mode = #tpu.pipeline_mode<synchronous>, transform_indices = @transform_5, window_bounds = array<i64: 32, 288>}, {pipeline_mode = #tpu.pipeline_mode<synchronous>, transform_indices = @transform_6, window_bounds = array<i64: 1, 128>}, {pipeline_mode = #tpu.pipeline_mode<synchronous>, transform_indices = @transform_7, window_bounds = array<i64: 2, 256>}]} {
    %c0 = arith.constant 0 : index
    %c0_0 = arith.constant 0 : index
    %c0_1 = arith.constant 0 : index
    %0 = vector.load %arg2[%c0, %c0_0, %c0_1] : memref<2x8x32xf32, #tpu.memory_space<vmem>>, vector<2x8x32xf32>
    %c0_2 = arith.constant 0 : index
    %c0_3 = arith.constant 0 : index
    %c0_4 = arith.constant 0 : index
    %1 = vector.load %arg3[%c0_2, %c0_3, %c0_4] : memref<2x8x32xf32, #tpu.memory_space<vmem>>, vector<2x8x32xf32>
    %c0_5 = arith.constant 0 : index
    %c0_6 = arith.constant 0 : index
    %2 = vector.load %arg4[%c0_5, %c0_6] : memref<1x32xf32, #tpu.memory_space<vmem>>, vector<1x32xf32>
    %cst = arith.constant 0.000000e+00 : f32
    %3 = vector.broadcast %cst : f32 to vector<2x32xf32>
    %cst_7 = arith.constant 0.000000e+00 : f32
    %4 = vector.broadcast %cst_7 : f32 to vector<2x32xf32>
    %cst_8 = arith.constant 0.000000e+00 : f32
    %5 = vector.broadcast %cst_8 : f32 to vector<2x128xf32>
    %6 = vector.shape_cast %4 : vector<2x32xf32> to vector<2x1x32xf32>
    %7 = vector.broadcast %6 : vector<2x1x32xf32> to vector<2x8x32xf32>
    %8 = arith.addf %0, %7 : vector<2x8x32xf32>
    %9 = math.tanh %8 : vector<2x8x32xf32>
    %10 = vector.shape_cast %2 : vector<1x32xf32> to vector<1x1x32xf32>
    %11 = vector.broadcast %10 : vector<1x1x32xf32> to vector<2x8x32xf32>
    %12 = arith.mulf %9, %11 : vector<2x8x32xf32>
    %cst_9 = arith.constant dense<0.000000e+00> : vector<2x8xf32>
    %13 = vector.multi_reduction <add>, %12, %cst_9 [2] : vector<2x8x32xf32> to vector<2x8xf32>
    %cst_10 = arith.constant dense<0xFF800000> : vector<2xf32>
    %14 = vector.multi_reduction <maximumf>, %13, %cst_10 [1] : vector<2x8xf32> to vector<2xf32>
    %15 = vector.shape_cast %14 : vector<2xf32> to vector<2x1xf32>
    %16 = vector.broadcast %15 : vector<2x1xf32> to vector<2x8xf32>
    %17 = arith.subf %13, %16 : vector<2x8xf32>
    %18 = math.exp %17 : vector<2x8xf32>
    %cst_11 = arith.constant dense<0.000000e+00> : vector<2xf32>
    %19 = vector.multi_reduction <add>, %18, %cst_11 [1] : vector<2x8xf32> to vector<2xf32>
    %20 = vector.shape_cast %19 : vector<2xf32> to vector<2x1xf32>
    %21 = tpu.reciprocal %20 {approx = true} : vector<2x1xf32> -> vector<2x1xf32>
    %22 = vector.broadcast %21 : vector<2x1xf32> to vector<2x8xf32>
    %23 = arith.mulf %18, %22 : vector<2x8xf32>
    %24 = vector.shape_cast %23 : vector<2x8xf32> to vector<2x8x1xf32>
    %25 = vector.broadcast %24 : vector<2x8x1xf32> to vector<2x8x32xf32>
    %26 = arith.mulf %25, %1 : vector<2x8x32xf32>
    %cst_12 = arith.constant dense<0.000000e+00> : vector<2x32xf32>
    %27 = vector.multi_reduction <add>, %26, %cst_12 [1] : vector<2x8x32xf32> to vector<2x32xf32>
    %c0_13 = arith.constant 0 : index
    %c0_14 = arith.constant 0 : index
    %c0_15 = arith.constant 0 : index
    %28 = vector.load %arg1[%c0_13, %c0_14, %c0_15] : memref<8x2x128xf32, #tpu.memory_space<vmem>>, vector<1x2x128xf32>
    %29 = vector.shape_cast %28 : vector<1x2x128xf32> to vector<2x128xf32>
    %c0_16 = arith.constant 0 : index
    %c0_17 = arith.constant 0 : index
    %30 = vector.load %arg5[%c0_16, %c0_17] : memref<32x128xf32, #tpu.memory_space<vmem>>, vector<32x128xf32>
    %cst_18 = arith.constant dense<0.000000e+00> : vector<2x128xf32>
    %31 = tpu.matmul %27, %30, %cst_18 {dimension_numbers = #tpu.dot_dimension_numbers<[1], [0], [0], [1], [0, 0, 1, 1], [], []>} : vector<2x32xf32>, vector<32x128xf32>, vector<2x128xf32> -> vector<2x128xf32>
    %32 = arith.addf %29, %31 : vector<2x128xf32>
    %33 = arith.addf %32, %5 : vector<2x128xf32>
    %34 = arith.negf %33 : vector<2x128xf32>
    %35 = math.exp %34 : vector<2x128xf32>
    %cst_19 = arith.constant 1.000000e+00 : f32
    %36 = vector.broadcast %cst_19 : f32 to vector<2x128xf32>
    %37 = arith.addf %36, %35 : vector<2x128xf32>
    %38 = arith.divf %36, %37 : vector<2x128xf32>
    %39 = math.tanh %33 : vector<2x128xf32>
    %40 = vector.extract_strided_slice %38 {offsets = [0, 0], sizes = [2, 32], strides = [1, 1]} : vector<2x128xf32> to vector<2x32xf32>
    %41 = vector.extract_strided_slice %38 {offsets = [0, 32], sizes = [2, 32], strides = [1, 1]} : vector<2x128xf32> to vector<2x32xf32>
    %42 = vector.extract_strided_slice %38 {offsets = [0, 96], sizes = [2, 32], strides = [1, 1]} : vector<2x128xf32> to vector<2x32xf32>
    %43 = vector.extract_strided_slice %39 {offsets = [0, 64], sizes = [2, 32], strides = [1, 1]} : vector<2x128xf32> to vector<2x32xf32>
    %44 = arith.mulf %41, %3 : vector<2x32xf32>
    %45 = arith.mulf %40, %43 : vector<2x32xf32>
    %46 = arith.addf %44, %45 : vector<2x32xf32>
    %47 = math.tanh %46 : vector<2x32xf32>
    %48 = arith.mulf %42, %47 : vector<2x32xf32>
    %c0_20 = arith.constant 0 : index
    %c0_21 = arith.constant 0 : index
    %49 = vector.load %arg6[%c0_20, %c0_21] : memref<32x288xf32, #tpu.memory_space<vmem>>, vector<32x288xf32>
    %cst_22 = arith.constant dense<0.000000e+00> : vector<2x288xf32>
    %50 = tpu.matmul %48, %49, %cst_22 {dimension_numbers = #tpu.dot_dimension_numbers<[1], [0], [0], [1], [0, 0, 1, 1], [], []>} : vector<2x32xf32>, vector<32x288xf32>, vector<2x288xf32> -> vector<2x288xf32>
    %51 = vector.extract_strided_slice %50 {offsets = [0, 0], sizes = [2, 128], strides = [1, 1]} : vector<2x288xf32> to vector<2x128xf32>
    %52 = vector.extract_strided_slice %50 {offsets = [0, 128], sizes = [2, 128], strides = [1, 1]} : vector<2x288xf32> to vector<2x128xf32>
    %53 = vector.extract_strided_slice %50 {offsets = [0, 256], sizes = [2, 32], strides = [1, 1]} : vector<2x288xf32> to vector<2x32xf32>
    %c0_23 = arith.constant 0 : index
    %c0_24 = arith.constant 0 : index
    %54 = vector.load %arg7[%c0_23, %c0_24] : memref<1x128xf32, #tpu.memory_space<vmem>>, vector<1x128xf32>
    %55 = vector.broadcast %54 : vector<1x128xf32> to vector<2x128xf32>
    %56 = arith.addf %52, %55 : vector<2x128xf32>
    %57 = arith.negf %56 : vector<2x128xf32>
    %58 = math.exp %57 : vector<2x128xf32>
    %cst_25 = arith.constant 1.000000e+00 : f32
    %59 = vector.broadcast %cst_25 : f32 to vector<2x128xf32>
    %60 = arith.addf %59, %58 : vector<2x128xf32>
    %61 = arith.divf %59, %60 : vector<2x128xf32>
    %62 = math.tanh %56 : vector<2x128xf32>
    %63 = vector.extract_strided_slice %61 {offsets = [0, 0], sizes = [2, 32], strides = [1, 1]} : vector<2x128xf32> to vector<2x32xf32>
    %64 = vector.extract_strided_slice %61 {offsets = [0, 32], sizes = [2, 32], strides = [1, 1]} : vector<2x128xf32> to vector<2x32xf32>
    %65 = vector.extract_strided_slice %61 {offsets = [0, 96], sizes = [2, 32], strides = [1, 1]} : vector<2x128xf32> to vector<2x32xf32>
    %66 = vector.extract_strided_slice %62 {offsets = [0, 64], sizes = [2, 32], strides = [1, 1]} : vector<2x128xf32> to vector<2x32xf32>
    %67 = arith.mulf %64, %46 : vector<2x32xf32>
    %68 = arith.mulf %63, %66 : vector<2x32xf32>
    %69 = arith.addf %67, %68 : vector<2x32xf32>
    %70 = math.tanh %69 : vector<2x32xf32>
    %71 = arith.mulf %65, %70 : vector<2x32xf32>
    %72 = vector.shape_cast %53 : vector<2x32xf32> to vector<2x1x32xf32>
    %73 = vector.broadcast %72 : vector<2x1x32xf32> to vector<2x8x32xf32>
    %74 = arith.addf %0, %73 : vector<2x8x32xf32>
    %75 = math.tanh %74 : vector<2x8x32xf32>
    %76 = vector.shape_cast %2 : vector<1x32xf32> to vector<1x1x32xf32>
    %77 = vector.broadcast %76 : vector<1x1x32xf32> to vector<2x8x32xf32>
    %78 = arith.mulf %75, %77 : vector<2x8x32xf32>
    %cst_26 = arith.constant dense<0.000000e+00> : vector<2x8xf32>
    %79 = vector.multi_reduction <add>, %78, %cst_26 [2] : vector<2x8x32xf32> to vector<2x8xf32>
    %cst_27 = arith.constant dense<0xFF800000> : vector<2xf32>
    %80 = vector.multi_reduction <maximumf>, %79, %cst_27 [1] : vector<2x8xf32> to vector<2xf32>
    %81 = vector.shape_cast %80 : vector<2xf32> to vector<2x1xf32>
    %82 = vector.broadcast %81 : vector<2x1xf32> to vector<2x8xf32>
    %83 = arith.subf %79, %82 : vector<2x8xf32>
    %84 = math.exp %83 : vector<2x8xf32>
    %cst_28 = arith.constant dense<0.000000e+00> : vector<2xf32>
    %85 = vector.multi_reduction <add>, %84, %cst_28 [1] : vector<2x8xf32> to vector<2xf32>
    %86 = vector.shape_cast %85 : vector<2xf32> to vector<2x1xf32>
    %87 = tpu.reciprocal %86 {approx = true} : vector<2x1xf32> -> vector<2x1xf32>
    %88 = vector.broadcast %87 : vector<2x1xf32> to vector<2x8xf32>
    %89 = arith.mulf %84, %88 : vector<2x8xf32>
    %90 = vector.shape_cast %89 : vector<2x8xf32> to vector<2x8x1xf32>
    %91 = vector.broadcast %90 : vector<2x8x1xf32> to vector<2x8x32xf32>
    %92 = arith.mulf %91, %1 : vector<2x8x32xf32>
    %cst_29 = arith.constant dense<0.000000e+00> : vector<2x32xf32>
    %93 = vector.multi_reduction <add>, %92, %cst_29 [1] : vector<2x8x32xf32> to vector<2x32xf32>
    %c1 = arith.constant 1 : index
    %c0_30 = arith.constant 0 : index
    %c0_31 = arith.constant 0 : index
    %94 = vector.load %arg1[%c1, %c0_30, %c0_31] : memref<8x2x128xf32, #tpu.memory_space<vmem>>, vector<1x2x128xf32>
    %95 = vector.shape_cast %94 : vector<1x2x128xf32> to vector<2x128xf32>
    %c0_32 = arith.constant 0 : index
    %c0_33 = arith.constant 0 : index
    %96 = vector.load %arg5[%c0_32, %c0_33] : memref<32x128xf32, #tpu.memory_space<vmem>>, vector<32x128xf32>
    %cst_34 = arith.constant dense<0.000000e+00> : vector<2x128xf32>
    %97 = tpu.matmul %93, %96, %cst_34 {dimension_numbers = #tpu.dot_dimension_numbers<[1], [0], [0], [1], [0, 0, 1, 1], [], []>} : vector<2x32xf32>, vector<32x128xf32>, vector<2x128xf32> -> vector<2x128xf32>
    %98 = arith.addf %95, %97 : vector<2x128xf32>
    %99 = arith.addf %98, %51 : vector<2x128xf32>
    %100 = arith.negf %99 : vector<2x128xf32>
    %101 = math.exp %100 : vector<2x128xf32>
    %cst_35 = arith.constant 1.000000e+00 : f32
    %102 = vector.broadcast %cst_35 : f32 to vector<2x128xf32>
    %103 = arith.addf %102, %101 : vector<2x128xf32>
    %104 = arith.divf %102, %103 : vector<2x128xf32>
    %105 = math.tanh %99 : vector<2x128xf32>
    %106 = vector.extract_strided_slice %104 {offsets = [0, 0], sizes = [2, 32], strides = [1, 1]} : vector<2x128xf32> to vector<2x32xf32>
    %107 = vector.extract_strided_slice %104 {offsets = [0, 32], sizes = [2, 32], strides = [1, 1]} : vector<2x128xf32> to vector<2x32xf32>
    %108 = vector.extract_strided_slice %104 {offsets = [0, 96], sizes = [2, 32], strides = [1, 1]} : vector<2x128xf32> to vector<2x32xf32>
    %109 = vector.extract_strided_slice %105 {offsets = [0, 64], sizes = [2, 32], strides = [1, 1]} : vector<2x128xf32> to vector<2x32xf32>
    %110 = arith.mulf %107, %46 : vector<2x32xf32>
    %111 = arith.mulf %106, %109 : vector<2x32xf32>
    %112 = arith.addf %110, %111 : vector<2x32xf32>
    %113 = math.tanh %112 : vector<2x32xf32>
    %114 = arith.mulf %108, %113 : vector<2x32xf32>
    %c0_36 = arith.constant 0 : index
    %c0_37 = arith.constant 0 : index
    %115 = vector.load %arg6[%c0_36, %c0_37] : memref<32x288xf32, #tpu.memory_space<vmem>>, vector<32x288xf32>
    %cst_38 = arith.constant dense<0.000000e+00> : vector<2x288xf32>
    %116 = tpu.matmul %114, %115, %cst_38 {dimension_numbers = #tpu.dot_dimension_numbers<[1], [0], [0], [1], [0, 0, 1, 1], [], []>} : vector<2x32xf32>, vector<32x288xf32>, vector<2x288xf32> -> vector<2x288xf32>
    %117 = vector.extract_strided_slice %116 {offsets = [0, 0], sizes = [2, 128], strides = [1, 1]} : vector<2x288xf32> to vector<2x128xf32>
    %118 = vector.extract_strided_slice %116 {offsets = [0, 128], sizes = [2, 128], strides = [1, 1]} : vector<2x288xf32> to vector<2x128xf32>
    %119 = vector.extract_strided_slice %116 {offsets = [0, 256], sizes = [2, 32], strides = [1, 1]} : vector<2x288xf32> to vector<2x32xf32>
    %c0_39 = arith.constant 0 : index
    %c0_40 = arith.constant 0 : index
    %120 = vector.load %arg7[%c0_39, %c0_40] : memref<1x128xf32, #tpu.memory_space<vmem>>, vector<1x128xf32>
    %121 = vector.broadcast %120 : vector<1x128xf32> to vector<2x128xf32>
    %122 = arith.addf %118, %121 : vector<2x128xf32>
    %123 = arith.negf %122 : vector<2x128xf32>
    %124 = math.exp %123 : vector<2x128xf32>
    %cst_41 = arith.constant 1.000000e+00 : f32
    %125 = vector.broadcast %cst_41 : f32 to vector<2x128xf32>
    %126 = arith.addf %125, %124 : vector<2x128xf32>
    %127 = arith.divf %125, %126 : vector<2x128xf32>
    %128 = math.tanh %122 : vector<2x128xf32>
    %129 = vector.extract_strided_slice %127 {offsets = [0, 0], sizes = [2, 32], strides = [1, 1]} : vector<2x128xf32> to vector<2x32xf32>
    %130 = vector.extract_strided_slice %127 {offsets = [0, 32], sizes = [2, 32], strides = [1, 1]} : vector<2x128xf32> to vector<2x32xf32>
    %131 = vector.extract_strided_slice %127 {offsets = [0, 96], sizes = [2, 32], strides = [1, 1]} : vector<2x128xf32> to vector<2x32xf32>
    %132 = vector.extract_strided_slice %128 {offsets = [0, 64], sizes = [2, 32], strides = [1, 1]} : vector<2x128xf32> to vector<2x32xf32>
    %133 = arith.mulf %130, %112 : vector<2x32xf32>
    %134 = arith.mulf %129, %132 : vector<2x32xf32>
    %135 = arith.addf %133, %134 : vector<2x32xf32>
    %136 = math.tanh %135 : vector<2x32xf32>
    %137 = arith.mulf %131, %136 : vector<2x32xf32>
    %138 = vector.shape_cast %119 : vector<2x32xf32> to vector<2x1x32xf32>
    %139 = vector.broadcast %138 : vector<2x1x32xf32> to vector<2x8x32xf32>
    %140 = arith.addf %0, %139 : vector<2x8x32xf32>
    %141 = math.tanh %140 : vector<2x8x32xf32>
    %142 = vector.shape_cast %2 : vector<1x32xf32> to vector<1x1x32xf32>
    %143 = vector.broadcast %142 : vector<1x1x32xf32> to vector<2x8x32xf32>
    %144 = arith.mulf %141, %143 : vector<2x8x32xf32>
    %cst_42 = arith.constant dense<0.000000e+00> : vector<2x8xf32>
    %145 = vector.multi_reduction <add>, %144, %cst_42 [2] : vector<2x8x32xf32> to vector<2x8xf32>
    %cst_43 = arith.constant dense<0xFF800000> : vector<2xf32>
    %146 = vector.multi_reduction <maximumf>, %145, %cst_43 [1] : vector<2x8xf32> to vector<2xf32>
    %147 = vector.shape_cast %146 : vector<2xf32> to vector<2x1xf32>
    %148 = vector.broadcast %147 : vector<2x1xf32> to vector<2x8xf32>
    %149 = arith.subf %145, %148 : vector<2x8xf32>
    %150 = math.exp %149 : vector<2x8xf32>
    %cst_44 = arith.constant dense<0.000000e+00> : vector<2xf32>
    %151 = vector.multi_reduction <add>, %150, %cst_44 [1] : vector<2x8xf32> to vector<2xf32>
    %152 = vector.shape_cast %151 : vector<2xf32> to vector<2x1xf32>
    %153 = tpu.reciprocal %152 {approx = true} : vector<2x1xf32> -> vector<2x1xf32>
    %154 = vector.broadcast %153 : vector<2x1xf32> to vector<2x8xf32>
    %155 = arith.mulf %150, %154 : vector<2x8xf32>
    %156 = vector.shape_cast %155 : vector<2x8xf32> to vector<2x8x1xf32>
    %157 = vector.broadcast %156 : vector<2x8x1xf32> to vector<2x8x32xf32>
    %158 = arith.mulf %157, %1 : vector<2x8x32xf32>
    %cst_45 = arith.constant dense<0.000000e+00> : vector<2x32xf32>
    %159 = vector.multi_reduction <add>, %158, %cst_45 [1] : vector<2x8x32xf32> to vector<2x32xf32>
    %c2 = arith.constant 2 : index
    %c0_46 = arith.constant 0 : index
    %c0_47 = arith.constant 0 : index
    %160 = vector.load %arg1[%c2, %c0_46, %c0_47] : memref<8x2x128xf32, #tpu.memory_space<vmem>>, vector<1x2x128xf32>
    %161 = vector.shape_cast %160 : vector<1x2x128xf32> to vector<2x128xf32>
    %c0_48 = arith.constant 0 : index
    %c0_49 = arith.constant 0 : index
    %162 = vector.load %arg5[%c0_48, %c0_49] : memref<32x128xf32, #tpu.memory_space<vmem>>, vector<32x128xf32>
    %cst_50 = arith.constant dense<0.000000e+00> : vector<2x128xf32>
    %163 = tpu.matmul %159, %162, %cst_50 {dimension_numbers = #tpu.dot_dimension_numbers<[1], [0], [0], [1], [0, 0, 1, 1], [], []>} : vector<2x32xf32>, vector<32x128xf32>, vector<2x128xf32> -> vector<2x128xf32>
    %164 = arith.addf %161, %163 : vector<2x128xf32>
    %165 = arith.addf %164, %117 : vector<2x128xf32>
    %166 = arith.negf %165 : vector<2x128xf32>
    %167 = math.exp %166 : vector<2x128xf32>
    %cst_51 = arith.constant 1.000000e+00 : f32
    %168 = vector.broadcast %cst_51 : f32 to vector<2x128xf32>
    %169 = arith.addf %168, %167 : vector<2x128xf32>
    %170 = arith.divf %168, %169 : vector<2x128xf32>
    %171 = math.tanh %165 : vector<2x128xf32>
    %172 = vector.extract_strided_slice %170 {offsets = [0, 0], sizes = [2, 32], strides = [1, 1]} : vector<2x128xf32> to vector<2x32xf32>
    %173 = vector.extract_strided_slice %170 {offsets = [0, 32], sizes = [2, 32], strides = [1, 1]} : vector<2x128xf32> to vector<2x32xf32>
    %174 = vector.extract_strided_slice %170 {offsets = [0, 96], sizes = [2, 32], strides = [1, 1]} : vector<2x128xf32> to vector<2x32xf32>
    %175 = vector.extract_strided_slice %171 {offsets = [0, 64], sizes = [2, 32], strides = [1, 1]} : vector<2x128xf32> to vector<2x32xf32>
    %176 = arith.mulf %173, %112 : vector<2x32xf32>
    %177 = arith.mulf %172, %175 : vector<2x32xf32>
    %178 = arith.addf %176, %177 : vector<2x32xf32>
    %179 = math.tanh %178 : vector<2x32xf32>
    %180 = arith.mulf %174, %179 : vector<2x32xf32>
    %c0_52 = arith.constant 0 : index
    %c0_53 = arith.constant 0 : index
    %181 = vector.load %arg6[%c0_52, %c0_53] : memref<32x288xf32, #tpu.memory_space<vmem>>, vector<32x288xf32>
    %cst_54 = arith.constant dense<0.000000e+00> : vector<2x288xf32>
    %182 = tpu.matmul %180, %181, %cst_54 {dimension_numbers = #tpu.dot_dimension_numbers<[1], [0], [0], [1], [0, 0, 1, 1], [], []>} : vector<2x32xf32>, vector<32x288xf32>, vector<2x288xf32> -> vector<2x288xf32>
    %183 = vector.extract_strided_slice %182 {offsets = [0, 0], sizes = [2, 128], strides = [1, 1]} : vector<2x288xf32> to vector<2x128xf32>
    %184 = vector.extract_strided_slice %182 {offsets = [0, 128], sizes = [2, 128], strides = [1, 1]} : vector<2x288xf32> to vector<2x128xf32>
    %185 = vector.extract_strided_slice %182 {offsets = [0, 256], sizes = [2, 32], strides = [1, 1]} : vector<2x288xf32> to vector<2x32xf32>
    %c0_55 = arith.constant 0 : index
    %c0_56 = arith.constant 0 : index
    %186 = vector.load %arg7[%c0_55, %c0_56] : memref<1x128xf32, #tpu.memory_space<vmem>>, vector<1x128xf32>
    %187 = vector.broadcast %186 : vector<1x128xf32> to vector<2x128xf32>
    %188 = arith.addf %184, %187 : vector<2x128xf32>
    %189 = arith.negf %188 : vector<2x128xf32>
    %190 = math.exp %189 : vector<2x128xf32>
    %cst_57 = arith.constant 1.000000e+00 : f32
    %191 = vector.broadcast %cst_57 : f32 to vector<2x128xf32>
    %192 = arith.addf %191, %190 : vector<2x128xf32>
    %193 = arith.divf %191, %192 : vector<2x128xf32>
    %194 = math.tanh %188 : vector<2x128xf32>
    %195 = vector.extract_strided_slice %193 {offsets = [0, 0], sizes = [2, 32], strides = [1, 1]} : vector<2x128xf32> to vector<2x32xf32>
    %196 = vector.extract_strided_slice %193 {offsets = [0, 32], sizes = [2, 32], strides = [1, 1]} : vector<2x128xf32> to vector<2x32xf32>
    %197 = vector.extract_strided_slice %193 {offsets = [0, 96], sizes = [2, 32], strides = [1, 1]} : vector<2x128xf32> to vector<2x32xf32>
    %198 = vector.extract_strided_slice %194 {offsets = [0, 64], sizes = [2, 32], strides = [1, 1]} : vector<2x128xf32> to vector<2x32xf32>
    %199 = arith.mulf %196, %178 : vector<2x32xf32>
    %200 = arith.mulf %195, %198 : vector<2x32xf32>
    %201 = arith.addf %199, %200 : vector<2x32xf32>
    %202 = math.tanh %201 : vector<2x32xf32>
    %203 = arith.mulf %197, %202 : vector<2x32xf32>
    %204 = vector.shape_cast %185 : vector<2x32xf32> to vector<2x1x32xf32>
    %205 = vector.broadcast %204 : vector<2x1x32xf32> to vector<2x8x32xf32>
    %206 = arith.addf %0, %205 : vector<2x8x32xf32>
    %207 = math.tanh %206 : vector<2x8x32xf32>
    %208 = vector.shape_cast %2 : vector<1x32xf32> to vector<1x1x32xf32>
    %209 = vector.broadcast %208 : vector<1x1x32xf32> to vector<2x8x32xf32>
    %210 = arith.mulf %207, %209 : vector<2x8x32xf32>
    %cst_58 = arith.constant dense<0.000000e+00> : vector<2x8xf32>
    %211 = vector.multi_reduction <add>, %210, %cst_58 [2] : vector<2x8x32xf32> to vector<2x8xf32>
    %cst_59 = arith.constant dense<0xFF800000> : vector<2xf32>
    %212 = vector.multi_reduction <maximumf>, %211, %cst_59 [1] : vector<2x8xf32> to vector<2xf32>
    %213 = vector.shape_cast %212 : vector<2xf32> to vector<2x1xf32>
    %214 = vector.broadcast %213 : vector<2x1xf32> to vector<2x8xf32>
    %215 = arith.subf %211, %214 : vector<2x8xf32>
    %216 = math.exp %215 : vector<2x8xf32>
    %cst_60 = arith.constant dense<0.000000e+00> : vector<2xf32>
    %217 = vector.multi_reduction <add>, %216, %cst_60 [1] : vector<2x8xf32> to vector<2xf32>
    %218 = vector.shape_cast %217 : vector<2xf32> to vector<2x1xf32>
    %219 = tpu.reciprocal %218 {approx = true} : vector<2x1xf32> -> vector<2x1xf32>
    %220 = vector.broadcast %219 : vector<2x1xf32> to vector<2x8xf32>
    %221 = arith.mulf %216, %220 : vector<2x8xf32>
    %222 = vector.shape_cast %221 : vector<2x8xf32> to vector<2x8x1xf32>
    %223 = vector.broadcast %222 : vector<2x8x1xf32> to vector<2x8x32xf32>
    %224 = arith.mulf %223, %1 : vector<2x8x32xf32>
    %cst_61 = arith.constant dense<0.000000e+00> : vector<2x32xf32>
    %225 = vector.multi_reduction <add>, %224, %cst_61 [1] : vector<2x8x32xf32> to vector<2x32xf32>
    %c3 = arith.constant 3 : index
    %c0_62 = arith.constant 0 : index
    %c0_63 = arith.constant 0 : index
    %226 = vector.load %arg1[%c3, %c0_62, %c0_63] : memref<8x2x128xf32, #tpu.memory_space<vmem>>, vector<1x2x128xf32>
    %227 = vector.shape_cast %226 : vector<1x2x128xf32> to vector<2x128xf32>
    %c0_64 = arith.constant 0 : index
    %c0_65 = arith.constant 0 : index
    %228 = vector.load %arg5[%c0_64, %c0_65] : memref<32x128xf32, #tpu.memory_space<vmem>>, vector<32x128xf32>
    %cst_66 = arith.constant dense<0.000000e+00> : vector<2x128xf32>
    %229 = tpu.matmul %225, %228, %cst_66 {dimension_numbers = #tpu.dot_dimension_numbers<[1], [0], [0], [1], [0, 0, 1, 1], [], []>} : vector<2x32xf32>, vector<32x128xf32>, vector<2x128xf32> -> vector<2x128xf32>
    %230 = arith.addf %227, %229 : vector<2x128xf32>
    %231 = arith.addf %230, %183 : vector<2x128xf32>
    %232 = arith.negf %231 : vector<2x128xf32>
    %233 = math.exp %232 : vector<2x128xf32>
    %cst_67 = arith.constant 1.000000e+00 : f32
    %234 = vector.broadcast %cst_67 : f32 to vector<2x128xf32>
    %235 = arith.addf %234, %233 : vector<2x128xf32>
    %236 = arith.divf %234, %235 : vector<2x128xf32>
    %237 = math.tanh %231 : vector<2x128xf32>
    %238 = vector.extract_strided_slice %236 {offsets = [0, 0], sizes = [2, 32], strides = [1, 1]} : vector<2x128xf32> to vector<2x32xf32>
    %239 = vector.extract_strided_slice %236 {offsets = [0, 32], sizes = [2, 32], strides = [1, 1]} : vector<2x128xf32> to vector<2x32xf32>
    %240 = vector.extract_strided_slice %236 {offsets = [0, 96], sizes = [2, 32], strides = [1, 1]} : vector<2x128xf32> to vector<2x32xf32>
    %241 = vector.extract_strided_slice %237 {offsets = [0, 64], sizes = [2, 32], strides = [1, 1]} : vector<2x128xf32> to vector<2x32xf32>
    %242 = arith.mulf %239, %178 : vector<2x32xf32>
    %243 = arith.mulf %238, %241 : vector<2x32xf32>
    %244 = arith.addf %242, %243 : vector<2x32xf32>
    %245 = math.tanh %244 : vector<2x32xf32>
    %246 = arith.mulf %240, %245 : vector<2x32xf32>
    %c0_68 = arith.constant 0 : index
    %c0_69 = arith.constant 0 : index
    %247 = vector.load %arg6[%c0_68, %c0_69] : memref<32x288xf32, #tpu.memory_space<vmem>>, vector<32x288xf32>
    %cst_70 = arith.constant dense<0.000000e+00> : vector<2x288xf32>
    %248 = tpu.matmul %246, %247, %cst_70 {dimension_numbers = #tpu.dot_dimension_numbers<[1], [0], [0], [1], [0, 0, 1, 1], [], []>} : vector<2x32xf32>, vector<32x288xf32>, vector<2x288xf32> -> vector<2x288xf32>
    %249 = vector.extract_strided_slice %248 {offsets = [0, 0], sizes = [2, 128], strides = [1, 1]} : vector<2x288xf32> to vector<2x128xf32>
    %250 = vector.extract_strided_slice %248 {offsets = [0, 128], sizes = [2, 128], strides = [1, 1]} : vector<2x288xf32> to vector<2x128xf32>
    %251 = vector.extract_strided_slice %248 {offsets = [0, 256], sizes = [2, 32], strides = [1, 1]} : vector<2x288xf32> to vector<2x32xf32>
    %c0_71 = arith.constant 0 : index
    %c0_72 = arith.constant 0 : index
    %252 = vector.load %arg7[%c0_71, %c0_72] : memref<1x128xf32, #tpu.memory_space<vmem>>, vector<1x128xf32>
    %253 = vector.broadcast %252 : vector<1x128xf32> to vector<2x128xf32>
    %254 = arith.addf %250, %253 : vector<2x128xf32>
    %255 = arith.negf %254 : vector<2x128xf32>
    %256 = math.exp %255 : vector<2x128xf32>
    %cst_73 = arith.constant 1.000000e+00 : f32
    %257 = vector.broadcast %cst_73 : f32 to vector<2x128xf32>
    %258 = arith.addf %257, %256 : vector<2x128xf32>
    %259 = arith.divf %257, %258 : vector<2x128xf32>
    %260 = math.tanh %254 : vector<2x128xf32>
    %261 = vector.extract_strided_slice %259 {offsets = [0, 0], sizes = [2, 32], strides = [1, 1]} : vector<2x128xf32> to vector<2x32xf32>
    %262 = vector.extract_strided_slice %259 {offsets = [0, 32], sizes = [2, 32], strides = [1, 1]} : vector<2x128xf32> to vector<2x32xf32>
    %263 = vector.extract_strided_slice %259 {offsets = [0, 96], sizes = [2, 32], strides = [1, 1]} : vector<2x128xf32> to vector<2x32xf32>
    %264 = vector.extract_strided_slice %260 {offsets = [0, 64], sizes = [2, 32], strides = [1, 1]} : vector<2x128xf32> to vector<2x32xf32>
    %265 = arith.mulf %262, %244 : vector<2x32xf32>
    %266 = arith.mulf %261, %264 : vector<2x32xf32>
    %267 = arith.addf %265, %266 : vector<2x32xf32>
    %268 = math.tanh %267 : vector<2x32xf32>
    %269 = arith.mulf %263, %268 : vector<2x32xf32>
    %270 = vector.shape_cast %251 : vector<2x32xf32> to vector<2x1x32xf32>
    %271 = vector.broadcast %270 : vector<2x1x32xf32> to vector<2x8x32xf32>
    %272 = arith.addf %0, %271 : vector<2x8x32xf32>
    %273 = math.tanh %272 : vector<2x8x32xf32>
    %274 = vector.shape_cast %2 : vector<1x32xf32> to vector<1x1x32xf32>
    %275 = vector.broadcast %274 : vector<1x1x32xf32> to vector<2x8x32xf32>
    %276 = arith.mulf %273, %275 : vector<2x8x32xf32>
    %cst_74 = arith.constant dense<0.000000e+00> : vector<2x8xf32>
    %277 = vector.multi_reduction <add>, %276, %cst_74 [2] : vector<2x8x32xf32> to vector<2x8xf32>
    %cst_75 = arith.constant dense<0xFF800000> : vector<2xf32>
    %278 = vector.multi_reduction <maximumf>, %277, %cst_75 [1] : vector<2x8xf32> to vector<2xf32>
    %279 = vector.shape_cast %278 : vector<2xf32> to vector<2x1xf32>
    %280 = vector.broadcast %279 : vector<2x1xf32> to vector<2x8xf32>
    %281 = arith.subf %277, %280 : vector<2x8xf32>
    %282 = math.exp %281 : vector<2x8xf32>
    %cst_76 = arith.constant dense<0.000000e+00> : vector<2xf32>
    %283 = vector.multi_reduction <add>, %282, %cst_76 [1] : vector<2x8xf32> to vector<2xf32>
    %284 = vector.shape_cast %283 : vector<2xf32> to vector<2x1xf32>
    %285 = tpu.reciprocal %284 {approx = true} : vector<2x1xf32> -> vector<2x1xf32>
    %286 = vector.broadcast %285 : vector<2x1xf32> to vector<2x8xf32>
    %287 = arith.mulf %282, %286 : vector<2x8xf32>
    %288 = vector.shape_cast %287 : vector<2x8xf32> to vector<2x8x1xf32>
    %289 = vector.broadcast %288 : vector<2x8x1xf32> to vector<2x8x32xf32>
    %290 = arith.mulf %289, %1 : vector<2x8x32xf32>
    %cst_77 = arith.constant dense<0.000000e+00> : vector<2x32xf32>
    %291 = vector.multi_reduction <add>, %290, %cst_77 [1] : vector<2x8x32xf32> to vector<2x32xf32>
    %c4 = arith.constant 4 : index
    %c0_78 = arith.constant 0 : index
    %c0_79 = arith.constant 0 : index
    %292 = vector.load %arg1[%c4, %c0_78, %c0_79] : memref<8x2x128xf32, #tpu.memory_space<vmem>>, vector<1x2x128xf32>
    %293 = vector.shape_cast %292 : vector<1x2x128xf32> to vector<2x128xf32>
    %c0_80 = arith.constant 0 : index
    %c0_81 = arith.constant 0 : index
    %294 = vector.load %arg5[%c0_80, %c0_81] : memref<32x128xf32, #tpu.memory_space<vmem>>, vector<32x128xf32>
    %cst_82 = arith.constant dense<0.000000e+00> : vector<2x128xf32>
    %295 = tpu.matmul %291, %294, %cst_82 {dimension_numbers = #tpu.dot_dimension_numbers<[1], [0], [0], [1], [0, 0, 1, 1], [], []>} : vector<2x32xf32>, vector<32x128xf32>, vector<2x128xf32> -> vector<2x128xf32>
    %296 = arith.addf %293, %295 : vector<2x128xf32>
    %297 = arith.addf %296, %249 : vector<2x128xf32>
    %298 = arith.negf %297 : vector<2x128xf32>
    %299 = math.exp %298 : vector<2x128xf32>
    %cst_83 = arith.constant 1.000000e+00 : f32
    %300 = vector.broadcast %cst_83 : f32 to vector<2x128xf32>
    %301 = arith.addf %300, %299 : vector<2x128xf32>
    %302 = arith.divf %300, %301 : vector<2x128xf32>
    %303 = math.tanh %297 : vector<2x128xf32>
    %304 = vector.extract_strided_slice %302 {offsets = [0, 0], sizes = [2, 32], strides = [1, 1]} : vector<2x128xf32> to vector<2x32xf32>
    %305 = vector.extract_strided_slice %302 {offsets = [0, 32], sizes = [2, 32], strides = [1, 1]} : vector<2x128xf32> to vector<2x32xf32>
    %306 = vector.extract_strided_slice %302 {offsets = [0, 96], sizes = [2, 32], strides = [1, 1]} : vector<2x128xf32> to vector<2x32xf32>
    %307 = vector.extract_strided_slice %303 {offsets = [0, 64], sizes = [2, 32], strides = [1, 1]} : vector<2x128xf32> to vector<2x32xf32>
    %308 = arith.mulf %305, %244 : vector<2x32xf32>
    %309 = arith.mulf %304, %307 : vector<2x32xf32>
    %310 = arith.addf %308, %309 : vector<2x32xf32>
    %311 = math.tanh %310 : vector<2x32xf32>
    %312 = arith.mulf %306, %311 : vector<2x32xf32>
    %c0_84 = arith.constant 0 : index
    %c0_85 = arith.constant 0 : index
    %313 = vector.load %arg6[%c0_84, %c0_85] : memref<32x288xf32, #tpu.memory_space<vmem>>, vector<32x288xf32>
    %cst_86 = arith.constant dense<0.000000e+00> : vector<2x288xf32>
    %314 = tpu.matmul %312, %313, %cst_86 {dimension_numbers = #tpu.dot_dimension_numbers<[1], [0], [0], [1], [0, 0, 1, 1], [], []>} : vector<2x32xf32>, vector<32x288xf32>, vector<2x288xf32> -> vector<2x288xf32>
    %315 = vector.extract_strided_slice %314 {offsets = [0, 0], sizes = [2, 128], strides = [1, 1]} : vector<2x288xf32> to vector<2x128xf32>
    %316 = vector.extract_strided_slice %314 {offsets = [0, 128], sizes = [2, 128], strides = [1, 1]} : vector<2x288xf32> to vector<2x128xf32>
    %317 = vector.extract_strided_slice %314 {offsets = [0, 256], sizes = [2, 32], strides = [1, 1]} : vector<2x288xf32> to vector<2x32xf32>
    %c0_87 = arith.constant 0 : index
    %c0_88 = arith.constant 0 : index
    %318 = vector.load %arg7[%c0_87, %c0_88] : memref<1x128xf32, #tpu.memory_space<vmem>>, vector<1x128xf32>
    %319 = vector.broadcast %318 : vector<1x128xf32> to vector<2x128xf32>
    %320 = arith.addf %316, %319 : vector<2x128xf32>
    %321 = arith.negf %320 : vector<2x128xf32>
    %322 = math.exp %321 : vector<2x128xf32>
    %cst_89 = arith.constant 1.000000e+00 : f32
    %323 = vector.broadcast %cst_89 : f32 to vector<2x128xf32>
    %324 = arith.addf %323, %322 : vector<2x128xf32>
    %325 = arith.divf %323, %324 : vector<2x128xf32>
    %326 = math.tanh %320 : vector<2x128xf32>
    %327 = vector.extract_strided_slice %325 {offsets = [0, 0], sizes = [2, 32], strides = [1, 1]} : vector<2x128xf32> to vector<2x32xf32>
    %328 = vector.extract_strided_slice %325 {offsets = [0, 32], sizes = [2, 32], strides = [1, 1]} : vector<2x128xf32> to vector<2x32xf32>
    %329 = vector.extract_strided_slice %325 {offsets = [0, 96], sizes = [2, 32], strides = [1, 1]} : vector<2x128xf32> to vector<2x32xf32>
    %330 = vector.extract_strided_slice %326 {offsets = [0, 64], sizes = [2, 32], strides = [1, 1]} : vector<2x128xf32> to vector<2x32xf32>
    %331 = arith.mulf %328, %310 : vector<2x32xf32>
    %332 = arith.mulf %327, %330 : vector<2x32xf32>
    %333 = arith.addf %331, %332 : vector<2x32xf32>
    %334 = math.tanh %333 : vector<2x32xf32>
    %335 = arith.mulf %329, %334 : vector<2x32xf32>
    %336 = vector.shape_cast %317 : vector<2x32xf32> to vector<2x1x32xf32>
    %337 = vector.broadcast %336 : vector<2x1x32xf32> to vector<2x8x32xf32>
    %338 = arith.addf %0, %337 : vector<2x8x32xf32>
    %339 = math.tanh %338 : vector<2x8x32xf32>
    %340 = vector.shape_cast %2 : vector<1x32xf32> to vector<1x1x32xf32>
    %341 = vector.broadcast %340 : vector<1x1x32xf32> to vector<2x8x32xf32>
    %342 = arith.mulf %339, %341 : vector<2x8x32xf32>
    %cst_90 = arith.constant dense<0.000000e+00> : vector<2x8xf32>
    %343 = vector.multi_reduction <add>, %342, %cst_90 [2] : vector<2x8x32xf32> to vector<2x8xf32>
    %cst_91 = arith.constant dense<0xFF800000> : vector<2xf32>
    %344 = vector.multi_reduction <maximumf>, %343, %cst_91 [1] : vector<2x8xf32> to vector<2xf32>
    %345 = vector.shape_cast %344 : vector<2xf32> to vector<2x1xf32>
    %346 = vector.broadcast %345 : vector<2x1xf32> to vector<2x8xf32>
    %347 = arith.subf %343, %346 : vector<2x8xf32>
    %348 = math.exp %347 : vector<2x8xf32>
    %cst_92 = arith.constant dense<0.000000e+00> : vector<2xf32>
    %349 = vector.multi_reduction <add>, %348, %cst_92 [1] : vector<2x8xf32> to vector<2xf32>
    %350 = vector.shape_cast %349 : vector<2xf32> to vector<2x1xf32>
    %351 = tpu.reciprocal %350 {approx = true} : vector<2x1xf32> -> vector<2x1xf32>
    %352 = vector.broadcast %351 : vector<2x1xf32> to vector<2x8xf32>
    %353 = arith.mulf %348, %352 : vector<2x8xf32>
    %354 = vector.shape_cast %353 : vector<2x8xf32> to vector<2x8x1xf32>
    %355 = vector.broadcast %354 : vector<2x8x1xf32> to vector<2x8x32xf32>
    %356 = arith.mulf %355, %1 : vector<2x8x32xf32>
    %cst_93 = arith.constant dense<0.000000e+00> : vector<2x32xf32>
    %357 = vector.multi_reduction <add>, %356, %cst_93 [1] : vector<2x8x32xf32> to vector<2x32xf32>
    %c5 = arith.constant 5 : index
    %c0_94 = arith.constant 0 : index
    %c0_95 = arith.constant 0 : index
    %358 = vector.load %arg1[%c5, %c0_94, %c0_95] : memref<8x2x128xf32, #tpu.memory_space<vmem>>, vector<1x2x128xf32>
    %359 = vector.shape_cast %358 : vector<1x2x128xf32> to vector<2x128xf32>
    %c0_96 = arith.constant 0 : index
    %c0_97 = arith.constant 0 : index
    %360 = vector.load %arg5[%c0_96, %c0_97] : memref<32x128xf32, #tpu.memory_space<vmem>>, vector<32x128xf32>
    %cst_98 = arith.constant dense<0.000000e+00> : vector<2x128xf32>
    %361 = tpu.matmul %357, %360, %cst_98 {dimension_numbers = #tpu.dot_dimension_numbers<[1], [0], [0], [1], [0, 0, 1, 1], [], []>} : vector<2x32xf32>, vector<32x128xf32>, vector<2x128xf32> -> vector<2x128xf32>
    %362 = arith.addf %359, %361 : vector<2x128xf32>
    %363 = arith.addf %362, %315 : vector<2x128xf32>
    %364 = arith.negf %363 : vector<2x128xf32>
    %365 = math.exp %364 : vector<2x128xf32>
    %cst_99 = arith.constant 1.000000e+00 : f32
    %366 = vector.broadcast %cst_99 : f32 to vector<2x128xf32>
    %367 = arith.addf %366, %365 : vector<2x128xf32>
    %368 = arith.divf %366, %367 : vector<2x128xf32>
    %369 = math.tanh %363 : vector<2x128xf32>
    %370 = vector.extract_strided_slice %368 {offsets = [0, 0], sizes = [2, 32], strides = [1, 1]} : vector<2x128xf32> to vector<2x32xf32>
    %371 = vector.extract_strided_slice %368 {offsets = [0, 32], sizes = [2, 32], strides = [1, 1]} : vector<2x128xf32> to vector<2x32xf32>
    %372 = vector.extract_strided_slice %368 {offsets = [0, 96], sizes = [2, 32], strides = [1, 1]} : vector<2x128xf32> to vector<2x32xf32>
    %373 = vector.extract_strided_slice %369 {offsets = [0, 64], sizes = [2, 32], strides = [1, 1]} : vector<2x128xf32> to vector<2x32xf32>
    %374 = arith.mulf %371, %310 : vector<2x32xf32>
    %375 = arith.mulf %370, %373 : vector<2x32xf32>
    %376 = arith.addf %374, %375 : vector<2x32xf32>
    %377 = math.tanh %376 : vector<2x32xf32>
    %378 = arith.mulf %372, %377 : vector<2x32xf32>
    %c0_100 = arith.constant 0 : index
    %c0_101 = arith.constant 0 : index
    %379 = vector.load %arg6[%c0_100, %c0_101] : memref<32x288xf32, #tpu.memory_space<vmem>>, vector<32x288xf32>
    %cst_102 = arith.constant dense<0.000000e+00> : vector<2x288xf32>
    %380 = tpu.matmul %378, %379, %cst_102 {dimension_numbers = #tpu.dot_dimension_numbers<[1], [0], [0], [1], [0, 0, 1, 1], [], []>} : vector<2x32xf32>, vector<32x288xf32>, vector<2x288xf32> -> vector<2x288xf32>
    %381 = vector.extract_strided_slice %380 {offsets = [0, 0], sizes = [2, 128], strides = [1, 1]} : vector<2x288xf32> to vector<2x128xf32>
    %382 = vector.extract_strided_slice %380 {offsets = [0, 128], sizes = [2, 128], strides = [1, 1]} : vector<2x288xf32> to vector<2x128xf32>
    %383 = vector.extract_strided_slice %380 {offsets = [0, 256], sizes = [2, 32], strides = [1, 1]} : vector<2x288xf32> to vector<2x32xf32>
    %c0_103 = arith.constant 0 : index
    %c0_104 = arith.constant 0 : index
    %384 = vector.load %arg7[%c0_103, %c0_104] : memref<1x128xf32, #tpu.memory_space<vmem>>, vector<1x128xf32>
    %385 = vector.broadcast %384 : vector<1x128xf32> to vector<2x128xf32>
    %386 = arith.addf %382, %385 : vector<2x128xf32>
    %387 = arith.negf %386 : vector<2x128xf32>
    %388 = math.exp %387 : vector<2x128xf32>
    %cst_105 = arith.constant 1.000000e+00 : f32
    %389 = vector.broadcast %cst_105 : f32 to vector<2x128xf32>
    %390 = arith.addf %389, %388 : vector<2x128xf32>
    %391 = arith.divf %389, %390 : vector<2x128xf32>
    %392 = math.tanh %386 : vector<2x128xf32>
    %393 = vector.extract_strided_slice %391 {offsets = [0, 0], sizes = [2, 32], strides = [1, 1]} : vector<2x128xf32> to vector<2x32xf32>
    %394 = vector.extract_strided_slice %391 {offsets = [0, 32], sizes = [2, 32], strides = [1, 1]} : vector<2x128xf32> to vector<2x32xf32>
    %395 = vector.extract_strided_slice %391 {offsets = [0, 96], sizes = [2, 32], strides = [1, 1]} : vector<2x128xf32> to vector<2x32xf32>
    %396 = vector.extract_strided_slice %392 {offsets = [0, 64], sizes = [2, 32], strides = [1, 1]} : vector<2x128xf32> to vector<2x32xf32>
    %397 = arith.mulf %394, %376 : vector<2x32xf32>
    %398 = arith.mulf %393, %396 : vector<2x32xf32>
    %399 = arith.addf %397, %398 : vector<2x32xf32>
    %400 = math.tanh %399 : vector<2x32xf32>
    %401 = arith.mulf %395, %400 : vector<2x32xf32>
    %402 = vector.shape_cast %383 : vector<2x32xf32> to vector<2x1x32xf32>
    %403 = vector.broadcast %402 : vector<2x1x32xf32> to vector<2x8x32xf32>
    %404 = arith.addf %0, %403 : vector<2x8x32xf32>
    %405 = math.tanh %404 : vector<2x8x32xf32>
    %406 = vector.shape_cast %2 : vector<1x32xf32> to vector<1x1x32xf32>
    %407 = vector.broadcast %406 : vector<1x1x32xf32> to vector<2x8x32xf32>
    %408 = arith.mulf %405, %407 : vector<2x8x32xf32>
    %cst_106 = arith.constant dense<0.000000e+00> : vector<2x8xf32>
    %409 = vector.multi_reduction <add>, %408, %cst_106 [2] : vector<2x8x32xf32> to vector<2x8xf32>
    %cst_107 = arith.constant dense<0xFF800000> : vector<2xf32>
    %410 = vector.multi_reduction <maximumf>, %409, %cst_107 [1] : vector<2x8xf32> to vector<2xf32>
    %411 = vector.shape_cast %410 : vector<2xf32> to vector<2x1xf32>
    %412 = vector.broadcast %411 : vector<2x1xf32> to vector<2x8xf32>
    %413 = arith.subf %409, %412 : vector<2x8xf32>
    %414 = math.exp %413 : vector<2x8xf32>
    %cst_108 = arith.constant dense<0.000000e+00> : vector<2xf32>
    %415 = vector.multi_reduction <add>, %414, %cst_108 [1] : vector<2x8xf32> to vector<2xf32>
    %416 = vector.shape_cast %415 : vector<2xf32> to vector<2x1xf32>
    %417 = tpu.reciprocal %416 {approx = true} : vector<2x1xf32> -> vector<2x1xf32>
    %418 = vector.broadcast %417 : vector<2x1xf32> to vector<2x8xf32>
    %419 = arith.mulf %414, %418 : vector<2x8xf32>
    %420 = vector.shape_cast %419 : vector<2x8xf32> to vector<2x8x1xf32>
    %421 = vector.broadcast %420 : vector<2x8x1xf32> to vector<2x8x32xf32>
    %422 = arith.mulf %421, %1 : vector<2x8x32xf32>
    %cst_109 = arith.constant dense<0.000000e+00> : vector<2x32xf32>
    %423 = vector.multi_reduction <add>, %422, %cst_109 [1] : vector<2x8x32xf32> to vector<2x32xf32>
    %c6 = arith.constant 6 : index
    %c0_110 = arith.constant 0 : index
    %c0_111 = arith.constant 0 : index
    %424 = vector.load %arg1[%c6, %c0_110, %c0_111] : memref<8x2x128xf32, #tpu.memory_space<vmem>>, vector<1x2x128xf32>
    %425 = vector.shape_cast %424 : vector<1x2x128xf32> to vector<2x128xf32>
    %c0_112 = arith.constant 0 : index
    %c0_113 = arith.constant 0 : index
    %426 = vector.load %arg5[%c0_112, %c0_113] : memref<32x128xf32, #tpu.memory_space<vmem>>, vector<32x128xf32>
    %cst_114 = arith.constant dense<0.000000e+00> : vector<2x128xf32>
    %427 = tpu.matmul %423, %426, %cst_114 {dimension_numbers = #tpu.dot_dimension_numbers<[1], [0], [0], [1], [0, 0, 1, 1], [], []>} : vector<2x32xf32>, vector<32x128xf32>, vector<2x128xf32> -> vector<2x128xf32>
    %428 = arith.addf %425, %427 : vector<2x128xf32>
    %429 = arith.addf %428, %381 : vector<2x128xf32>
    %430 = arith.negf %429 : vector<2x128xf32>
    %431 = math.exp %430 : vector<2x128xf32>
    %cst_115 = arith.constant 1.000000e+00 : f32
    %432 = vector.broadcast %cst_115 : f32 to vector<2x128xf32>
    %433 = arith.addf %432, %431 : vector<2x128xf32>
    %434 = arith.divf %432, %433 : vector<2x128xf32>
    %435 = math.tanh %429 : vector<2x128xf32>
    %436 = vector.extract_strided_slice %434 {offsets = [0, 0], sizes = [2, 32], strides = [1, 1]} : vector<2x128xf32> to vector<2x32xf32>
    %437 = vector.extract_strided_slice %434 {offsets = [0, 32], sizes = [2, 32], strides = [1, 1]} : vector<2x128xf32> to vector<2x32xf32>
    %438 = vector.extract_strided_slice %434 {offsets = [0, 96], sizes = [2, 32], strides = [1, 1]} : vector<2x128xf32> to vector<2x32xf32>
    %439 = vector.extract_strided_slice %435 {offsets = [0, 64], sizes = [2, 32], strides = [1, 1]} : vector<2x128xf32> to vector<2x32xf32>
    %440 = arith.mulf %437, %376 : vector<2x32xf32>
    %441 = arith.mulf %436, %439 : vector<2x32xf32>
    %442 = arith.addf %440, %441 : vector<2x32xf32>
    %443 = math.tanh %442 : vector<2x32xf32>
    %444 = arith.mulf %438, %443 : vector<2x32xf32>
    %c0_116 = arith.constant 0 : index
    %c0_117 = arith.constant 0 : index
    %445 = vector.load %arg6[%c0_116, %c0_117] : memref<32x288xf32, #tpu.memory_space<vmem>>, vector<32x288xf32>
    %cst_118 = arith.constant dense<0.000000e+00> : vector<2x288xf32>
    %446 = tpu.matmul %444, %445, %cst_118 {dimension_numbers = #tpu.dot_dimension_numbers<[1], [0], [0], [1], [0, 0, 1, 1], [], []>} : vector<2x32xf32>, vector<32x288xf32>, vector<2x288xf32> -> vector<2x288xf32>
    %447 = vector.extract_strided_slice %446 {offsets = [0, 0], sizes = [2, 128], strides = [1, 1]} : vector<2x288xf32> to vector<2x128xf32>
    %448 = vector.extract_strided_slice %446 {offsets = [0, 128], sizes = [2, 128], strides = [1, 1]} : vector<2x288xf32> to vector<2x128xf32>
    %449 = vector.extract_strided_slice %446 {offsets = [0, 256], sizes = [2, 32], strides = [1, 1]} : vector<2x288xf32> to vector<2x32xf32>
    %c0_119 = arith.constant 0 : index
    %c0_120 = arith.constant 0 : index
    %450 = vector.load %arg7[%c0_119, %c0_120] : memref<1x128xf32, #tpu.memory_space<vmem>>, vector<1x128xf32>
    %451 = vector.broadcast %450 : vector<1x128xf32> to vector<2x128xf32>
    %452 = arith.addf %448, %451 : vector<2x128xf32>
    %453 = arith.negf %452 : vector<2x128xf32>
    %454 = math.exp %453 : vector<2x128xf32>
    %cst_121 = arith.constant 1.000000e+00 : f32
    %455 = vector.broadcast %cst_121 : f32 to vector<2x128xf32>
    %456 = arith.addf %455, %454 : vector<2x128xf32>
    %457 = arith.divf %455, %456 : vector<2x128xf32>
    %458 = math.tanh %452 : vector<2x128xf32>
    %459 = vector.extract_strided_slice %457 {offsets = [0, 0], sizes = [2, 32], strides = [1, 1]} : vector<2x128xf32> to vector<2x32xf32>
    %460 = vector.extract_strided_slice %457 {offsets = [0, 32], sizes = [2, 32], strides = [1, 1]} : vector<2x128xf32> to vector<2x32xf32>
    %461 = vector.extract_strided_slice %457 {offsets = [0, 96], sizes = [2, 32], strides = [1, 1]} : vector<2x128xf32> to vector<2x32xf32>
    %462 = vector.extract_strided_slice %458 {offsets = [0, 64], sizes = [2, 32], strides = [1, 1]} : vector<2x128xf32> to vector<2x32xf32>
    %463 = arith.mulf %460, %442 : vector<2x32xf32>
    %464 = arith.mulf %459, %462 : vector<2x32xf32>
    %465 = arith.addf %463, %464 : vector<2x32xf32>
    %466 = math.tanh %465 : vector<2x32xf32>
    %467 = arith.mulf %461, %466 : vector<2x32xf32>
    %468 = vector.shape_cast %449 : vector<2x32xf32> to vector<2x1x32xf32>
    %469 = vector.broadcast %468 : vector<2x1x32xf32> to vector<2x8x32xf32>
    %470 = arith.addf %0, %469 : vector<2x8x32xf32>
    %471 = math.tanh %470 : vector<2x8x32xf32>
    %472 = vector.shape_cast %2 : vector<1x32xf32> to vector<1x1x32xf32>
    %473 = vector.broadcast %472 : vector<1x1x32xf32> to vector<2x8x32xf32>
    %474 = arith.mulf %471, %473 : vector<2x8x32xf32>
    %cst_122 = arith.constant dense<0.000000e+00> : vector<2x8xf32>
    %475 = vector.multi_reduction <add>, %474, %cst_122 [2] : vector<2x8x32xf32> to vector<2x8xf32>
    %cst_123 = arith.constant dense<0xFF800000> : vector<2xf32>
    %476 = vector.multi_reduction <maximumf>, %475, %cst_123 [1] : vector<2x8xf32> to vector<2xf32>
    %477 = vector.shape_cast %476 : vector<2xf32> to vector<2x1xf32>
    %478 = vector.broadcast %477 : vector<2x1xf32> to vector<2x8xf32>
    %479 = arith.subf %475, %478 : vector<2x8xf32>
    %480 = math.exp %479 : vector<2x8xf32>
    %cst_124 = arith.constant dense<0.000000e+00> : vector<2xf32>
    %481 = vector.multi_reduction <add>, %480, %cst_124 [1] : vector<2x8xf32> to vector<2xf32>
    %482 = vector.shape_cast %481 : vector<2xf32> to vector<2x1xf32>
    %483 = tpu.reciprocal %482 {approx = true} : vector<2x1xf32> -> vector<2x1xf32>
    %484 = vector.broadcast %483 : vector<2x1xf32> to vector<2x8xf32>
    %485 = arith.mulf %480, %484 : vector<2x8xf32>
    %486 = vector.shape_cast %485 : vector<2x8xf32> to vector<2x8x1xf32>
    %487 = vector.broadcast %486 : vector<2x8x1xf32> to vector<2x8x32xf32>
    %488 = arith.mulf %487, %1 : vector<2x8x32xf32>
    %cst_125 = arith.constant dense<0.000000e+00> : vector<2x32xf32>
    %489 = vector.multi_reduction <add>, %488, %cst_125 [1] : vector<2x8x32xf32> to vector<2x32xf32>
    %c7 = arith.constant 7 : index
    %c0_126 = arith.constant 0 : index
    %c0_127 = arith.constant 0 : index
    %490 = vector.load %arg1[%c7, %c0_126, %c0_127] : memref<8x2x128xf32, #tpu.memory_space<vmem>>, vector<1x2x128xf32>
    %491 = vector.shape_cast %490 : vector<1x2x128xf32> to vector<2x128xf32>
    %c0_128 = arith.constant 0 : index
    %c0_129 = arith.constant 0 : index
    %492 = vector.load %arg5[%c0_128, %c0_129] : memref<32x128xf32, #tpu.memory_space<vmem>>, vector<32x128xf32>
    %cst_130 = arith.constant dense<0.000000e+00> : vector<2x128xf32>
    %493 = tpu.matmul %489, %492, %cst_130 {dimension_numbers = #tpu.dot_dimension_numbers<[1], [0], [0], [1], [0, 0, 1, 1], [], []>} : vector<2x32xf32>, vector<32x128xf32>, vector<2x128xf32> -> vector<2x128xf32>
    %494 = arith.addf %491, %493 : vector<2x128xf32>
    %495 = arith.addf %494, %447 : vector<2x128xf32>
    %496 = arith.negf %495 : vector<2x128xf32>
    %497 = math.exp %496 : vector<2x128xf32>
    %cst_131 = arith.constant 1.000000e+00 : f32
    %498 = vector.broadcast %cst_131 : f32 to vector<2x128xf32>
    %499 = arith.addf %498, %497 : vector<2x128xf32>
    %500 = arith.divf %498, %499 : vector<2x128xf32>
    %501 = math.tanh %495 : vector<2x128xf32>
    %502 = vector.extract_strided_slice %500 {offsets = [0, 0], sizes = [2, 32], strides = [1, 1]} : vector<2x128xf32> to vector<2x32xf32>
    %503 = vector.extract_strided_slice %500 {offsets = [0, 32], sizes = [2, 32], strides = [1, 1]} : vector<2x128xf32> to vector<2x32xf32>
    %504 = vector.extract_strided_slice %500 {offsets = [0, 96], sizes = [2, 32], strides = [1, 1]} : vector<2x128xf32> to vector<2x32xf32>
    %505 = vector.extract_strided_slice %501 {offsets = [0, 64], sizes = [2, 32], strides = [1, 1]} : vector<2x128xf32> to vector<2x32xf32>
    %506 = arith.mulf %503, %442 : vector<2x32xf32>
    %507 = arith.mulf %502, %505 : vector<2x32xf32>
    %508 = arith.addf %506, %507 : vector<2x32xf32>
    %509 = math.tanh %508 : vector<2x32xf32>
    %510 = arith.mulf %504, %509 : vector<2x32xf32>
    %c0_132 = arith.constant 0 : index
    %c0_133 = arith.constant 0 : index
    %511 = vector.load %arg6[%c0_132, %c0_133] : memref<32x288xf32, #tpu.memory_space<vmem>>, vector<32x288xf32>
    %cst_134 = arith.constant dense<0.000000e+00> : vector<2x288xf32>
    %512 = tpu.matmul %510, %511, %cst_134 {dimension_numbers = #tpu.dot_dimension_numbers<[1], [0], [0], [1], [0, 0, 1, 1], [], []>} : vector<2x32xf32>, vector<32x288xf32>, vector<2x288xf32> -> vector<2x288xf32>
    %513 = vector.extract_strided_slice %512 {offsets = [0, 128], sizes = [2, 128], strides = [1, 1]} : vector<2x288xf32> to vector<2x128xf32>
    %c0_135 = arith.constant 0 : index
    %c0_136 = arith.constant 0 : index
    %514 = vector.load %arg7[%c0_135, %c0_136] : memref<1x128xf32, #tpu.memory_space<vmem>>, vector<1x128xf32>
    %515 = vector.broadcast %514 : vector<1x128xf32> to vector<2x128xf32>
    %516 = arith.addf %513, %515 : vector<2x128xf32>
    %517 = arith.negf %516 : vector<2x128xf32>
    %518 = math.exp %517 : vector<2x128xf32>
    %cst_137 = arith.constant 1.000000e+00 : f32
    %519 = vector.broadcast %cst_137 : f32 to vector<2x128xf32>
    %520 = arith.addf %519, %518 : vector<2x128xf32>
    %521 = arith.divf %519, %520 : vector<2x128xf32>
    %522 = math.tanh %516 : vector<2x128xf32>
    %523 = vector.extract_strided_slice %521 {offsets = [0, 0], sizes = [2, 32], strides = [1, 1]} : vector<2x128xf32> to vector<2x32xf32>
    %524 = vector.extract_strided_slice %521 {offsets = [0, 32], sizes = [2, 32], strides = [1, 1]} : vector<2x128xf32> to vector<2x32xf32>
    %525 = vector.extract_strided_slice %521 {offsets = [0, 96], sizes = [2, 32], strides = [1, 1]} : vector<2x128xf32> to vector<2x32xf32>
    %526 = vector.extract_strided_slice %522 {offsets = [0, 64], sizes = [2, 32], strides = [1, 1]} : vector<2x128xf32> to vector<2x32xf32>
    %527 = arith.mulf %524, %508 : vector<2x32xf32>
    %528 = arith.mulf %523, %526 : vector<2x32xf32>
    %529 = arith.addf %527, %528 : vector<2x32xf32>
    %530 = math.tanh %529 : vector<2x32xf32>
    %531 = arith.mulf %525, %530 : vector<2x32xf32>
    %532 = tpu.concatenate %71, %137, %203, %269, %335, %401, %467, %531 in 1 : vector<2x32xf32>, vector<2x32xf32>, vector<2x32xf32>, vector<2x32xf32>, vector<2x32xf32>, vector<2x32xf32>, vector<2x32xf32>, vector<2x32xf32> -> vector<2x256xf32>
    %c0_138 = arith.constant 0 : index
    %c0_139 = arith.constant 0 : index
    %533 = vector.load %arg8[%c0_138, %c0_139] : memref<2x256xf32, #tpu.memory_space<vmem>>, vector<2x256xf32>
    tpu.vector_store %arg8[%c0_138, %c0_139], %532 {strides = array<i32>} : memref<2x256xf32, #tpu.memory_space<vmem>>, vector<2x256xf32>,
    return
  }
  func.func @transform_0(%arg0: i32) -> (i32, i32, i32) {
    %c0_i32 = arith.constant 0 : i32
    %c0_i32_0 = arith.constant 0 : i32
    %c0_i32_1 = arith.constant 0 : i32
    %c0_i32_2 = arith.constant 0 : i32
    return %c0_i32, %c0_i32_0, %c0_i32_1 : i32, i32, i32
  }
  func.func @transform_1(%arg0: i32) -> (i32, i32, i32) {
    %c0_i32 = arith.constant 0 : i32
    %c0_i32_0 = arith.constant 0 : i32
    %c0_i32_1 = arith.constant 0 : i32
    %c0_i32_2 = arith.constant 0 : i32
    return %c0_i32, %c0_i32_0, %c0_i32_1 : i32, i32, i32
  }
  func.func @transform_2(%arg0: i32) -> (i32, i32, i32) {
    %c0_i32 = arith.constant 0 : i32
    %c0_i32_0 = arith.constant 0 : i32
    %c0_i32_1 = arith.constant 0 : i32
    %c0_i32_2 = arith.constant 0 : i32
    return %c0_i32, %c0_i32_0, %c0_i32_1 : i32, i32, i32
  }
  func.func @transform_3(%arg0: i32) -> (i32, i32) {
    %c0_i32 = arith.constant 0 : i32
    %c0_i32_0 = arith.constant 0 : i32
    %c0_i32_1 = arith.constant 0 : i32
    return %c0_i32, %c0_i32_0 : i32, i32
  }
  func.func @transform_4(%arg0: i32) -> (i32, i32) {
    %c0_i32 = arith.constant 0 : i32
    %c0_i32_0 = arith.constant 0 : i32
    %c0_i32_1 = arith.constant 0 : i32
    return %c0_i32, %c0_i32_0 : i32, i32
  }
  func.func @transform_5(%arg0: i32) -> (i32, i32) {
    %c0_i32 = arith.constant 0 : i32
    %c0_i32_0 = arith.constant 0 : i32
    %c0_i32_1 = arith.constant 0 : i32
    return %c0_i32, %c0_i32_0 : i32, i32
  }
  func.func @transform_6(%arg0: i32) -> (i32, i32) {
    %c0_i32 = arith.constant 0 : i32
    %c0_i32_0 = arith.constant 0 : i32
    %c0_i32_1 = arith.constant 0 : i32
    return %c0_i32, %c0_i32_0 : i32, i32
  }
  func.func @transform_7(%arg0: i32) -> (i32, i32) {
    %c0_i32 = arith.constant 0 : i32
    %c0_i32_0 = arith.constant 0 : i32
    %c0_i32_1 = arith.constant 0 : i32
    return %c0_i32, %c0_i32_0 : i32, i32
  }
}

</mosaic_0001>

<bundles_post_ra>
// kernel: tpu_custom_call.1
= control target key start
LH: loop header
LB: loop body
LE: loop exit
PB: predicated region body
PF: predicated region fallthrough
CT: control target
= control target key end

     0   :  { %12 = vsyncpa [#allocation3], 0  ;;  %s4853_s0 = inlined_call_operand.hbm [shape: f32[8,2,128], index: 0, kind: input, shape index: {}]   ;;  %s4854_s1 = inlined_call_operand.hbm [shape: f32[2,8,32], index: 1, kind: input, shape index: {}]   ;;  %s4855_s2 = inlined_call_operand.hbm [shape: f32[2,8,32], index: 2, kind: input, shape index: {}]   ;;  %s4856_s3 = inlined_call_operand.vmem [shape: f32[1,32], index: 3, kind: input, shape index: {}]   ;;  %s4857_s4 = inlined_call_operand.hbm [shape: f32[32,128], index: 4, kind: input, shape index: {}]   ;;  %s4858_s5 = inlined_call_operand.hbm [shape: f32[32,288], index: 5, kind: input, shape index: {}]   ;;  %s4859_s6 = inlined_call_operand.vmem [shape: f32[1,128], index: 6, kind: input, shape index: {}]   ;;  %s4860_s7 = inlined_call_operand.hbm [shape: f32[2,256], index: 7, kind: output, shape index: {}]  }
   0x1   :  { %13 = vsyncpa [#allocation6], 0 }
   0x2   :  { %14 = vsyncpa [#allocation9], 0 }
   0x3   :  { %15 = vsyncpa [#allocation4], 0  ;;  %s4045_s24 = smov [#allocation5]  }
   0x4   :  { %s33_s25 = sshll.u32 %s4045_s24, 4  ;;  %s34_s25 = int_to_ptr.vmem [resolvable:$true] %s33_s25 }
   0x5   :  { %s3925_s26 = scalar_lea.vmem %s34_s25, 256  ;;  %p3930_p1 = scmp.lt.s32.totalorder %s34_s25, %s34_s25 }
   0x6   :  { %p3926_p0 = scmp.ne.s32.totalorder %s34_s25, %s3925_s26  ;;  %p3931_p2 = scmp.lt.s32.totalorder %s3925_s26, %s3925_s26 }
   0x8   :  { %p3932_p3 = por %p3931_p2, %p3930_p1 }
   0xa   :  { %p3933_p4 = pnand %p3932_p3, %p3926_p0 }
   0xc   :  { %3936 = shalt.err (!%p3933_p4)
}
   0xd   :  { %s4046_s27 = smov 128   ;;  %s4047_s28 = smov 8  }
   0xe   :  { %39 = dma.hbm_to_vmem [thread:$0]  %s4854_s1, 256, %s34_s25, [#allocation6], %s4046_s27, %s4046_s27, %s4047_s28  }
   0xf   :  { %s4048_s8 = smov [#allocation8]   ;;  %s4049_s10 = smov [#allocation2]  }
  0x10   :  { %s59_s9 = sshll.u32 %s4048_s8, 4  ;;  %s21_s11 = sshll.u32 %s4049_s10, 4  ;;  %s60_s9 = int_to_ptr.vmem [resolvable:$true] %s59_s9  ;;  %s22_s11 = int_to_ptr.vmem [resolvable:$true] %s21_s11 }
  0x11   :  { %s3945_s12 = scalar_lea.vmem %s60_s9, 512  ;;  %p3950_p6 = scmp.lt.s32.totalorder %s60_s9, %s60_s9 }
  0x12   :  { %p3946_p5 = scmp.ne.s32.totalorder %s60_s9, %s3945_s12  ;;  %p3951_p7 = scmp.lt.s32.totalorder %s3945_s12, %s3945_s12 }
  0x14   :  { %p3952_p8 = por %p3951_p7, %p3950_p6 }
  0x16   :  { %p3953_p9 = pnand %p3952_p8, %p3946_p5 }
  0x18   :  { %3956 = shalt.err (!%p3953_p9)
}
  0x19   :  { %65 = dma.hbm_to_vmem [thread:$0]  %s4857_s4, 512, %s60_s9, [#allocation9], %s4046_s27, %s4046_s27, %s4047_s28  }
  0x1a   :  { %s3965_s1 = scalar_lea.vmem %s22_s11, 256  ;;  %p3970_p11 = scmp.lt.s32.totalorder %s22_s11, %s22_s11 }
  0x1b   :  { %p3966_p10 = scmp.ne.s32.totalorder %s22_s11, %s3965_s1  ;;  %p3971_p12 = scmp.lt.s32.totalorder %s3965_s1, %s3965_s1 }
  0x1d   :  { %p3972_p13 = por %p3971_p12, %p3970_p11 }
  0x1f   :  { %p3973_p0 = pnand %p3972_p13, %p3966_p10 }
  0x21   :  { %3976 = shalt.err (!%p3973_p0)
}
  0x22   :  { %s4050_s15 = smov 32   ;;  %s4051_s16 = smov 2  }
  0x23   :  { %27 = dma.hbm_to_vmem [thread:$0]  %s4853_s0, 256, %s22_s11, [#allocation3], %s4050_s15, %s4050_s15, %s4051_s16  }
  0x24   :  { %s4052_s19 = smov [#allocation7]   ;;  %s4053_s4 = smov [#allocation10]  }
  0x25   :  { %s45_s20 = sshll.u32 %s4052_s19, 4  ;;  %s71_s21 = sshll.u32 %s4053_s4, 4  ;;  %s46_s20 = int_to_ptr.vmem [resolvable:$true] %s45_s20  ;;  %s72_s21 = int_to_ptr.vmem [resolvable:$true] %s71_s21 }
  0x26   :  { %s3985_s22 = scalar_lea.vmem %s46_s20, 256  ;;  %p3990_p2 = scmp.lt.s32.totalorder %s46_s20, %s46_s20 }
  0x27   :  { %p3986_p1 = scmp.ne.s32.totalorder %s46_s20, %s3985_s22  ;;  %p3991_p3 = scmp.lt.s32.totalorder %s3985_s22, %s3985_s22 }
  0x29   :  { %p3992_p4 = por %p3991_p3, %p3990_p2 }
  0x2b   :  { %p3993_p5 = pnand %p3992_p4, %p3986_p1 }
  0x2d   :  { %3996 = shalt.err (!%p3993_p5)
}
  0x2e   :  { %51 = dma.hbm_to_vmem [thread:$0]  %s4855_s2, 256, %s46_s20, [#allocation6], %s4046_s27, %s4046_s27, %s4047_s28  }
  0x2f   :  { %s4005_s0 = scalar_lea.vmem %s72_s21, 1536  ;;  %p4010_p7 = scmp.lt.s32.totalorder %s72_s21, %s72_s21 }
  0x30   :  { %p4006_p6 = scmp.ne.s32.totalorder %s72_s21, %s4005_s0  ;;  %p4011_p8 = scmp.lt.s32.totalorder %s4005_s0, %s4005_s0 }
  0x32   :  { %p4012_p9 = por %p4011_p8, %p4010_p7 }
  0x34   :  { %p4013_p10 = pnand %p4012_p9, %p4006_p6 }
  0x36   :  { %4016 = shalt.err (!%p4013_p10)
}
  0x37   :  { %s4054_s25 = smov 384   ;;  %s4055_s26 = smov 24  }
  0x38   :  { %77 = dma.hbm_to_vmem [thread:$0]  %s4858_s5, 1536, %s72_s21, [#allocation9], %s4054_s25, %s4054_s25, %s4055_s26  }
  0x39   :  { %4037 = dma.done.wait [#allocation3], 256  }
  0x3a   :  { %4038 = vsyncadd [#allocation3], 4294967040 }
  0x3b   :  { %4039 = dma.done.wait [#allocation6], 512  }
  0x3c   :  { %4040 = vsyncadd [#allocation6], 4294966784 }
  0x3d   :  { %4041 = dma.done.wait [#allocation9], 2048  }
  0x3e   :  { %4042 = vsyncadd [#allocation9], 4294965248  ;;  %v4129_v0 = vld [vmem:[#allocation5] sm:$0xff]  ;;  %v4131_v1 = vld [vmem:[#allocation5 + $0x8] sm:$0xff]  ;;  %vm112_vm0 = vcmask 261120   ;;  %v121_v9 = vlaneseq  ;;  %vm131_vm1 = vcmask 1041409  }
  0x3f   :  { %3688 = vtanh.f32 %v4129_v0  ;;  %v4138_v2 = vld [vmem:[%s4856_s3] ss:$0 sm:$0xff]  ;;  %vm134_vm2 = vcmask 58368   ;;  %v4056_v19 = vmov 0   ;;  %v4057_v43 = vmov 0.0   ;;  %v4168_v44 = vld [vmem:[#allocation8 + $0x18] sm:$0xff] }
  0x40   :  { %3690 = vtanh.f32 %v4131_v1  ;;  %v122_v10 = vand.u32 127, %v121_v9  ;;  %v4144_v11 = vshrl.u32 %v121_v9, 7  ;;  %3687 = vset.pattern.permute.xlu0 %v4056_v19  ;;  %3686 = vset.pattern.permute.xlu1 %v4056_v19  ;;  %v4173_v45 = vld [vmem:[#allocation8 + $0x10] sm:$0xff]  ;;  %v4176_v46 = vld [vmem:[#allocation8 + $0x8] sm:$0xff]  ;;  %v4179_v47 = vld [vmem:[#allocation8] sm:$0xff]  ;;  %vm4058_vm3 = vmmov 0  }
  0x41   :  { %3503 = vmatprep.subr.mxu0 %v4057_v43  ;;  %403 = vmatprep.mubr.f32.mxu1 %v4057_v43  ;;  %v4187_v48 = vld [vmem:[#allocation7] sm:$0xff]  ;;  %v4190_v51 = vld [vmem:[#allocation7 + $0x8] sm:$0xff]  ;;  %s4059_s5 = smov 64   ;;  %vm3350_vm4 = vcmask 523264   ;;  %vm3352_vm5 = vcmask 785408   ;;  %s4062_s10 = smov [#allocation11]  }
  0x42   :  { %v4147_v13 = vsub.s32 %v122_v10, %v4144_v11  ;;  %v4154_v20 = vsub.s32 0, %v4144_v11  ;;  %v4157_v21 = vsub.s32 1, %v4144_v11  ;;  %3504 = vmatpush3.msra.mxu0 %v4168_v44  ;;  %3511 = vmatprep.mubr.msk.f32.mxu0 %vm4058_vm3, %v4057_v43  ;;  %s3375_s11 = sshll.u32 %s4062_s10, 4  ;;  %s3376_s11 = int_to_ptr.vmem [resolvable:$true] %s3375_s11 }
  0x43   :  { %3505 = vmatprep.subr.mxu0 %v4057_v43  ;;  %s4017_s12 = scalar_lea.vmem %s3376_s11, 64  ;;  %p4022_p12 = scmp.lt.s32.totalorder %s3376_s11, %s3376_s11 }
  0x44   :  { %3506 = vmatpush3.msra.mxu0 %v4173_v45  ;;  %p4018_p11 = scmp.ne.s32.totalorder %s3376_s11, %s4017_s12  ;;  %p4023_p13 = scmp.lt.s32.totalorder %s4017_s12, %s4017_s12 }
  0x45   :  { %3507 = vmatprep.subr.mxu0 %v4057_v43 }
  0x46   :  { %3508 = vmatpush3.msra.mxu0 %v4176_v46  ;;  %p4024_p0 = por %p4023_p13, %p4022_p12 }
  0x47   :  { %3509 = vmatprep.subr.mxu0 %v4057_v43 }
  0x48   :  { %3510 = vmatpush3.msra.mxu0 %v4179_v47  ;;  %p4025_p1 = pnand %p4024_p0, %p4018_p11 }
  0x49   :  { %3514 = vmatprep.subr.mxu0 %v4057_v43 }
  0x4c   :  { %v3689_v3 = vpop.eup %3688 }
  0x4d   :  { %v3691_v4 = vpop.eup %3690  ;;  %v110_v5 = vmul.f32 %v3689_v3, %v4138_v2 }
  0x4e   :  { %v111_v6 = vmul.f32 %v3691_v4, %v4138_v2 }
  0x4f   :  { %v113_v7 = vsel %vm112_vm0, %v110_v5, 0.0 }
  0x50   :  { %114 = vadd.xlane.f32.xlu0 %v113_v7  ;;  %v116_v8 = vsel %vm112_vm0, %v111_v6, 0.0 }
  0x54   :  { %117 = vadd.xlane.f32.xlu0 %v116_v8  ;;  %v216_v8 = vld [vmem:[#allocation2] sm:$0x3] }
  0xd9   :  { %v115_v12 = vpop.xlane.xlu0 %114 }
  0xda   :  { %v126_v15 = vrot.slane %v115_v12, %v4147_v13 }
  0xdd   :  { %v118_v14 = vpop.xlane.xlu0 %117 }
  0xde   :  { %v130_v16 = vrot.slane %v118_v14, %v4147_v13 }
  0xe0   :  { %v132_v17 = vsel %vm131_vm1, %v130_v16, %v126_v15 }
  0xe1   :  { %v135_v18 = vsel %vm134_vm2, %v132_v17, -inf }
  0xe2   :  { %136 = vmax.xlane.f32.xlu1 %v135_v18 }
 0x16b   :  { %v137_v22 = vpop.xlane.xlu1 %136 }
 0x16c   :  { %v142_v23 = vrot.slane %v137_v22, %v4154_v20  ;;  %v146_v24 = vrot.slane %v137_v22, %v4157_v21 }
 0x16e   :  { %v149_v25 = vsub.f32 %v115_v12, %v142_v23  ;;  %v150_v26 = vsub.f32 %v118_v14, %v146_v24 }
 0x170   :  { %v151_v27 = vmul.f32 1.442695, %v149_v25  ;;  %v153_v28 = vmul.f32 1.442695, %v150_v26  ;;  %v4204_v26 = vld [vmem:[#allocation10 + $0x50] sm:$0xff] }
 0x171   :  { %363 = vmatprep.subr.mxu1 %v4204_v26 }
 0x172   :  { %3692 = vpow2.f32 %v151_v27  ;;  %v4206_v27 = vld [vmem:[#allocation10 + $0x48] sm:$0xff] }
 0x173   :  { %3694 = vpow2.f32 %v153_v28  ;;  %v4208_v28 = vld [vmem:[#allocation10 + $0x58] sm:$0xff]  ;;  %364 = vmatpush1.msra.mxu1 %v4206_v27 }
 0x17f   :  { %v3693_v29 = vpop.eup %3692 }
 0x180   :  { %v3695_v30 = vpop.eup %3694  ;;  %158 = vperm.xlu1 %3686, %v3693_v29  }
 0x181   :  { %161 = vperm.xlu0 %3687, %v3695_v30  }
 0x1fb   :  { %v159_v31 = vpop.permute.xlu1 %158 }
 0x1fc   :  { %v162_v32 = vpop.permute.xlu0 %161  ;;  %v166_v33 = vrot.slane %v159_v31, %v4147_v13  ;;  %v4216_v31 = vld [vmem:[#allocation10 + $0x40] sm:$0xff] }
 0x1fd   :  { %v170_v34 = vrot.slane %v162_v32, %v4147_v13  ;;  %v4220_v32 = vld [vmem:[#allocation10 + $0x20] sm:$0xff] }
 0x1ff   :  { %v171_v35 = vsel %vm131_vm1, %v170_v34, %v166_v33  ;;  %v4222_v33 = vld [vmem:[#allocation10 + $0x28] sm:$0xff]  ;;  %v4226_v34 = vld [vmem:[#allocation10 + $0x18] sm:$0xff] }
 0x200   :  { %v173_v36 = vsel %vm134_vm2, %v171_v35, 0.0  ;;  %v4230_v35 = vld [vmem:[#allocation10 + $0x8] sm:$0xff] }
 0x201   :  { %174 = vadd.xlane.f32.xlu1 %v173_v36  ;;  %v4232_v36 = vld [vmem:[#allocation10 + $0x10] sm:$0xff] }
 0x28a   :  { %v175_v37 = vpop.xlane.xlu1 %174 }
 0x28b   :  { %3696 = vrcp.f32 %v175_v37  ;;  %v4236_v37 = vld [vmem:[#allocation10] sm:$0xff] }
 0x298   :  { %v3697_v38 = vpop.eup %3696 }
 0x299   :  { %v181_v39 = vrot.slane %v3697_v38, %v4154_v20  ;;  %v185_v41 = vrot.slane %v3697_v38, %v4157_v21 }
 0x29b   :  { %v188_v40 = vmul.f32 %v3693_v29, %v181_v39  ;;  %v189_v42 = vmul.f32 %v3695_v30, %v185_v41  ;;  %v4212_v29 = vld [vmem:[#allocation10 + $0x38] sm:$0xff]  ;;  %v4214_v30 = vld [vmem:[#allocation10 + $0x30] sm:$0xff] }
 0x29c   :  { %365 = vmatprep.subr.mxu1 %v4212_v29 }
 0x29d   :  { %192 = vperm.xlu0 %3687, %v188_v40   ;;  %366 = vmatpush1.msra.mxu1 %v4214_v30 }
 0x29e   :  { %367 = vmatprep.subr.mxu1 %v4220_v32 }
 0x29f   :  { %368 = vmatpush1.msra.mxu1 %v4226_v34 }
 0x2a0   :  { %369 = vmatprep.subr.mxu1 %v4230_v35 }
 0x2a1   :  { %197 = vperm.xlu0 %3687, %v189_v42   ;;  %370 = vmatpush1.msra.mxu1 %v4236_v37  ;;  %v4060_v42 = vmov 1966171168  }
 0x2a2   :  { %3525 = vmatprep.subr.mxu1 %v4057_v43 }
 0x318   :  { %v193_v49 = vpop.permute.xlu0 %192 }
 0x319   :  { %v200_v50 = vmul.f32 %v193_v49, %v4187_v48  ;;  %v514_v49 = vunpack.c.l.s4 %v4060_v42 }
 0x31b   :  { %v202_v52 = vsel %vm112_vm0, %v200_v50, 0.0  ;;  %v515_v50 = vunpack.c.0.s8 %v514_v49 }
 0x31c   :  { %v203_v53 = vrot.slane %v202_v52, 4  ;;  %v198_v54 = vpop.permute.xlu0 %197 }
 0x31d   :  { %v201_v55 = vmul.f32 %v198_v54, %v4190_v51 }
 0x31e   :  { %v204_v56 = vadd.f32 %v203_v53, %v202_v52  ;;  %v4269_v52 = vsub.s32 %v515_v50, %v4144_v11 }
 0x31f   :  { %v209_v57 = vsel %vm112_vm0, %v201_v55, 0.0 }
 0x320   :  { %v205_v58 = vrot.slane %v204_v56, 2  ;;  %v210_v59 = vrot.slane %v209_v57, 4 }
 0x322   :  { %v206_v60 = vadd.f32 %v205_v58, %v204_v56  ;;  %v211_v61 = vadd.f32 %v210_v59, %v209_v57 }
 0x324   :  { %v212_v62 = vrot.slane %v211_v61, 2  ;;  %v207_v63 = vrot.slane %v206_v60, 1 }
 0x326   :  { %v213_v3 = vadd.f32 %v212_v62, %v211_v61  ;;  %v208_v5 = vadd.f32 %v207_v63, %v206_v60 }
 0x328   :  { %v214_v4 = vrot.slane %v213_v3, 1 }
 0x32a   :  { %v215_v6 = vadd.f32 %v214_v4, %v213_v3 }
 0x32c   :  { %v223_v7 = vsel %vm131_vm1, %v215_v6, %v208_v5 }
 0x32d   :  { %3512 = vmatmul.mubr.msk.f32.vlgmr.msra.gmra.mxu0 %vm112_vm0, %v223_v7 }
 0x32e   :  { %3522 = vmatprep.mubr.msk.f32.mxu0 %vm4058_vm3, %v4057_v43  ;;  %3515 = vmatpush3.msra.mxu0 %v4208_v28 }
 0x32f   :  { %3516 = vmatprep.subr.mxu0 %v4057_v43 }
 0x330   :  { %3517 = vmatpush3.msra.mxu0 %v4216_v31 }
 0x331   :  { %3518 = vmatprep.subr.mxu0 %v4057_v43 }
 0x332   :  { %3519 = vmatpush3.msra.mxu0 %v4222_v33 }
 0x333   :  { %3520 = vmatprep.subr.mxu0 %v4057_v43 }
 0x334   :  { %3521 = vmatpush3.msra.mxu0 %v4232_v36 }
 0x335   :  { %782 = vmatprep.subr.mxu0 %v4204_v26 }
 0x3ed   :  { %v292_v9 = vpop.f32.mrf.mxu0 }
 0x3ee   :  { %v296_v10 = vadd.f32 %v292_v9, %v216_v8 }
 0x3ef   :  { %v3513_v12 = vpop.f32.mrf.mxu0 }
 0x3f0   :  { %3698 = vtanh.f32 %v296_v10  ;;  %v3388_v15 = vmul.f32 -1.442695, %v296_v10 }
 0x3f2   :  { %3700 = vpow2.f32 %v3388_v15 }
 0x3fd   :  { %v3699_v14 = vpop.eup %3698 }
 0x3fe   :  { %307 = vrot.lane.b32.xlu1 %v3699_v14, %s4059_s5 }
 0x3ff   :  { %v3701_v16 = vpop.eup %3700 }
 0x400   :  { %v301_v17 = vadd.f32 1.0, %v3701_v16 }
 0x402   :  { %3702 = vrcp.f32 %v301_v17 }
 0x40f   :  { %v3703_v18 = vpop.eup %3702 }
 0x410   :  { %v305_v23 = vmul.f32 0.0, %v3703_v18 }
 0x470   :  { %v308_v19 = vpop.permute.xlu1 %307 }
 0x471   :  { %v310_v22 = vmul.f32 %v3703_v18, %v308_v19 }
 0x473   :  { %312 = vrot.lane.b32.xlu0 %v310_v22, %s4050_s15 }
 0x4e5   :  { %v313_v24 = vpop.permute.xlu0 %312 }
 0x4e6   :  { %v4201_v25 = vadd.f32 %v313_v24, %v305_v23 }
 0x4e8   :  { %3704 = vtanh.f32 %v4201_v25 }
 0x4f5   :  { %v3705_v38 = vpop.eup %3704 }
 0x4f6   :  { %318 = vrot.lane.b32.xlu0 %v3705_v38, %s4059_s5 }
 0x568   :  { %v319_v39 = vpop.permute.xlu0 %318 }
 0x569   :  { %v321_v40 = vmul.f32 %v3703_v18, %v319_v39 }
 0x56b   :  { %335 = vrot.lane.b32.xlu0 %v321_v40, %s4050_s15 }
 0x5dd   :  { %v336_v41 = vpop.permute.xlu0 %335 }
 0x5de   :  { %3389 = vmatmul.mubr.msk.f32.vlgmr.msra.gmra.mxu1 %vm112_vm0, %v336_v41  ;;  %3523 = vmatmul.mubr.msk.f32.vlgmr.msra.gmra.mxu0 %vm112_vm0, %v336_v41 }
 0x5df   :  { %3526 = vmatpush3.msra.mxu1 %v4168_v44  ;;  %3533 = vmatprep.mubr.msk.f32.mxu1 %vm4058_vm3, %v4057_v43 }
 0x5e0   :  { %3527 = vmatprep.subr.mxu1 %v4057_v43  ;;  %783 = vmatpush1.msra.mxu0 %v4206_v27 }
 0x5e1   :  { %3528 = vmatpush3.msra.mxu1 %v4173_v45  ;;  %784 = vmatprep.subr.mxu0 %v4212_v29 }
 0x5e2   :  { %3529 = vmatprep.subr.mxu1 %v4057_v43  ;;  %785 = vmatpush1.msra.mxu0 %v4214_v30 }
 0x5e3   :  { %3530 = vmatpush3.msra.mxu1 %v4176_v46  ;;  %786 = vmatprep.subr.mxu0 %v4220_v32 }
 0x5e4   :  { %3531 = vmatprep.subr.mxu1 %v4057_v43  ;;  %787 = vmatpush1.msra.mxu0 %v4226_v34 }
 0x5e5   :  { %3532 = vmatpush3.msra.mxu1 %v4179_v47  ;;  %788 = vmatprep.subr.mxu0 %v4230_v35 }
 0x5e6   :  { %3536 = vmatprep.subr.mxu1 %v4057_v43  ;;  %789 = vmatpush1.msra.mxu0 %v4236_v37 }
 0x5e7   :  { %822 = vmatprep.mubr.f32.mxu0 %v4057_v43  ;;  %3547 = vmatprep.subr.mxu0 %v4057_v43 }
 0x69e   :  { %v476_v53 = vpop.f32.mrf.mxu0 }
 0x69f   :  { %v519_v54 = vrot.slane %v476_v53, %v4269_v52 }
 0x6a0   :  { %v3524_v55 = vpop.f32.mrf.mxu0 }
 0x6a1   :  { %v520_v56 = vcombine.high %v519_v54, %v519_v54  ;;  %v527_v57 = vrot.slane %v519_v54, %v4269_v52 }
 0x6a3   :  { %v534_v58 = vrot.slane %v520_v56, %v4269_v52  ;;  %v538_v59 = vrot.slane %v527_v57, %v4154_v20 }
 0x6a5   :  { %v542_v60 = vrot.slane %v534_v58, %v4154_v20  ;;  %v545_v61 = vadd.f32 %v538_v59, %v4129_v0 }
 0x6a7   :  { %v546_v62 = vadd.f32 %v542_v60, %v4131_v1  ;;  %3706 = vtanh.f32 %v545_v61 }
 0x6a9   :  { %3708 = vtanh.f32 %v546_v62 }
 0x6b4   :  { %v3707_v11 = vpop.eup %3706 }
 0x6b5   :  { %v549_v63 = vmul.f32 %v3707_v11, %v4138_v2 }
 0x6b6   :  { %v3709_v3 = vpop.eup %3708 }
 0x6b7   :  { %v551_v4 = vsel %vm112_vm0, %v549_v63, 0.0  ;;  %v550_v5 = vmul.f32 %v3709_v3, %v4138_v2 }
 0x6b8   :  { %552 = vadd.xlane.f32.xlu0 %v551_v4 }
 0x6b9   :  { %v554_v6 = vsel %vm112_vm0, %v550_v5, 0.0 }
 0x6ba   :  { %555 = vadd.xlane.f32.xlu1 %v554_v6 }
 0x741   :  { %v553_v7 = vpop.xlane.xlu0 %552 }
 0x742   :  { %v562_v9 = vrot.slane %v553_v7, %v4147_v13 }
 0x743   :  { %v556_v8 = vpop.xlane.xlu1 %555 }
 0x744   :  { %v566_v10 = vrot.slane %v556_v8, %v4147_v13 }
 0x746   :  { %v567_v12 = vsel %vm131_vm1, %v566_v10, %v562_v9 }
 0x747   :  { %v569_v14 = vsel %vm134_vm2, %v567_v12, -inf }
 0x748   :  { %570 = vmax.xlane.f32.xlu0 %v569_v14 }
 0x7d1   :  { %v571_v15 = vpop.xlane.xlu0 %570 }
 0x7d2   :  { %v576_v16 = vrot.slane %v571_v15, %v4154_v20  ;;  %v580_v17 = vrot.slane %v571_v15, %v4157_v21 }
 0x7d4   :  { %v583_v18 = vsub.f32 %v553_v7, %v576_v16  ;;  %v584_v19 = vsub.f32 %v556_v8, %v580_v17 }
 0x7d6   :  { %v585_v22 = vmul.f32 1.442695, %v583_v18  ;;  %v587_v23 = vmul.f32 1.442695, %v584_v19  ;;  %v405_v18 = vpop.f32.mrf.mxu1 }
 0x7d8   :  { %3710 = vpow2.f32 %v585_v22  ;;  %v4310_v19 = vpop.f32.mrf.mxu1  ;;  %v651_v22 = vld [vmem:[#allocation2 + $0x2] sm:$0x3] }
 0x7d9   :  { %3712 = vpow2.f32 %v587_v23 }
 0x7e5   :  { %v3711_v24 = vpop.eup %3710 }
 0x7e6   :  { %v3713_v38 = vpop.eup %3712  ;;  %592 = vperm.xlu0 %3687, %v3711_v24  }
 0x7e7   :  { %595 = vperm.xlu1 %3686, %v3713_v38  }
 0x861   :  { %v593_v39 = vpop.permute.xlu0 %592 }
 0x862   :  { %v596_v40 = vpop.permute.xlu1 %595  ;;  %v600_v41 = vrot.slane %v593_v39, %v4147_v13 }
 0x863   :  { %v604_v42 = vrot.slane %v596_v40, %v4147_v13 }
 0x865   :  { %v605_v49 = vsel %vm131_vm1, %v604_v42, %v600_v41 }
 0x866   :  { %v607_v50 = vsel %vm134_vm2, %v605_v49, 0.0 }
 0x867   :  { %608 = vadd.xlane.f32.xlu1 %v607_v50 }
 0x8f0   :  { %v609_v53 = vpop.xlane.xlu1 %608 }
 0x8f1   :  { %3714 = vrcp.f32 %v609_v53 }
 0x8fe   :  { %v3715_v54 = vpop.eup %3714 }
 0x8ff   :  { %v615_v55 = vrot.slane %v3715_v54, %v4154_v20  ;;  %v619_v57 = vrot.slane %v3715_v54, %v4157_v21 }
 0x901   :  { %v622_v56 = vmul.f32 %v3711_v24, %v615_v55  ;;  %v623_v58 = vmul.f32 %v3713_v38, %v619_v57 }
 0x903   :  { %626 = vperm.xlu0 %3687, %v622_v56  }
 0x907   :  { %631 = vperm.xlu0 %3687, %v623_v58  }
 0x97e   :  { %v627_v59 = vpop.permute.xlu0 %626 }
 0x97f   :  { %v634_v60 = vmul.f32 %v627_v59, %v4187_v48 }
 0x981   :  { %v636_v61 = vsel %vm112_vm0, %v634_v60, 0.0 }
 0x982   :  { %v637_v62 = vrot.slane %v636_v61, 4  ;;  %v632_v11 = vpop.permute.xlu0 %631 }
 0x983   :  { %v635_v63 = vmul.f32 %v632_v11, %v4190_v51 }
 0x984   :  { %v638_v3 = vadd.f32 %v637_v62, %v636_v61 }
 0x985   :  { %v643_v4 = vsel %vm112_vm0, %v635_v63, 0.0 }
 0x986   :  { %v639_v5 = vrot.slane %v638_v3, 2  ;;  %v644_v6 = vrot.slane %v643_v4, 4 }
 0x988   :  { %v640_v7 = vadd.f32 %v639_v5, %v638_v3  ;;  %v645_v8 = vadd.f32 %v644_v6, %v643_v4 }
 0x98a   :  { %v646_v9 = vrot.slane %v645_v8, 2  ;;  %v641_v10 = vrot.slane %v640_v7, 1 }
 0x98c   :  { %v647_v12 = vadd.f32 %v646_v9, %v645_v8  ;;  %v642_v15 = vadd.f32 %v641_v10, %v640_v7 }
 0x98e   :  { %v648_v14 = vrot.slane %v647_v12, 1 }
 0x990   :  { %v649_v16 = vadd.f32 %v648_v14, %v647_v12 }
 0x992   :  { %v654_v17 = vsel %vm131_vm1, %v649_v16, %v642_v15 }
 0x993   :  { %3534 = vmatmul.mubr.msk.f32.vlgmr.msra.gmra.mxu1 %vm112_vm0, %v654_v17 }
 0x994   :  { %3537 = vmatpush3.msra.mxu1 %v4208_v28  ;;  %3544 = vmatprep.mubr.msk.f32.mxu1 %vm4058_vm3, %v4057_v43 }
 0x995   :  { %3538 = vmatprep.subr.mxu1 %v4057_v43 }
 0x996   :  { %3539 = vmatpush3.msra.mxu1 %v4216_v31 }
 0x997   :  { %3540 = vmatprep.subr.mxu1 %v4057_v43 }
 0x998   :  { %3541 = vmatpush3.msra.mxu1 %v4222_v33 }
 0x999   :  { %3542 = vmatprep.subr.mxu1 %v4057_v43 }
 0x99a   :  { %3543 = vmatpush3.msra.mxu1 %v4232_v36 }
 0x99b   :  { %1194 = vmatprep.subr.mxu1 %v4204_v26 }
 0xa53   :  { %v723_v23 = vpop.f32.mrf.mxu1 }
 0xa54   :  { %v727_v24 = vadd.f32 %v723_v23, %v651_v22 }
 0xa55   :  { %v3535_v38 = vpop.f32.mrf.mxu1 }
 0xa56   :  { %v728_v39 = vadd.f32 %v727_v24, %v405_v18 }
 0xa58   :  { %3716 = vtanh.f32 %v728_v39  ;;  %v3394_v41 = vmul.f32 -1.442695, %v728_v39 }
 0xa5a   :  { %3718 = vpow2.f32 %v3394_v41 }
 0xa65   :  { %v3717_v40 = vpop.eup %3716 }
 0xa66   :  { %738 = vrot.lane.b32.xlu0 %v3717_v40, %s4059_s5 }
 0xa67   :  { %v3719_v42 = vpop.eup %3718 }
 0xa68   :  { %v732_v49 = vadd.f32 1.0, %v3719_v42 }
 0xa6a   :  { %3720 = vrcp.f32 %v732_v49 }
 0xa77   :  { %v3721_v50 = vpop.eup %3720 }
 0xa78   :  { %v736_v55 = vmul.f32 %v3721_v50, %v4201_v25 }
 0xad8   :  { %v739_v53 = vpop.permute.xlu0 %738 }
 0xad9   :  { %v741_v54 = vmul.f32 %v3721_v50, %v739_v53 }
 0xadb   :  { %743 = vrot.lane.b32.xlu0 %v741_v54, %s4050_s15 }
 0xb4d   :  { %v744_v56 = vpop.permute.xlu0 %743 }
 0xb4e   :  { %v4315_v57 = vadd.f32 %v744_v56, %v736_v55 }
 0xb50   :  { %3722 = vtanh.f32 %v4315_v57 }
 0xb5d   :  { %v3723_v58 = vpop.eup %3722 }
 0xb5e   :  { %749 = vrot.lane.b32.xlu0 %v3723_v58, %s4059_s5 }
 0xbd0   :  { %v750_v59 = vpop.permute.xlu0 %749 }
 0xbd1   :  { %v752_v60 = vmul.f32 %v3721_v50, %v750_v59 }
 0xbd3   :  { %754 = vrot.lane.b32.xlu0 %v752_v60, %s4050_s15 }
 0xc45   :  { %v755_v61 = vpop.permute.xlu0 %754 }
 0xc46   :  { %3395 = vmatmul.mubr.msk.f32.vlgmr.msra.gmra.mxu0 %vm112_vm0, %v755_v61  ;;  %3545 = vmatmul.mubr.msk.f32.vlgmr.msra.gmra.mxu1 %vm112_vm0, %v755_v61 }
 0xc47   :  { %3548 = vmatpush3.msra.mxu0 %v4168_v44  ;;  %3555 = vmatprep.mubr.msk.f32.mxu0 %vm4058_vm3, %v4057_v43 }
 0xc48   :  { %3549 = vmatprep.subr.mxu0 %v4057_v43  ;;  %1195 = vmatpush1.msra.mxu1 %v4206_v27 }
 0xc49   :  { %3550 = vmatpush3.msra.mxu0 %v4173_v45  ;;  %1196 = vmatprep.subr.mxu1 %v4212_v29 }
 0xc4a   :  { %3551 = vmatprep.subr.mxu0 %v4057_v43  ;;  %1197 = vmatpush1.msra.mxu1 %v4214_v30 }
 0xc4b   :  { %3552 = vmatpush3.msra.mxu0 %v4176_v46  ;;  %1198 = vmatprep.subr.mxu1 %v4220_v32 }
 0xc4c   :  { %3553 = vmatprep.subr.mxu0 %v4057_v43  ;;  %1199 = vmatpush1.msra.mxu1 %v4226_v34 }
 0xc4d   :  { %3554 = vmatpush3.msra.mxu0 %v4179_v47  ;;  %1200 = vmatprep.subr.mxu1 %v4230_v35 }
 0xc4e   :  { %3558 = vmatprep.subr.mxu0 %v4057_v43  ;;  %1201 = vmatpush1.msra.mxu1 %v4236_v37 }
 0xc4f   :  { %1234 = vmatprep.mubr.f32.mxu1 %v4057_v43  ;;  %3569 = vmatprep.subr.mxu1 %v4057_v43 }
 0xd06   :  { %v895_v62 = vpop.f32.mrf.mxu1 }
 0xd07   :  { %v931_v11 = vrot.slane %v895_v62, %v4269_v52 }
 0xd08   :  { %v3546_v63 = vpop.f32.mrf.mxu1 }
 0xd09   :  { %v932_v3 = vcombine.high %v931_v11, %v931_v11  ;;  %v939_v4 = vrot.slane %v931_v11, %v4269_v52 }
 0xd0b   :  { %v946_v5 = vrot.slane %v932_v3, %v4269_v52  ;;  %v950_v6 = vrot.slane %v939_v4, %v4154_v20 }
 0xd0d   :  { %v954_v7 = vrot.slane %v946_v5, %v4154_v20  ;;  %v957_v8 = vadd.f32 %v950_v6, %v4129_v0 }
 0xd0f   :  { %v958_v9 = vadd.f32 %v954_v7, %v4131_v1  ;;  %3724 = vtanh.f32 %v957_v8 }
 0xd11   :  { %3726 = vtanh.f32 %v958_v9 }
 0xd1c   :  { %v3725_v10 = vpop.eup %3724 }
 0xd1d   :  { %v961_v12 = vmul.f32 %v3725_v10, %v4138_v2 }
 0xd1e   :  { %v3727_v14 = vpop.eup %3726 }
 0xd1f   :  { %v963_v15 = vsel %vm112_vm0, %v961_v12, 0.0  ;;  %v962_v16 = vmul.f32 %v3727_v14, %v4138_v2 }
 0xd20   :  { %964 = vadd.xlane.f32.xlu0 %v963_v15 }
 0xd21   :  { %v966_v17 = vsel %vm112_vm0, %v962_v16, 0.0 }
 0xd22   :  { %967 = vadd.xlane.f32.xlu1 %v966_v17 }
 0xda9   :  { %v965_v18 = vpop.xlane.xlu0 %964 }
 0xdaa   :  { %v974_v23 = vrot.slane %v965_v18, %v4147_v13 }
 0xdab   :  { %v968_v22 = vpop.xlane.xlu1 %967 }
 0xdac   :  { %v978_v24 = vrot.slane %v968_v22, %v4147_v13 }
 0xdae   :  { %v979_v38 = vsel %vm131_vm1, %v978_v24, %v974_v23 }
 0xdaf   :  { %v981_v39 = vsel %vm134_vm2, %v979_v38, -inf }
 0xdb0   :  { %982 = vmax.xlane.f32.xlu1 %v981_v39 }
 0xe39   :  { %v983_v40 = vpop.xlane.xlu1 %982 }
 0xe3a   :  { %v988_v41 = vrot.slane %v983_v40, %v4154_v20  ;;  %v992_v42 = vrot.slane %v983_v40, %v4157_v21 }
 0xe3c   :  { %v995_v49 = vsub.f32 %v965_v18, %v988_v41  ;;  %v996_v50 = vsub.f32 %v968_v22, %v992_v42 }
 0xe3e   :  { %v997_v53 = vmul.f32 1.442695, %v995_v49  ;;  %v999_v54 = vmul.f32 1.442695, %v996_v50 }
 0xe40   :  { %3728 = vpow2.f32 %v997_v53  ;;  %v824_v53 = vpop.f32.mrf.mxu0 }
 0xe41   :  { %3730 = vpow2.f32 %v999_v54 }
 0xe42   :  { %v4380_v54 = vpop.f32.mrf.mxu0 }
 0xe4d   :  { %v3729_v55 = vpop.eup %3728 }
 0xe4e   :  { %v3731_v56 = vpop.eup %3730  ;;  %1004 = vperm.xlu1 %3686, %v3729_v55  }
 0xe4f   :  { %1007 = vperm.xlu0 %3687, %v3731_v56  }
 0xec9   :  { %v1005_v58 = vpop.permute.xlu1 %1004 }
 0xeca   :  { %v1008_v59 = vpop.permute.xlu0 %1007  ;;  %v1012_v60 = vrot.slane %v1005_v58, %v4147_v13 }
 0xecb   :  { %v1016_v61 = vrot.slane %v1008_v59, %v4147_v13 }
 0xecd   :  { %v1017_v62 = vsel %vm131_vm1, %v1016_v61, %v1012_v60 }
 0xece   :  { %v1019_v11 = vsel %vm134_vm2, %v1017_v62, 0.0 }
 0xecf   :  { %1020 = vadd.xlane.f32.xlu1 %v1019_v11 }
 0xf58   :  { %v1021_v63 = vpop.xlane.xlu1 %1020 }
 0xf59   :  { %3732 = vrcp.f32 %v1021_v63 }
 0xf66   :  { %v3733_v3 = vpop.eup %3732 }
 0xf67   :  { %v1027_v4 = vrot.slane %v3733_v3, %v4154_v20  ;;  %v1031_v6 = vrot.slane %v3733_v3, %v4157_v21 }
 0xf69   :  { %v1034_v5 = vmul.f32 %v3729_v55, %v1027_v4  ;;  %v1035_v7 = vmul.f32 %v3731_v56, %v1031_v6  ;;  %v1063_v55 = vld [vmem:[#allocation2 + $0x4] sm:$0x3] }
 0xf6b   :  { %1038 = vperm.xlu0 %3687, %v1034_v5  }
 0xf6f   :  { %1043 = vperm.xlu0 %3687, %v1035_v7  }
 0xfe6   :  { %v1039_v8 = vpop.permute.xlu0 %1038 }
 0xfe7   :  { %v1046_v9 = vmul.f32 %v1039_v8, %v4187_v48 }
 0xfe9   :  { %v1048_v10 = vsel %vm112_vm0, %v1046_v9, 0.0 }
 0xfea   :  { %v1049_v12 = vrot.slane %v1048_v10, 4  ;;  %v1044_v14 = vpop.permute.xlu0 %1043 }
 0xfeb   :  { %v1047_v15 = vmul.f32 %v1044_v14, %v4190_v51 }
 0xfec   :  { %v1050_v16 = vadd.f32 %v1049_v12, %v1048_v10 }
 0xfed   :  { %v1055_v17 = vsel %vm112_vm0, %v1047_v15, 0.0 }
 0xfee   :  { %v1051_v18 = vrot.slane %v1050_v16, 2  ;;  %v1056_v22 = vrot.slane %v1055_v17, 4 }
 0xff0   :  { %v1052_v23 = vadd.f32 %v1051_v18, %v1050_v16  ;;  %v1057_v24 = vadd.f32 %v1056_v22, %v1055_v17 }
 0xff2   :  { %v1058_v38 = vrot.slane %v1057_v24, 2  ;;  %v1053_v39 = vrot.slane %v1052_v23, 1 }
 0xff4   :  { %v1059_v40 = vadd.f32 %v1058_v38, %v1057_v24  ;;  %v1054_v42 = vadd.f32 %v1053_v39, %v1052_v23 }
 0xff6   :  { %v1060_v41 = vrot.slane %v1059_v40, 1 }
 0xff8   :  { %v1061_v49 = vadd.f32 %v1060_v41, %v1059_v40 }
 0xffa   :  { %v1066_v50 = vsel %vm131_vm1, %v1061_v49, %v1054_v42 }
 0xffb   :  { %3556 = vmatmul.mubr.msk.f32.vlgmr.msra.gmra.mxu0 %vm112_vm0, %v1066_v50 }
 0xffc   :  { %3559 = vmatpush3.msra.mxu0 %v4208_v28  ;;  %3566 = vmatprep.mubr.msk.f32.mxu0 %vm4058_vm3, %v4057_v43 }
 0xffd   :  { %3560 = vmatprep.subr.mxu0 %v4057_v43 }
 0xffe   :  { %3561 = vmatpush3.msra.mxu0 %v4216_v31 }
 0xfff   :  { %3562 = vmatprep.subr.mxu0 %v4057_v43 }
0x1000   :  { %3563 = vmatpush3.msra.mxu0 %v4222_v33 }
0x1001   :  { %3564 = vmatprep.subr.mxu0 %v4057_v43 }
0x1002   :  { %3565 = vmatpush3.msra.mxu0 %v4232_v36 }
0x1003   :  { %1606 = vmatprep.subr.mxu0 %v4204_v26 }
0x10bb   :  { %v1135_v56 = vpop.f32.mrf.mxu0 }
0x10bc   :  { %v1139_v58 = vadd.f32 %v1135_v56, %v1063_v55 }
0x10bd   :  { %v3557_v59 = vpop.f32.mrf.mxu0 }
0x10be   :  { %v1140_v60 = vadd.f32 %v1139_v58, %v824_v53 }
0x10c0   :  { %3734 = vtanh.f32 %v1140_v60  ;;  %v3399_v62 = vmul.f32 -1.442695, %v1140_v60 }
0x10c2   :  { %3736 = vpow2.f32 %v3399_v62 }
0x10cd   :  { %v3735_v61 = vpop.eup %3734 }
0x10ce   :  { %1150 = vrot.lane.b32.xlu0 %v3735_v61, %s4059_s5 }
0x10cf   :  { %v3737_v11 = vpop.eup %3736 }
0x10d0   :  { %v1144_v63 = vadd.f32 1.0, %v3737_v11 }
0x10d2   :  { %3738 = vrcp.f32 %v1144_v63 }
0x10df   :  { %v3739_v3 = vpop.eup %3738 }
0x10e0   :  { %v1148_v6 = vmul.f32 %v3739_v3, %v4315_v57 }
0x1140   :  { %v1151_v4 = vpop.permute.xlu0 %1150 }
0x1141   :  { %v1153_v5 = vmul.f32 %v3739_v3, %v1151_v4 }
0x1143   :  { %1155 = vrot.lane.b32.xlu0 %v1153_v5, %s4050_s15 }
0x11b5   :  { %v1156_v7 = vpop.permute.xlu0 %1155 }
0x11b6   :  { %v4385_v8 = vadd.f32 %v1156_v7, %v1148_v6 }
0x11b8   :  { %3740 = vtanh.f32 %v4385_v8 }
0x11c5   :  { %v3741_v9 = vpop.eup %3740 }
0x11c6   :  { %1161 = vrot.lane.b32.xlu0 %v3741_v9, %s4059_s5 }
0x1238   :  { %v1162_v10 = vpop.permute.xlu0 %1161 }
0x1239   :  { %v1164_v12 = vmul.f32 %v3739_v3, %v1162_v10 }
0x123b   :  { %1166 = vrot.lane.b32.xlu1 %v1164_v12, %s4050_s15 }
0x12ad   :  { %v1167_v14 = vpop.permute.xlu1 %1166 }
0x12ae   :  { %3400 = vmatmul.mubr.msk.f32.vlgmr.msra.gmra.mxu1 %vm112_vm0, %v1167_v14  ;;  %3567 = vmatmul.mubr.msk.f32.vlgmr.msra.gmra.mxu0 %vm112_vm0, %v1167_v14 }
0x12af   :  { %3570 = vmatpush3.msra.mxu1 %v4168_v44  ;;  %3577 = vmatprep.mubr.msk.f32.mxu1 %vm4058_vm3, %v4057_v43 }
0x12b0   :  { %3571 = vmatprep.subr.mxu1 %v4057_v43  ;;  %1607 = vmatpush1.msra.mxu0 %v4206_v27 }
0x12b1   :  { %3572 = vmatpush3.msra.mxu1 %v4173_v45  ;;  %1608 = vmatprep.subr.mxu0 %v4212_v29 }
0x12b2   :  { %3573 = vmatprep.subr.mxu1 %v4057_v43  ;;  %1609 = vmatpush1.msra.mxu0 %v4214_v30 }
0x12b3   :  { %3574 = vmatpush3.msra.mxu1 %v4176_v46  ;;  %1610 = vmatprep.subr.mxu0 %v4220_v32 }
0x12b4   :  { %3575 = vmatprep.subr.mxu1 %v4057_v43  ;;  %1611 = vmatpush1.msra.mxu0 %v4226_v34 }
0x12b5   :  { %3576 = vmatpush3.msra.mxu1 %v4179_v47  ;;  %1612 = vmatprep.subr.mxu0 %v4230_v35 }
0x12b6   :  { %3580 = vmatprep.subr.mxu1 %v4057_v43  ;;  %1613 = vmatpush1.msra.mxu0 %v4236_v37 }
0x12b7   :  { %1646 = vmatprep.mubr.f32.mxu0 %v4057_v43  ;;  %3591 = vmatprep.subr.mxu0 %v4057_v43 }
0x136e   :  { %v1307_v15 = vpop.f32.mrf.mxu0 }
0x136f   :  { %v1343_v16 = vrot.slane %v1307_v15, %v4269_v52 }
0x1370   :  { %v3568_v17 = vpop.f32.mrf.mxu0 }
0x1371   :  { %v1344_v18 = vcombine.high %v1343_v16, %v1343_v16  ;;  %v1351_v22 = vrot.slane %v1343_v16, %v4269_v52 }
0x1373   :  { %v1358_v23 = vrot.slane %v1344_v18, %v4269_v52  ;;  %v1362_v24 = vrot.slane %v1351_v22, %v4154_v20 }
0x1375   :  { %v1366_v38 = vrot.slane %v1358_v23, %v4154_v20  ;;  %v1369_v39 = vadd.f32 %v1362_v24, %v4129_v0 }
0x1377   :  { %v1370_v40 = vadd.f32 %v1366_v38, %v4131_v1  ;;  %3742 = vtanh.f32 %v1369_v39 }
0x1379   :  { %3744 = vtanh.f32 %v1370_v40 }
0x1384   :  { %v3743_v41 = vpop.eup %3742 }
0x1385   :  { %v1373_v42 = vmul.f32 %v3743_v41, %v4138_v2 }
0x1386   :  { %v3745_v49 = vpop.eup %3744 }
0x1387   :  { %v1375_v50 = vsel %vm112_vm0, %v1373_v42, 0.0  ;;  %v1374_v53 = vmul.f32 %v3745_v49, %v4138_v2 }
0x1388   :  { %1376 = vadd.xlane.f32.xlu0 %v1375_v50 }
0x1389   :  { %v1378_v55 = vsel %vm112_vm0, %v1374_v53, 0.0 }
0x138a   :  { %1379 = vadd.xlane.f32.xlu1 %v1378_v55 }
0x1411   :  { %v1377_v56 = vpop.xlane.xlu0 %1376 }
0x1412   :  { %v1386_v0 = vrot.slane %v1377_v56, %v4147_v13 }
0x1413   :  { %v1380_v58 = vpop.xlane.xlu1 %1379 }
0x1414   :  { %v1390_v1 = vrot.slane %v1380_v58, %v4147_v13 }
0x1416   :  { %v1391_v59 = vsel %vm131_vm1, %v1390_v1, %v1386_v0 }
0x1417   :  { %v1393_v60 = vsel %vm134_vm2, %v1391_v59, -inf }
0x1418   :  { %1394 = vmax.xlane.f32.xlu0 %v1393_v60 }
0x14a1   :  { %v1395_v61 = vpop.xlane.xlu0 %1394 }
0x14a2   :  { %v1400_v62 = vrot.slane %v1395_v61, %v4154_v20  ;;  %v1404_v2 = vrot.slane %v1395_v61, %v4157_v21 }
0x14a4   :  { %v1407_v11 = vsub.f32 %v1377_v56, %v1400_v62  ;;  %v1408_v63 = vsub.f32 %v1380_v58, %v1404_v2 }
0x14a6   :  { %v1409_v3 = vmul.f32 1.442695, %v1407_v11  ;;  %v1411_v4 = vmul.f32 1.442695, %v1408_v63 }
0x14a8   :  { %3746 = vpow2.f32 %v1409_v3 }
0x14a9   :  { %3748 = vpow2.f32 %v1411_v4 }
0x14b5   :  { %v3747_v5 = vpop.eup %3746 }
0x14b6   :  { %v3749_v6 = vpop.eup %3748  ;;  %1416 = vperm.xlu0 %3687, %v3747_v5  }
0x14b7   :  { %1419 = vperm.xlu1 %3686, %v3749_v6  }
0x1531   :  { %v1417_v7 = vpop.permute.xlu0 %1416 }
0x1532   :  { %v1420_v9 = vpop.permute.xlu1 %1419  ;;  %v1424_v10 = vrot.slane %v1417_v7, %v4147_v13 }
0x1533   :  { %v1428_v12 = vrot.slane %v1420_v9, %v4147_v13 }
0x1535   :  { %v1429_v14 = vsel %vm131_vm1, %v1428_v12, %v1424_v10 }
0x1536   :  { %v1431_v15 = vsel %vm134_vm2, %v1429_v14, 0.0 }
0x1537   :  { %1432 = vadd.xlane.f32.xlu0 %v1431_v15 }
0x15c0   :  { %v1433_v16 = vpop.xlane.xlu0 %1432 }
0x15c1   :  { %3750 = vrcp.f32 %v1433_v16 }
0x15ce   :  { %v3751_v17 = vpop.eup %3750 }
0x15cf   :  { %v1439_v18 = vrot.slane %v3751_v17, %v4154_v20  ;;  %v1443_v23 = vrot.slane %v3751_v17, %v4157_v21 }
0x15d1   :  { %v1446_v22 = vmul.f32 %v3747_v5, %v1439_v18  ;;  %v1447_v24 = vmul.f32 %v3749_v6, %v1443_v23 }
0x15d3   :  { %1450 = vperm.xlu1 %3686, %v1446_v22  }
0x15d7   :  { %1455 = vperm.xlu1 %3686, %v1447_v24   ;;  %v4495_v24 = vld [vmem:[%s4856_s3] ss:$0 sm:$0xff] }
0x164e   :  { %v1451_v38 = vpop.permute.xlu1 %1450 }
0x164f   :  { %v1458_v39 = vmul.f32 %v1451_v38, %v4187_v48 }
0x1651   :  { %v1460_v40 = vsel %vm112_vm0, %v1458_v39, 0.0 }
0x1652   :  { %v1461_v41 = vrot.slane %v1460_v40, 4  ;;  %v1456_v42 = vpop.permute.xlu1 %1455 }
0x1653   :  { %v1459_v49 = vmul.f32 %v1456_v42, %v4190_v51  ;;  %v1236_v51 = vpop.f32.mrf.mxu1 }
0x1654   :  { %v1462_v50 = vadd.f32 %v1461_v41, %v1460_v40 }
0x1655   :  { %v1467_v53 = vsel %vm112_vm0, %v1459_v49, 0.0  ;;  %v4450_v11 = vpop.f32.mrf.mxu1 }
0x1656   :  { %v1463_v55 = vrot.slane %v1462_v50, 2  ;;  %v1468_v56 = vrot.slane %v1467_v53, 4 }
0x1658   :  { %v1464_v58 = vadd.f32 %v1463_v55, %v1462_v50  ;;  %v1469_v0 = vadd.f32 %v1468_v56, %v1467_v53 }
0x165a   :  { %v1470_v1 = vrot.slane %v1469_v0, 2  ;;  %v1465_v59 = vrot.slane %v1464_v58, 1 }
0x165c   :  { %v1471_v60 = vadd.f32 %v1470_v1, %v1469_v0  ;;  %v1466_v62 = vadd.f32 %v1465_v59, %v1464_v58 }
0x165e   :  { %v1472_v61 = vrot.slane %v1471_v60, 1 }
0x1660   :  { %v1473_v2 = vadd.f32 %v1472_v61, %v1471_v60 }
0x1662   :  { %v1478_v48 = vsel %vm131_vm1, %v1473_v2, %v1466_v62 }
0x1663   :  { %3578 = vmatmul.mubr.msk.f32.vlgmr.msra.gmra.mxu1 %vm112_vm0, %v1478_v48 }
0x1664   :  { %3581 = vmatpush3.msra.mxu1 %v4208_v28  ;;  %3588 = vmatprep.mubr.msk.f32.mxu1 %vm4058_vm3, %v4057_v43  ;;  %v1475_v28 = vld [vmem:[#allocation2 + $0x6] sm:$0x3] }
0x1665   :  { %3582 = vmatprep.subr.mxu1 %v4057_v43 }
0x1666   :  { %3583 = vmatpush3.msra.mxu1 %v4216_v31 }
0x1667   :  { %3584 = vmatprep.subr.mxu1 %v4057_v43 }
0x1668   :  { %3585 = vmatpush3.msra.mxu1 %v4222_v33 }
0x1669   :  { %3586 = vmatprep.subr.mxu1 %v4057_v43 }
0x166a   :  { %3587 = vmatpush3.msra.mxu1 %v4232_v36 }
0x166b   :  { %2018 = vmatprep.subr.mxu1 %v4204_v26 }
0x1723   :  { %v1547_v63 = vpop.f32.mrf.mxu1 }
0x1724   :  { %v1551_v3 = vadd.f32 %v1547_v63, %v1475_v28 }
0x1725   :  { %v3579_v4 = vpop.f32.mrf.mxu1 }
0x1726   :  { %v1552_v5 = vadd.f32 %v1551_v3, %v1236_v51 }
0x1728   :  { %3752 = vtanh.f32 %v1552_v5  ;;  %v3404_v6 = vmul.f32 -1.442695, %v1552_v5 }
0x172a   :  { %3754 = vpow2.f32 %v3404_v6 }
0x1735   :  { %v3753_v31 = vpop.eup %3752 }
0x1736   :  { %1562 = vrot.lane.b32.xlu1 %v3753_v31, %s4059_s5 }
0x1737   :  { %v3755_v33 = vpop.eup %3754 }
0x1738   :  { %v1556_v7 = vadd.f32 1.0, %v3755_v33 }
0x173a   :  { %3756 = vrcp.f32 %v1556_v7 }
0x1747   :  { %v3757_v36 = vpop.eup %3756 }
0x1748   :  { %v1560_v10 = vmul.f32 %v3757_v36, %v4385_v8 }
0x17a8   :  { %v1563_v9 = vpop.permute.xlu1 %1562 }
0x17a9   :  { %v1565_v26 = vmul.f32 %v3757_v36, %v1563_v9 }
0x17ab   :  { %1567 = vrot.lane.b32.xlu1 %v1565_v26, %s4050_s15 }
0x181d   :  { %v1568_v12 = vpop.permute.xlu1 %1567 }
0x181e   :  { %v4455_v14 = vadd.f32 %v1568_v12, %v1560_v10  ;;  %v4513_v12 = vld [vmem:[#allocation7] sm:$0xff] }
0x1820   :  { %3758 = vtanh.f32 %v4455_v14 }
0x182d   :  { %v3759_v15 = vpop.eup %3758 }
0x182e   :  { %1573 = vrot.lane.b32.xlu1 %v3759_v15, %s4059_s5 }
0x18a0   :  { %v1574_v16 = vpop.permute.xlu1 %1573 }
0x18a1   :  { %v1576_v17 = vmul.f32 %v3757_v36, %v1574_v16 }
0x18a3   :  { %1578 = vrot.lane.b32.xlu0 %v1576_v17, %s4050_s15 }
0x1915   :  { %v1579_v18 = vpop.permute.xlu0 %1578 }
0x1916   :  { %3405 = vmatmul.mubr.msk.f32.vlgmr.msra.gmra.mxu0 %vm112_vm0, %v1579_v18  ;;  %3589 = vmatmul.mubr.msk.f32.vlgmr.msra.gmra.mxu1 %vm112_vm0, %v1579_v18 }
0x1917   :  { %3592 = vmatpush3.msra.mxu0 %v4168_v44  ;;  %3599 = vmatprep.mubr.msk.f32.mxu0 %vm4058_vm3, %v4057_v43 }
0x1918   :  { %3593 = vmatprep.subr.mxu0 %v4057_v43  ;;  %2019 = vmatpush1.msra.mxu1 %v4206_v27 }
0x1919   :  { %3594 = vmatpush3.msra.mxu0 %v4173_v45  ;;  %2020 = vmatprep.subr.mxu1 %v4212_v29 }
0x191a   :  { %3595 = vmatprep.subr.mxu0 %v4057_v43  ;;  %2021 = vmatpush1.msra.mxu1 %v4214_v30 }
0x191b   :  { %3596 = vmatpush3.msra.mxu0 %v4176_v46  ;;  %2022 = vmatprep.subr.mxu1 %v4220_v32 }
0x191c   :  { %3597 = vmatprep.subr.mxu0 %v4057_v43  ;;  %2023 = vmatpush1.msra.mxu1 %v4226_v34  ;;  %v4486_v34 = vld [vmem:[#allocation5] sm:$0xff] }
0x191d   :  { %3598 = vmatpush3.msra.mxu0 %v4179_v47  ;;  %2024 = vmatprep.subr.mxu1 %v4230_v35 }
0x191e   :  { %3602 = vmatprep.subr.mxu0 %v4057_v43  ;;  %2025 = vmatpush1.msra.mxu1 %v4236_v37  ;;  %v4489_v37 = vld [vmem:[#allocation5 + $0x8] sm:$0xff] }
0x191f   :  { %2058 = vmatprep.mubr.f32.mxu1 %v4057_v43  ;;  %3613 = vmatprep.subr.mxu1 %v4057_v43 }
0x19d6   :  { %v1719_v44 = vpop.f32.mrf.mxu1 }
0x19d7   :  { %v1755_v45 = vrot.slane %v1719_v44, %v4269_v52  ;;  %v4517_v44 = vld [vmem:[#allocation7 + $0x8] sm:$0xff] }
0x19d8   :  { %v3590_v46 = vpop.f32.mrf.mxu1 }
0x19d9   :  { %v1756_v27 = vcombine.high %v1755_v45, %v1755_v45  ;;  %v1763_v29 = vrot.slane %v1755_v45, %v4269_v52 }
0x19db   :  { %v1770_v30 = vrot.slane %v1756_v27, %v4269_v52  ;;  %v1774_v47 = vrot.slane %v1763_v29, %v4154_v20 }
0x19dd   :  { %v1778_v32 = vrot.slane %v1770_v30, %v4154_v20  ;;  %v1781_v35 = vadd.f32 %v4486_v34, %v1774_v47 }
0x19df   :  { %v1782_v22 = vadd.f32 %v4489_v37, %v1778_v32  ;;  %3760 = vtanh.f32 %v1781_v35 }
0x19e1   :  { %3762 = vtanh.f32 %v1782_v22 }
0x19ec   :  { %v3761_v23 = vpop.eup %3760 }
0x19ed   :  { %v1785_v38 = vmul.f32 %v4495_v24, %v3761_v23 }
0x19ee   :  { %v3763_v39 = vpop.eup %3762 }
0x19ef   :  { %v1787_v40 = vsel %vm112_vm0, %v1785_v38, 0.0  ;;  %v1786_v41 = vmul.f32 %v4495_v24, %v3763_v39 }
0x19f0   :  { %1788 = vadd.xlane.f32.xlu1 %v1787_v40 }
0x19f1   :  { %v1790_v42 = vsel %vm112_vm0, %v1786_v41, 0.0 }
0x19f2   :  { %1791 = vadd.xlane.f32.xlu0 %v1790_v42  ;;  %v4523_v42 = vld [vmem:[#allocation10 + $0x58] sm:$0xff] }
0x1a79   :  { %v1789_v49 = vpop.xlane.xlu1 %1788 }
0x1a7a   :  { %v1798_v53 = vrot.slane %v1789_v49, %v4147_v13 }
0x1a7b   :  { %v1792_v50 = vpop.xlane.xlu0 %1791 }
0x1a7c   :  { %v1802_v55 = vrot.slane %v1792_v50, %v4147_v13 }
0x1a7e   :  { %v1803_v56 = vsel %vm131_vm1, %v1802_v55, %v1798_v53  ;;  %v4537_v53 = vld [vmem:[#allocation10 + $0x10] sm:$0xff] }
0x1a7f   :  { %v1805_v58 = vsel %vm134_vm2, %v1803_v56, -inf  ;;  %v4540_v55 = vld [vmem:[#allocation10 + $0x50] sm:$0xff]  ;;  %v1648_v56 = vpop.f32.mrf.mxu0 }
0x1a80   :  { %1806 = vmax.xlane.f32.xlu1 %v1805_v58 }
0x1a81   :  { %v4543_v58 = vpop.f32.mrf.mxu0 }
0x1b09   :  { %v1807_v0 = vpop.xlane.xlu1 %1806 }
0x1b0a   :  { %v1812_v1 = vrot.slane %v1807_v0, %v4154_v20  ;;  %v1816_v59 = vrot.slane %v1807_v0, %v4157_v21  ;;  %v1887_v0 = vld [vmem:[#allocation2 + $0x8] sm:$0x3] }
0x1b0c   :  { %v1819_v60 = vsub.f32 %v1789_v49, %v1812_v1  ;;  %v1820_v61 = vsub.f32 %v1792_v50, %v1816_v59  ;;  %v4529_v49 = vld [vmem:[#allocation10 + $0x40] sm:$0xff]  ;;  %v4533_v50 = vld [vmem:[#allocation10 + $0x28] sm:$0xff] }
0x1b0e   :  { %v1821_v62 = vmul.f32 1.442695, %v1819_v60  ;;  %v1823_v2 = vmul.f32 1.442695, %v1820_v61 }
0x1b10   :  { %3764 = vpow2.f32 %v1821_v62 }
0x1b11   :  { %3766 = vpow2.f32 %v1823_v2 }
0x1b1d   :  { %v3765_v48 = vpop.eup %3764 }
0x1b1e   :  { %v3767_v51 = vpop.eup %3766  ;;  %1828 = vperm.xlu1 %3686, %v3765_v48  }
0x1b1f   :  { %1831 = vperm.xlu0 %3687, %v3767_v51  }
0x1b99   :  { %v1829_v28 = vpop.permute.xlu1 %1828 }
0x1b9a   :  { %v1832_v63 = vpop.permute.xlu0 %1831  ;;  %v1836_v3 = vrot.slane %v1829_v28, %v4147_v13 }
0x1b9b   :  { %v1840_v4 = vrot.slane %v1832_v63, %v4147_v13 }
0x1b9d   :  { %v1841_v5 = vsel %vm131_vm1, %v1840_v4, %v1836_v3 }
0x1b9e   :  { %v1843_v31 = vsel %vm134_vm2, %v1841_v5, 0.0 }
0x1b9f   :  { %1844 = vadd.xlane.f32.xlu1 %v1843_v31 }
0x1c28   :  { %v1845_v6 = vpop.xlane.xlu1 %1844 }
0x1c29   :  { %3768 = vrcp.f32 %v1845_v6 }
0x1c36   :  { %v3769_v33 = vpop.eup %3768 }
0x1c37   :  { %v1851_v7 = vrot.slane %v3769_v33, %v4154_v20  ;;  %v1855_v9 = vrot.slane %v3769_v33, %v4157_v21 }
0x1c39   :  { %v1858_v36 = vmul.f32 %v3765_v48, %v1851_v7  ;;  %v1859_v26 = vmul.f32 %v3767_v51, %v1855_v9  ;;  %v4555_v9 = vld [vmem:[#allocation8 + $0x18] sm:$0xff] }
0x1c3b   :  { %1862 = vperm.xlu0 %3687, %v1858_v36  }
0x1c3f   :  { %1867 = vperm.xlu0 %3687, %v1859_v26   ;;  %v4561_v26 = vld [vmem:[#allocation10 + $0x48] sm:$0xff] }
0x1cb6   :  { %v1863_v10 = vpop.permute.xlu0 %1862 }
0x1cb7   :  { %v1870_v15 = vmul.f32 %v4513_v12, %v1863_v10  ;;  %v4564_v10 = vld [vmem:[#allocation8 + $0x10] sm:$0xff] }
0x1cb9   :  { %v1872_v16 = vsel %vm112_vm0, %v1870_v15, 0.0  ;;  %v4567_v15 = vld [vmem:[#allocation10 + $0x38] sm:$0xff] }
0x1cba   :  { %v1873_v17 = vrot.slane %v1872_v16, 4  ;;  %v1868_v18 = vpop.permute.xlu0 %1867 }
0x1cbb   :  { %v1871_v45 = vmul.f32 %v4517_v44, %v1868_v18  ;;  %v4577_v18 = vld [vmem:[#allocation10 + $0x20] sm:$0xff] }
0x1cbc   :  { %v1874_v46 = vadd.f32 %v1873_v17, %v1872_v16  ;;  %v4571_v16 = vld [vmem:[#allocation10 + $0x30] sm:$0xff]  ;;  %v4574_v17 = vld [vmem:[#allocation8 + $0x8] sm:$0xff] }
0x1cbd   :  { %v1879_v27 = vsel %vm112_vm0, %v1871_v45, 0.0  ;;  %v4581_v45 = vld [vmem:[#allocation10 + $0x18] sm:$0xff] }
0x1cbe   :  { %v1875_v29 = vrot.slane %v1874_v46, 2  ;;  %v1880_v30 = vrot.slane %v1879_v27, 4 }
0x1cc0   :  { %v1876_v47 = vadd.f32 %v1875_v29, %v1874_v46  ;;  %v1881_v32 = vadd.f32 %v1880_v30, %v1879_v27  ;;  %v4584_v46 = vld [vmem:[#allocation8] sm:$0xff]  ;;  %v4587_v27 = vld [vmem:[#allocation10 + $0x8] sm:$0xff] }
0x1cc1   :  { %v4591_v29 = vld [vmem:[#allocation10] sm:$0xff] }
0x1cc2   :  { %v1882_v35 = vrot.slane %v1881_v32, 2  ;;  %v1877_v22 = vrot.slane %v1876_v47, 1 }
0x1cc4   :  { %v1883_v23 = vadd.f32 %v1882_v35, %v1881_v32  ;;  %v1878_v39 = vadd.f32 %v1877_v22, %v1876_v47 }
0x1cc6   :  { %v1884_v38 = vrot.slane %v1883_v23, 1 }
0x1cc8   :  { %v1885_v40 = vadd.f32 %v1884_v38, %v1883_v23 }
0x1cca   :  { %v1890_v41 = vsel %vm131_vm1, %v1885_v40, %v1878_v39 }
0x1ccb   :  { %3600 = vmatmul.mubr.msk.f32.vlgmr.msra.gmra.mxu0 %vm112_vm0, %v1890_v41 }
0x1ccc   :  { %3603 = vmatpush3.msra.mxu0 %v4523_v42  ;;  %3610 = vmatprep.mubr.msk.f32.mxu0 %vm4058_vm3, %v4057_v43 }
0x1ccd   :  { %3604 = vmatprep.subr.mxu0 %v4057_v43 }
0x1cce   :  { %3605 = vmatpush3.msra.mxu0 %v4529_v49 }
0x1ccf   :  { %3606 = vmatprep.subr.mxu0 %v4057_v43 }
0x1cd0   :  { %3607 = vmatpush3.msra.mxu0 %v4533_v50 }
0x1cd1   :  { %3608 = vmatprep.subr.mxu0 %v4057_v43 }
0x1cd2   :  { %3609 = vmatpush3.msra.mxu0 %v4537_v53 }
0x1cd3   :  { %2430 = vmatprep.subr.mxu0 %v4540_v55 }
0x1d8b   :  { %v1959_v1 = vpop.f32.mrf.mxu0 }
0x1d8c   :  { %v1963_v59 = vadd.f32 %v1959_v1, %v1887_v0 }
0x1d8d   :  { %v3601_v60 = vpop.f32.mrf.mxu0 }
0x1d8e   :  { %v1964_v61 = vadd.f32 %v1963_v59, %v1648_v56 }
0x1d90   :  { %3770 = vtanh.f32 %v1964_v61  ;;  %v3409_v2 = vmul.f32 -1.442695, %v1964_v61 }
0x1d92   :  { %3772 = vpow2.f32 %v3409_v2 }
0x1d9d   :  { %v3771_v62 = vpop.eup %3770 }
0x1d9e   :  { %1974 = vrot.lane.b32.xlu0 %v3771_v62, %s4059_s5 }
0x1d9f   :  { %v3773_v48 = vpop.eup %3772 }
0x1da0   :  { %v1968_v51 = vadd.f32 1.0, %v3773_v48 }
0x1da2   :  { %3774 = vrcp.f32 %v1968_v51 }
0x1daf   :  { %v3775_v28 = vpop.eup %3774 }
0x1db0   :  { %v1972_v4 = vmul.f32 %v3775_v28, %v4455_v14 }
0x1e10   :  { %v1975_v63 = vpop.permute.xlu0 %1974 }
0x1e11   :  { %v1977_v3 = vmul.f32 %v3775_v28, %v1975_v63 }
0x1e13   :  { %1979 = vrot.lane.b32.xlu0 %v1977_v3, %s4050_s15 }
0x1e85   :  { %v1980_v5 = vpop.permute.xlu0 %1979 }
0x1e86   :  { %v4548_v31 = vadd.f32 %v1980_v5, %v1972_v4 }
0x1e88   :  { %3776 = vtanh.f32 %v4548_v31 }
0x1e95   :  { %v3777_v6 = vpop.eup %3776 }
0x1e96   :  { %1985 = vrot.lane.b32.xlu0 %v3777_v6, %s4059_s5 }
0x1f08   :  { %v1986_v33 = vpop.permute.xlu0 %1985 }
0x1f09   :  { %v1988_v7 = vmul.f32 %v3775_v28, %v1986_v33 }
0x1f0b   :  { %1990 = vrot.lane.b32.xlu1 %v1988_v7, %s4050_s15 }
0x1f7d   :  { %v1991_v36 = vpop.permute.xlu1 %1990 }
0x1f7e   :  { %3410 = vmatmul.mubr.msk.f32.vlgmr.msra.gmra.mxu1 %vm112_vm0, %v1991_v36  ;;  %3611 = vmatmul.mubr.msk.f32.vlgmr.msra.gmra.mxu0 %vm112_vm0, %v1991_v36 }
0x1f7f   :  { %3614 = vmatpush3.msra.mxu1 %v4555_v9  ;;  %3621 = vmatprep.mubr.msk.f32.mxu1 %vm4058_vm3, %v4057_v43 }
0x1f80   :  { %3615 = vmatprep.subr.mxu1 %v4057_v43  ;;  %2431 = vmatpush1.msra.mxu0 %v4561_v26 }
0x1f81   :  { %3616 = vmatpush3.msra.mxu1 %v4564_v10  ;;  %2432 = vmatprep.subr.mxu0 %v4567_v15 }
0x1f82   :  { %3617 = vmatprep.subr.mxu1 %v4057_v43  ;;  %2433 = vmatpush1.msra.mxu0 %v4571_v16 }
0x1f83   :  { %3618 = vmatpush3.msra.mxu1 %v4574_v17  ;;  %2434 = vmatprep.subr.mxu0 %v4577_v18 }
0x1f84   :  { %3619 = vmatprep.subr.mxu1 %v4057_v43  ;;  %2435 = vmatpush1.msra.mxu0 %v4581_v45 }
0x1f85   :  { %3620 = vmatpush3.msra.mxu1 %v4584_v46  ;;  %2436 = vmatprep.subr.mxu0 %v4587_v27 }
0x1f86   :  { %3624 = vmatprep.subr.mxu1 %v4057_v43  ;;  %2437 = vmatpush1.msra.mxu0 %v4591_v29 }
0x1f87   :  { %2470 = vmatprep.mubr.f32.mxu0 %v4057_v43  ;;  %3635 = vmatprep.subr.mxu0 %v4057_v43 }
0x203e   :  { %v2131_v30 = vpop.f32.mrf.mxu0 }
0x203f   :  { %v2167_v47 = vrot.slane %v2131_v30, %v4269_v52 }
0x2040   :  { %v3612_v32 = vpop.f32.mrf.mxu0 }
0x2041   :  { %v2168_v35 = vcombine.high %v2167_v47, %v2167_v47  ;;  %v2175_v22 = vrot.slane %v2167_v47, %v4269_v52 }
0x2043   :  { %v2182_v23 = vrot.slane %v2168_v35, %v4269_v52  ;;  %v2186_v38 = vrot.slane %v2175_v22, %v4154_v20 }
0x2045   :  { %v2190_v39 = vrot.slane %v2182_v23, %v4154_v20  ;;  %v2193_v40 = vadd.f32 %v4486_v34, %v2186_v38 }
0x2047   :  { %v2194_v41 = vadd.f32 %v4489_v37, %v2190_v39  ;;  %3778 = vtanh.f32 %v2193_v40 }
0x2049   :  { %3780 = vtanh.f32 %v2194_v41 }
0x2054   :  { %v3779_v56 = vpop.eup %3778 }
0x2055   :  { %v2197_v0 = vmul.f32 %v4495_v24, %v3779_v56 }
0x2056   :  { %v3781_v1 = vpop.eup %3780 }
0x2057   :  { %v2199_v59 = vsel %vm112_vm0, %v2197_v0, 0.0  ;;  %v2198_v60 = vmul.f32 %v4495_v24, %v3781_v1 }
0x2058   :  { %2200 = vadd.xlane.f32.xlu0 %v2199_v59 }
0x2059   :  { %v2202_v61 = vsel %vm112_vm0, %v2198_v60, 0.0 }
0x205a   :  { %2203 = vadd.xlane.f32.xlu1 %v2202_v61 }
0x20e1   :  { %v2201_v62 = vpop.xlane.xlu0 %2200 }
0x20e2   :  { %v2210_v48 = vrot.slane %v2201_v62, %v4147_v13 }
0x20e3   :  { %v2204_v2 = vpop.xlane.xlu1 %2203 }
0x20e4   :  { %v2214_v51 = vrot.slane %v2204_v2, %v4147_v13 }
0x20e6   :  { %v2215_v28 = vsel %vm131_vm1, %v2214_v51, %v2210_v48 }
0x20e7   :  { %v2217_v63 = vsel %vm134_vm2, %v2215_v28, -inf }
0x20e8   :  { %2218 = vmax.xlane.f32.xlu0 %v2217_v63 }
0x2171   :  { %v2219_v3 = vpop.xlane.xlu0 %2218 }
0x2172   :  { %v2224_v4 = vrot.slane %v2219_v3, %v4154_v20  ;;  %v2228_v5 = vrot.slane %v2219_v3, %v4157_v21 }
0x2174   :  { %v2231_v6 = vsub.f32 %v2201_v62, %v2224_v4  ;;  %v2232_v33 = vsub.f32 %v2204_v2, %v2228_v5 }
0x2176   :  { %v2233_v7 = vmul.f32 1.442695, %v2231_v6  ;;  %v2235_v36 = vmul.f32 1.442695, %v2232_v33 }
0x2178   :  { %3782 = vpow2.f32 %v2233_v7 }
0x2179   :  { %3784 = vpow2.f32 %v2235_v36 }
0x2185   :  { %v3783_v30 = vpop.eup %3782 }
0x2186   :  { %v3785_v47 = vpop.eup %3784  ;;  %2240 = vperm.xlu0 %3687, %v3783_v30  }
0x2187   :  { %2243 = vperm.xlu1 %3686, %v3785_v47  }
0x2201   :  { %v2241_v32 = vpop.permute.xlu0 %2240 }
0x2202   :  { %v2244_v35 = vpop.permute.xlu1 %2243  ;;  %v2248_v22 = vrot.slane %v2241_v32, %v4147_v13 }
0x2203   :  { %v2252_v23 = vrot.slane %v2244_v35, %v4147_v13 }
0x2205   :  { %v2253_v38 = vsel %vm131_vm1, %v2252_v23, %v2248_v22  ;;  %v2060_v22 = vpop.f32.mrf.mxu1 }
0x2206   :  { %v2255_v39 = vsel %vm134_vm2, %v2253_v38, 0.0  ;;  %v2299_v38 = vld [vmem:[#allocation2 + $0xa] sm:$0x3] }
0x2207   :  { %2256 = vadd.xlane.f32.xlu0 %v2255_v39  ;;  %v4635_v23 = vpop.f32.mrf.mxu1 }
0x2290   :  { %v2257_v40 = vpop.xlane.xlu0 %2256 }
0x2291   :  { %3786 = vrcp.f32 %v2257_v40 }
0x229e   :  { %v3787_v41 = vpop.eup %3786 }
0x229f   :  { %v2263_v56 = vrot.slane %v3787_v41, %v4154_v20  ;;  %v2267_v1 = vrot.slane %v3787_v41, %v4157_v21 }
0x22a1   :  { %v2270_v0 = vmul.f32 %v3783_v30, %v2263_v56  ;;  %v2271_v59 = vmul.f32 %v3785_v47, %v2267_v1 }
0x22a3   :  { %2274 = vperm.xlu1 %3686, %v2270_v0  }
0x22a7   :  { %2279 = vperm.xlu1 %3686, %v2271_v59  }
0x231e   :  { %v2275_v60 = vpop.permute.xlu1 %2274 }
0x231f   :  { %v2282_v61 = vmul.f32 %v4513_v12, %v2275_v60 }
0x2321   :  { %v2284_v62 = vsel %vm112_vm0, %v2282_v61, 0.0 }
0x2322   :  { %v2285_v2 = vrot.slane %v2284_v62, 4  ;;  %v2280_v48 = vpop.permute.xlu1 %2279 }
0x2323   :  { %v2283_v51 = vmul.f32 %v4517_v44, %v2280_v48 }
0x2324   :  { %v2286_v28 = vadd.f32 %v2285_v2, %v2284_v62 }
0x2325   :  { %v2291_v63 = vsel %vm112_vm0, %v2283_v51, 0.0 }
0x2326   :  { %v2287_v3 = vrot.slane %v2286_v28, 2  ;;  %v2292_v4 = vrot.slane %v2291_v63, 4 }
0x2328   :  { %v2288_v5 = vadd.f32 %v2287_v3, %v2286_v28  ;;  %v2293_v6 = vadd.f32 %v2292_v4, %v2291_v63 }
0x232a   :  { %v2294_v33 = vrot.slane %v2293_v6, 2  ;;  %v2289_v7 = vrot.slane %v2288_v5, 1 }
0x232c   :  { %v2295_v36 = vadd.f32 %v2294_v33, %v2293_v6  ;;  %v2290_v47 = vadd.f32 %v2289_v7, %v2288_v5 }
0x232e   :  { %v2296_v30 = vrot.slane %v2295_v36, 1 }
0x2330   :  { %v2297_v32 = vadd.f32 %v2296_v30, %v2295_v36 }
0x2332   :  { %v2302_v35 = vsel %vm131_vm1, %v2297_v32, %v2290_v47 }
0x2333   :  { %3622 = vmatmul.mubr.msk.f32.vlgmr.msra.gmra.mxu1 %vm112_vm0, %v2302_v35 }
0x2334   :  { %3625 = vmatpush3.msra.mxu1 %v4523_v42  ;;  %3632 = vmatprep.mubr.msk.f32.mxu1 %vm4058_vm3, %v4057_v43 }
0x2335   :  { %3626 = vmatprep.subr.mxu1 %v4057_v43 }
0x2336   :  { %3627 = vmatpush3.msra.mxu1 %v4529_v49 }
0x2337   :  { %3628 = vmatprep.subr.mxu1 %v4057_v43 }
0x2338   :  { %3629 = vmatpush3.msra.mxu1 %v4533_v50 }
0x2339   :  { %3630 = vmatprep.subr.mxu1 %v4057_v43 }
0x233a   :  { %3631 = vmatpush3.msra.mxu1 %v4537_v53 }
0x233b   :  { %2842 = vmatprep.subr.mxu1 %v4540_v55 }
0x23f3   :  { %v2371_v39 = vpop.f32.mrf.mxu1 }
0x23f4   :  { %v2375_v40 = vadd.f32 %v2371_v39, %v2299_v38 }
0x23f5   :  { %v3623_v41 = vpop.f32.mrf.mxu1 }
0x23f6   :  { %v2376_v56 = vadd.f32 %v2375_v40, %v2060_v22 }
0x23f8   :  { %3788 = vtanh.f32 %v2376_v56  ;;  %v3414_v1 = vmul.f32 -1.442695, %v2376_v56 }
0x23fa   :  { %3790 = vpow2.f32 %v3414_v1 }
0x2405   :  { %v3789_v0 = vpop.eup %3788 }
0x2406   :  { %2386 = vrot.lane.b32.xlu1 %v3789_v0, %s4059_s5 }
0x2407   :  { %v3791_v59 = vpop.eup %3790 }
0x2408   :  { %v2380_v60 = vadd.f32 1.0, %v3791_v59 }
0x240a   :  { %3792 = vrcp.f32 %v2380_v60 }
0x2417   :  { %v3793_v61 = vpop.eup %3792 }
0x2418   :  { %v2384_v48 = vmul.f32 %v3793_v61, %v4548_v31 }
0x2478   :  { %v2387_v62 = vpop.permute.xlu1 %2386 }
0x2479   :  { %v2389_v2 = vmul.f32 %v3793_v61, %v2387_v62 }
0x247b   :  { %2391 = vrot.lane.b32.xlu1 %v2389_v2, %s4050_s15 }
0x24ed   :  { %v2392_v51 = vpop.permute.xlu1 %2391 }
0x24ee   :  { %v4640_v28 = vadd.f32 %v2392_v51, %v2384_v48 }
0x24f0   :  { %3794 = vtanh.f32 %v4640_v28 }
0x24fd   :  { %v3795_v63 = vpop.eup %3794 }
0x24fe   :  { %2397 = vrot.lane.b32.xlu1 %v3795_v63, %s4059_s5 }
0x2570   :  { %v2398_v3 = vpop.permute.xlu1 %2397 }
0x2571   :  { %v2400_v4 = vmul.f32 %v3793_v61, %v2398_v3 }
0x2573   :  { %2402 = vrot.lane.b32.xlu0 %v2400_v4, %s4050_s15 }
0x25e5   :  { %v2403_v5 = vpop.permute.xlu0 %2402 }
0x25e6   :  { %3415 = vmatmul.mubr.msk.f32.vlgmr.msra.gmra.mxu0 %vm112_vm0, %v2403_v5  ;;  %3633 = vmatmul.mubr.msk.f32.vlgmr.msra.gmra.mxu1 %vm112_vm0, %v2403_v5 }
0x25e7   :  { %3636 = vmatpush3.msra.mxu0 %v4555_v9  ;;  %3643 = vmatprep.mubr.msk.f32.mxu0 %vm4058_vm3, %v4057_v43 }
0x25e8   :  { %3637 = vmatprep.subr.mxu0 %v4057_v43  ;;  %2843 = vmatpush1.msra.mxu1 %v4561_v26 }
0x25e9   :  { %3638 = vmatpush3.msra.mxu0 %v4564_v10  ;;  %2844 = vmatprep.subr.mxu1 %v4567_v15 }
0x25ea   :  { %3639 = vmatprep.subr.mxu0 %v4057_v43  ;;  %2845 = vmatpush1.msra.mxu1 %v4571_v16 }
0x25eb   :  { %3640 = vmatpush3.msra.mxu0 %v4574_v17  ;;  %2846 = vmatprep.subr.mxu1 %v4577_v18 }
0x25ec   :  { %3641 = vmatprep.subr.mxu0 %v4057_v43  ;;  %2847 = vmatpush1.msra.mxu1 %v4581_v45 }
0x25ed   :  { %3642 = vmatpush3.msra.mxu0 %v4584_v46  ;;  %2848 = vmatprep.subr.mxu1 %v4587_v27 }
0x25ee   :  { %3646 = vmatprep.subr.mxu0 %v4057_v43  ;;  %2849 = vmatpush1.msra.mxu1 %v4591_v29 }
0x25ef   :  { %2882 = vmatprep.mubr.f32.mxu1 %v4057_v43  ;;  %3657 = vmatprep.subr.mxu1 %v4057_v43 }
0x26a6   :  { %v2543_v6 = vpop.f32.mrf.mxu1 }
0x26a7   :  { %v2579_v33 = vrot.slane %v2543_v6, %v4269_v52 }
0x26a8   :  { %v3634_v7 = vpop.f32.mrf.mxu1 }
0x26a9   :  { %v2580_v36 = vcombine.high %v2579_v33, %v2579_v33  ;;  %v2587_v30 = vrot.slane %v2579_v33, %v4269_v52 }
0x26ab   :  { %v2594_v47 = vrot.slane %v2580_v36, %v4269_v52  ;;  %v2598_v32 = vrot.slane %v2587_v30, %v4154_v20 }
0x26ad   :  { %v2602_v35 = vrot.slane %v2594_v47, %v4154_v20  ;;  %v2605_v22 = vadd.f32 %v4486_v34, %v2598_v32 }
0x26af   :  { %v2606_v38 = vadd.f32 %v4489_v37, %v2602_v35  ;;  %3796 = vtanh.f32 %v2605_v22 }
0x26b1   :  { %3798 = vtanh.f32 %v2606_v38 }
0x26bc   :  { %v3797_v39 = vpop.eup %3796 }
0x26bd   :  { %v2609_v40 = vmul.f32 %v4495_v24, %v3797_v39 }
0x26be   :  { %v3799_v41 = vpop.eup %3798 }
0x26bf   :  { %v2611_v56 = vsel %vm112_vm0, %v2609_v40, 0.0  ;;  %v2610_v0 = vmul.f32 %v4495_v24, %v3799_v41 }
0x26c0   :  { %2612 = vadd.xlane.f32.xlu1 %v2611_v56 }
0x26c1   :  { %v2614_v1 = vsel %vm112_vm0, %v2610_v0, 0.0 }
0x26c2   :  { %2615 = vadd.xlane.f32.xlu0 %v2614_v1 }
0x2749   :  { %v2613_v59 = vpop.xlane.xlu1 %2612 }
0x274a   :  { %v2622_v61 = vrot.slane %v2613_v59, %v4147_v13 }
0x274b   :  { %v2616_v60 = vpop.xlane.xlu0 %2615 }
0x274c   :  { %v2626_v62 = vrot.slane %v2616_v60, %v4147_v13 }
0x274e   :  { %v2627_v2 = vsel %vm131_vm1, %v2626_v62, %v2622_v61 }
0x274f   :  { %v2629_v48 = vsel %vm134_vm2, %v2627_v2, -inf }
0x2750   :  { %2630 = vmax.xlane.f32.xlu1 %v2629_v48 }
0x27d9   :  { %v2631_v51 = vpop.xlane.xlu1 %2630 }
0x27da   :  { %v2636_v63 = vrot.slane %v2631_v51, %v4154_v20  ;;  %v2640_v3 = vrot.slane %v2631_v51, %v4157_v21 }
0x27dc   :  { %v2643_v4 = vsub.f32 %v2613_v59, %v2636_v63  ;;  %v2644_v5 = vsub.f32 %v2616_v60, %v2640_v3 }
0x27de   :  { %v2645_v6 = vmul.f32 1.442695, %v2643_v4  ;;  %v2647_v33 = vmul.f32 1.442695, %v2644_v5 }
0x27e0   :  { %3800 = vpow2.f32 %v2645_v6 }
0x27e1   :  { %3802 = vpow2.f32 %v2647_v33 }
0x27ed   :  { %v3801_v7 = vpop.eup %3800 }
0x27ee   :  { %v3803_v36 = vpop.eup %3802  ;;  %2652 = vperm.xlu1 %3686, %v3801_v7  }
0x27ef   :  { %2655 = vperm.xlu0 %3687, %v3803_v36  }
0x2869   :  { %v2653_v30 = vpop.permute.xlu1 %2652 }
0x286a   :  { %v2656_v47 = vpop.permute.xlu0 %2655  ;;  %v2660_v32 = vrot.slane %v2653_v30, %v4147_v13 }
0x286b   :  { %v2664_v35 = vrot.slane %v2656_v47, %v4147_v13 }
0x286d   :  { %v2665_v22 = vsel %vm131_vm1, %v2664_v35, %v2660_v32 }
0x286e   :  { %v2667_v38 = vsel %vm134_vm2, %v2665_v22, 0.0  ;;  %v2472_v22 = vpop.f32.mrf.mxu0 }
0x286f   :  { %2668 = vadd.xlane.f32.xlu1 %v2667_v38 }
0x2870   :  { %v4705_v38 = vpop.f32.mrf.mxu0 }
0x28f8   :  { %v2669_v39 = vpop.xlane.xlu1 %2668 }
0x28f9   :  { %3804 = vrcp.f32 %v2669_v39 }
0x2906   :  { %v3805_v40 = vpop.eup %3804 }
0x2907   :  { %v2675_v41 = vrot.slane %v3805_v40, %v4154_v20  ;;  %v2679_v0 = vrot.slane %v3805_v40, %v4157_v21 }
0x2909   :  { %v2682_v56 = vmul.f32 %v3801_v7, %v2675_v41  ;;  %v2683_v1 = vmul.f32 %v3803_v36, %v2679_v0 }
0x290b   :  { %2686 = vperm.xlu0 %3687, %v2682_v56  }
0x290f   :  { %2691 = vperm.xlu0 %3687, %v2683_v1  }
0x2986   :  { %v2687_v59 = vpop.permute.xlu0 %2686 }
0x2987   :  { %v2694_v60 = vmul.f32 %v4513_v12, %v2687_v59 }
0x2989   :  { %v2696_v61 = vsel %vm112_vm0, %v2694_v60, 0.0 }
0x298a   :  { %v2697_v62 = vrot.slane %v2696_v61, 4  ;;  %v2692_v2 = vpop.permute.xlu0 %2691 }
0x298b   :  { %v2695_v48 = vmul.f32 %v4517_v44, %v2692_v2 }
0x298c   :  { %v2698_v51 = vadd.f32 %v2697_v62, %v2696_v61 }
0x298d   :  { %v2703_v63 = vsel %vm112_vm0, %v2695_v48, 0.0 }
0x298e   :  { %v2699_v3 = vrot.slane %v2698_v51, 2  ;;  %v2704_v4 = vrot.slane %v2703_v63, 4 }
0x2990   :  { %v2700_v5 = vadd.f32 %v2699_v3, %v2698_v51  ;;  %v2705_v6 = vadd.f32 %v2704_v4, %v2703_v63 }
0x2992   :  { %v2706_v33 = vrot.slane %v2705_v6, 2  ;;  %v2701_v7 = vrot.slane %v2700_v5, 1 }
0x2994   :  { %v2707_v36 = vadd.f32 %v2706_v33, %v2705_v6  ;;  %v2702_v47 = vadd.f32 %v2701_v7, %v2700_v5 }
0x2996   :  { %v2708_v30 = vrot.slane %v2707_v36, 1 }
0x2998   :  { %v2709_v32 = vadd.f32 %v2708_v30, %v2707_v36 }
0x299a   :  { %v2714_v35 = vsel %vm131_vm1, %v2709_v32, %v2702_v47 }
0x299b   :  { %3644 = vmatmul.mubr.msk.f32.vlgmr.msra.gmra.mxu0 %vm112_vm0, %v2714_v35 }
0x299c   :  { %3647 = vmatpush3.msra.mxu0 %v4523_v42  ;;  %3654 = vmatprep.mubr.msk.f32.mxu0 %vm4058_vm3, %v4057_v43  ;;  %v2711_v42 = vld [vmem:[#allocation2 + $0xc] sm:$0x3] }
0x299d   :  { %3648 = vmatprep.subr.mxu0 %v4057_v43 }
0x299e   :  { %3649 = vmatpush3.msra.mxu0 %v4529_v49 }
0x299f   :  { %3650 = vmatprep.subr.mxu0 %v4057_v43 }
0x29a0   :  { %3651 = vmatpush3.msra.mxu0 %v4533_v50 }
0x29a1   :  { %3652 = vmatprep.subr.mxu0 %v4057_v43 }
0x29a2   :  { %3653 = vmatpush3.msra.mxu0 %v4537_v53 }
0x29a3   :  { %3254 = vmatprep.subr.mxu0 %v4540_v55 }
0x2a5b   :  { %v2783_v39 = vpop.f32.mrf.mxu0 }
0x2a5c   :  { %v2787_v40 = vadd.f32 %v2783_v39, %v2711_v42 }
0x2a5d   :  { %v3645_v41 = vpop.f32.mrf.mxu0 }
0x2a5e   :  { %v2788_v56 = vadd.f32 %v2787_v40, %v2472_v22 }
0x2a60   :  { %3806 = vtanh.f32 %v2788_v56  ;;  %v3419_v0 = vmul.f32 -1.442695, %v2788_v56 }
0x2a62   :  { %3808 = vpow2.f32 %v3419_v0 }
0x2a6d   :  { %v3807_v49 = vpop.eup %3806 }
0x2a6e   :  { %2798 = vrot.lane.b32.xlu0 %v3807_v49, %s4059_s5 }
0x2a6f   :  { %v3809_v50 = vpop.eup %3808 }
0x2a70   :  { %v2792_v1 = vadd.f32 1.0, %v3809_v50 }
0x2a72   :  { %3810 = vrcp.f32 %v2792_v1 }
0x2a7f   :  { %v3811_v53 = vpop.eup %3810 }
0x2a80   :  { %v2796_v60 = vmul.f32 %v3811_v53, %v4640_v28 }
0x2ae0   :  { %v2799_v59 = vpop.permute.xlu0 %2798 }
0x2ae1   :  { %v2801_v55 = vmul.f32 %v3811_v53, %v2799_v59 }
0x2ae3   :  { %2803 = vrot.lane.b32.xlu0 %v2801_v55, %s4050_s15 }
0x2b55   :  { %v2804_v61 = vpop.permute.xlu0 %2803 }
0x2b56   :  { %v4710_v62 = vadd.f32 %v2804_v61, %v2796_v60 }
0x2b58   :  { %3812 = vtanh.f32 %v4710_v62 }
0x2b65   :  { %v3813_v2 = vpop.eup %3812 }
0x2b66   :  { %2809 = vrot.lane.b32.xlu0 %v3813_v2, %s4059_s5 }
0x2bd8   :  { %v2810_v48 = vpop.permute.xlu0 %2809 }
0x2bd9   :  { %v2812_v51 = vmul.f32 %v3811_v53, %v2810_v48 }
0x2bdb   :  { %2814 = vrot.lane.b32.xlu1 %v2812_v51, %s4050_s15 }
0x2c4d   :  { %v2815_v63 = vpop.permute.xlu1 %2814 }
0x2c4e   :  { %3420 = vmatmul.mubr.msk.f32.vlgmr.msra.gmra.mxu1 %vm112_vm0, %v2815_v63  ;;  %3655 = vmatmul.mubr.msk.f32.vlgmr.msra.gmra.mxu0 %vm112_vm0, %v2815_v63 }
0x2c4f   :  { %3658 = vmatpush3.msra.mxu1 %v4555_v9  ;;  %3665 = vmatprep.mubr.msk.f32.mxu1 %vm4058_vm3, %v4057_v43 }
0x2c50   :  { %3659 = vmatprep.subr.mxu1 %v4057_v43  ;;  %3255 = vmatpush1.msra.mxu0 %v4561_v26 }
0x2c51   :  { %3660 = vmatpush3.msra.mxu1 %v4564_v10  ;;  %3256 = vmatprep.subr.mxu0 %v4567_v15 }
0x2c52   :  { %3661 = vmatprep.subr.mxu1 %v4057_v43  ;;  %3257 = vmatpush1.msra.mxu0 %v4571_v16 }
0x2c53   :  { %3662 = vmatpush3.msra.mxu1 %v4574_v17  ;;  %3258 = vmatprep.subr.mxu0 %v4577_v18 }
0x2c54   :  { %3663 = vmatprep.subr.mxu1 %v4057_v43  ;;  %3259 = vmatpush1.msra.mxu0 %v4581_v45 }
0x2c55   :  { %3664 = vmatpush3.msra.mxu1 %v4584_v46  ;;  %3260 = vmatprep.subr.mxu0 %v4587_v27 }
0x2c56   :  { %3261 = vmatpush1.msra.mxu0 %v4591_v29  ;;  %3294 = vmatprep.mubr.f32.mxu0 %v4057_v43 }
0x2d0e   :  { %v2955_v9 = vpop.f32.mrf.mxu0 }
0x2d0f   :  { %v2991_v26 = vrot.slane %v2955_v9, %v4269_v52 }
0x2d10   :  { %v3656_v10 = vpop.f32.mrf.mxu0 }
0x2d11   :  { %v2992_v15 = vcombine.high %v2991_v26, %v2991_v26  ;;  %v2999_v16 = vrot.slane %v2991_v26, %v4269_v52 }
0x2d13   :  { %v3006_v17 = vrot.slane %v2992_v15, %v4269_v52  ;;  %v3010_v18 = vrot.slane %v2999_v16, %v4154_v20 }
0x2d15   :  { %v3014_v45 = vrot.slane %v3006_v17, %v4154_v20  ;;  %v3017_v46 = vadd.f32 %v4486_v34, %v3010_v18 }
0x2d17   :  { %v3018_v27 = vadd.f32 %v4489_v37, %v3014_v45  ;;  %3814 = vtanh.f32 %v3017_v46 }
0x2d19   :  { %3816 = vtanh.f32 %v3018_v27 }
0x2d24   :  { %v3815_v43 = vpop.eup %3814 }
0x2d25   :  { %v3021_v29 = vmul.f32 %v4495_v24, %v3815_v43 }
0x2d26   :  { %v3817_v3 = vpop.eup %3816 }
0x2d27   :  { %v3023_v4 = vsel %vm112_vm0, %v3021_v29, 0.0  ;;  %v3022_v5 = vmul.f32 %v4495_v24, %v3817_v3  ;;  %v2884_v3 = vpop.f32.mrf.mxu1 }
0x2d28   :  { %3024 = vadd.xlane.f32.xlu0 %v3023_v4 }
0x2d29   :  { %v3026_v52 = vsel %vm112_vm0, %v3022_v5, 0.0  ;;  %v2886_v4 = vpop.f32.mrf.mxu1 }
0x2d2a   :  { %3027 = vadd.xlane.f32.xlu1 %v3026_v52 }
0x2db1   :  { %v3025_v6 = vpop.xlane.xlu0 %3024 }
0x2db2   :  { %v3034_v34 = vrot.slane %v3025_v6, %v4147_v13 }
0x2db3   :  { %v3028_v33 = vpop.xlane.xlu1 %3027 }
0x2db4   :  { %v3038_v37 = vrot.slane %v3028_v33, %v4147_v13 }
0x2db6   :  { %v3039_v7 = vsel %vm131_vm1, %v3038_v37, %v3034_v34 }
0x2db7   :  { %v3041_v36 = vsel %vm134_vm2, %v3039_v7, -inf }
0x2db8   :  { %3042 = vmax.xlane.f32.xlu0 %v3041_v36 }
0x2e41   :  { %v3043_v30 = vpop.xlane.xlu0 %3042 }
0x2e42   :  { %v3048_v47 = vrot.slane %v3043_v30, %v4154_v20  ;;  %v3052_v24 = vrot.slane %v3043_v30, %v4157_v21 }
0x2e44   :  { %v3055_v32 = vsub.f32 %v3025_v6, %v3048_v47  ;;  %v3056_v35 = vsub.f32 %v3028_v33, %v3052_v24 }
0x2e46   :  { %v3057_v22 = vmul.f32 1.442695, %v3055_v32  ;;  %v3059_v42 = vmul.f32 1.442695, %v3056_v35  ;;  %v4769_v35 = vld [vmem:[%s4859_s6] ss:$0 sm:$0xff] }
0x2e47   :  { %s4061_s6 = smov 96  }
0x2e48   :  { %3818 = vpow2.f32 %v3057_v22 }
0x2e49   :  { %3820 = vpow2.f32 %v3059_v42 }
0x2e55   :  { %v3819_v39 = vpop.eup %3818 }
0x2e56   :  { %v3821_v40 = vpop.eup %3820  ;;  %3064 = vperm.xlu0 %3687, %v3819_v39  }
0x2e57   :  { %3067 = vperm.xlu1 %3686, %v3821_v40  }
0x2ed1   :  { %v3065_v41 = vpop.permute.xlu0 %3064 }
0x2ed2   :  { %v3068_v56 = vpop.permute.xlu1 %3067  ;;  %v3072_v49 = vrot.slane %v3065_v41, %v4147_v13  ;;  %v2135_v41 = vadd.f32 %v4769_v35, %v4635_v23 }
0x2ed3   :  { %v3076_v0 = vrot.slane %v3068_v56, %v4147_v13  ;;  %v2547_v56 = vadd.f32 %v4769_v35, %v4705_v38 }
0x2ed5   :  { %v3077_v50 = vsel %vm131_vm1, %v3076_v0, %v3072_v49 }
0x2ed6   :  { %v3079_v1 = vsel %vm134_vm2, %v3077_v50, 0.0 }
0x2ed7   :  { %3080 = vadd.xlane.f32.xlu0 %v3079_v1 }
0x2f60   :  { %v3081_v53 = vpop.xlane.xlu0 %3080 }
0x2f61   :  { %3822 = vrcp.f32 %v3081_v53 }
0x2f6e   :  { %v3823_v59 = vpop.eup %3822 }
0x2f6f   :  { %v3087_v55 = vrot.slane %v3823_v59, %v4154_v20  ;;  %v3091_v61 = vrot.slane %v3823_v59, %v4157_v21 }
0x2f71   :  { %v3094_v60 = vmul.f32 %v3819_v39, %v3087_v55  ;;  %v3095_v2 = vmul.f32 %v3821_v40, %v3091_v61  ;;  %v487_v39 = vadd.f32 %v4769_v35, %v4310_v19  ;;  %v899_v40 = vadd.f32 %v4769_v35, %v4380_v54 }
0x2f72   :  { %v1311_v19 = vadd.f32 %v4769_v35, %v4450_v11  ;;  %v4787_v54 = vadd.f32 %v4769_v35, %v2886_v4  ;;  %v3412_v55 = vmul.f32 -1.442695, %v2135_v41 }
0x2f73   :  { %3098 = vperm.xlu1 %3686, %v3094_v60   ;;  %v3392_v53 = vmul.f32 -1.442695, %v487_v39  ;;  %v3397_v59 = vmul.f32 -1.442695, %v899_v40  ;;  %v3417_v60 = vmul.f32 -1.442695, %v2547_v56 }
0x2f74   :  { %v3402_v61 = vmul.f32 -1.442695, %v1311_v19 }
0x2f77   :  { %3103 = vperm.xlu1 %3686, %v3095_v2  }
0x2fee   :  { %v3099_v48 = vpop.permute.xlu1 %3098 }
0x2fef   :  { %v3106_v51 = vmul.f32 %v4513_v12, %v3099_v48 }
0x2ff1   :  { %v3108_v13 = vsel %vm112_vm0, %v3106_v51, 0.0 }
0x2ff2   :  { %v3109_v63 = vrot.slane %v3108_v13, 4  ;;  %v3104_v9 = vpop.permute.xlu1 %3103 }
0x2ff3   :  { %v3107_v26 = vmul.f32 %v4517_v44, %v3104_v9  ;;  %v3123_v44 = vld [vmem:[#allocation2 + $0xe] sm:$0x3]  ;;  %v1723_v9 = vadd.f32 %v4769_v35, %v4543_v58 }
0x2ff4   :  { %v3110_v10 = vadd.f32 %v3109_v63, %v3108_v13 }
0x2ff5   :  { %v3115_v15 = vsel %vm112_vm0, %v3107_v26, 0.0 }
0x2ff6   :  { %v3111_v16 = vrot.slane %v3110_v10, 2  ;;  %v3116_v20 = vrot.slane %v3115_v15, 4 }
0x2ff8   :  { %v3112_v17 = vadd.f32 %v3111_v16, %v3110_v10  ;;  %v3117_v18 = vadd.f32 %v3116_v20, %v3115_v15 }
0x2ffa   :  { %v3118_v21 = vrot.slane %v3117_v18, 2  ;;  %v3113_v45 = vrot.slane %v3112_v17, 1 }
0x2ffc   :  { %v3119_v46 = vadd.f32 %v3118_v21, %v3117_v18  ;;  %v3114_v43 = vadd.f32 %v3113_v45, %v3112_v17 }
0x2ffe   :  { %v3120_v27 = vrot.slane %v3119_v46, 1 }
0x3000   :  { %v3121_v29 = vadd.f32 %v3120_v27, %v3119_v46 }
0x3002   :  { %v3126_v12 = vsel %vm131_vm1, %v3121_v29, %v3114_v43 }
0x3003   :  { %3666 = vmatmul.mubr.msk.f32.vlgmr.msra.gmra.mxu1 %vm112_vm0, %v3126_v12 }
0x30c3   :  { %v3195_v5 = vpop.f32.mrf.mxu1 }
0x30c4   :  { %v3199_v52 = vadd.f32 %v3195_v5, %v3123_v44 }
0x30c5   :  { %v3667_v6 = vpop.f32.mrf.mxu1 }
0x30c6   :  { %v3200_v33 = vadd.f32 %v3199_v52, %v2884_v3 }
0x30c8   :  { %3824 = vtanh.f32 %v3200_v33  ;;  %v3424_v37 = vmul.f32 -1.442695, %v3200_v33 }
0x30ca   :  { %3826 = vpow2.f32 %v3424_v37  ;;  %v3407_v37 = vmul.f32 -1.442695, %v1723_v9 }
0x30d5   :  { %v3825_v34 = vpop.eup %3824 }
0x30d6   :  { %3210 = vrot.lane.b32.xlu1 %v3825_v34, %s4059_s5 }
0x30d7   :  { %v3827_v7 = vpop.eup %3826 }
0x30d8   :  { %v3204_v36 = vadd.f32 1.0, %v3827_v7 }
0x30da   :  { %3828 = vrcp.f32 %v3204_v36 }
0x30e7   :  { %v3829_v30 = vpop.eup %3828 }
0x30e8   :  { %v3208_v32 = vmul.f32 %v3829_v30, %v4710_v62 }
0x3148   :  { %v3211_v47 = vpop.permute.xlu1 %3210 }
0x3149   :  { %v3213_v24 = vmul.f32 %v3829_v30, %v3211_v47 }
0x314b   :  { %3215 = vrot.lane.b32.xlu1 %v3213_v24, %s4050_s15 }
0x31bd   :  { %v3216_v22 = vpop.permute.xlu1 %3215 }
0x31be   :  { %v4771_v42 = vadd.f32 %v3216_v22, %v3208_v32 }
0x31c0   :  { %3830 = vtanh.f32 %v4771_v42 }
0x31c1   :  { %3832 = vtanh.f32 %v487_v39 }
0x31c2   :  { %3834 = vtanh.f32 %v899_v40 }
0x31c3   :  { %3836 = vtanh.f32 %v2135_v41 }
0x31c4   :  { %3838 = vtanh.f32 %v2547_v56 }
0x31c5   :  { %3840 = vtanh.f32 %v1311_v19 }
0x31c6   :  { %3842 = vtanh.f32 %v4787_v54 }
0x31c7   :  { %3844 = vpow2.f32 %v3392_v53 }
0x31c8   :  { %3846 = vpow2.f32 %v3397_v59 }
0x31c9   :  { %3848 = vpow2.f32 %v3412_v55 }
0x31ca   :  { %3850 = vpow2.f32 %v3417_v60 }
0x31cb   :  { %3852 = vpow2.f32 %v3402_v61 }
0x31cd   :  { %v3831_v49 = vpop.eup %3830 }
0x31ce   :  { %3221 = vrot.lane.b32.xlu1 %v3831_v49, %s4059_s5  ;;  %v3833_v0 = vpop.eup %3832 }
0x31cf   :  { %v3835_v50 = vpop.eup %3834 }
0x31d0   :  { %v3837_v23 = vpop.eup %3836 }
0x31d1   :  { %v3839_v38 = vpop.eup %3838 }
0x31d2   :  { %497 = vrot.lane.b32.xlu1 %v3833_v0, %s4059_s5  ;;  %v3841_v11 = vpop.eup %3840 }
0x31d3   :  { %v3843_v1 = vpop.eup %3842 }
0x31d4   :  { %v3845_v2 = vpop.eup %3844 }
0x31d5   :  { %v491_v48 = vadd.f32 1.0, %v3845_v2  ;;  %v3847_v51 = vpop.eup %3846 }
0x31d6   :  { %909 = vrot.lane.b32.xlu1 %v3835_v50, %s4059_s5  ;;  %v903_v13 = vadd.f32 1.0, %v3847_v51  ;;  %v3849_v63 = vpop.eup %3848 }
0x31d7   :  { %3854 = vrcp.f32 %v491_v48  ;;  %v2139_v26 = vadd.f32 1.0, %v3849_v63  ;;  %v3851_v10 = vpop.eup %3850 }
0x31d8   :  { %3856 = vrcp.f32 %v903_v13  ;;  %v2551_v15 = vadd.f32 1.0, %v3851_v10  ;;  %v3853_v16 = vpop.eup %3852 }
0x31d9   :  { %3858 = vtanh.f32 %v1723_v9  ;;  %v1315_v18 = vadd.f32 1.0, %v3853_v16 }
0x31da   :  { %2145 = vrot.lane.b32.xlu1 %v3837_v23, %s4059_s5  ;;  %3860 = vrcp.f32 %v2139_v26 }
0x31db   :  { %3862 = vrcp.f32 %v2551_v15 }
0x31dc   :  { %3864 = vrcp.f32 %v1315_v18 }
0x31dd   :  { %3866 = vpow2.f32 %v3407_v37 }
0x31de   :  { %2557 = vrot.lane.b32.xlu1 %v3839_v38, %s4059_s5 }
0x31e2   :  { %1321 = vrot.lane.b32.xlu1 %v3841_v11, %s4059_s5 }
0x31e4   :  { %v3855_v21 = vpop.eup %3854 }
0x31e5   :  { %v4799_v58 = vpop.eup %3856  ;;  %v495_v47 = vmul.f32 %v3855_v21, %v4201_v25 }
0x31e6   :  { %2969 = vrot.lane.b32.xlu1 %v3843_v1, %s4059_s5  ;;  %v3859_v29 = vpop.eup %3858 }
0x31e7   :  { %v3861_v12 = vpop.eup %3860 }
0x31e8   :  { %v4805_v44 = vpop.eup %3862  ;;  %v2143_v49 = vmul.f32 %v3861_v12, %v4548_v31 }
0x31e9   :  { %v3865_v6 = vpop.eup %3864 }
0x31ea   :  { %v3867_v7 = vpop.eup %3866  ;;  %v1319_v25 = vmul.f32 %v3865_v6, %v4385_v8 }
0x31eb   :  { %v1727_v36 = vadd.f32 1.0, %v3867_v7 }
0x31ed   :  { %3868 = vrcp.f32 %v1727_v36 }
0x31fa   :  { %v4812_v39 = vpop.eup %3868 }
0x31fb   :  { %v1731_v31 = vmul.f32 %v4812_v39, %v4455_v14  ;;  %v3422_v14 = vmul.f32 -1.442695, %v4787_v54 }
0x3240   :  { %v3222_v20 = vpop.permute.xlu1 %3221 }
0x3241   :  { %v3224_v17 = vmul.f32 %v3829_v30, %v3222_v20 }
0x3243   :  { %3226 = vrot.lane.b32.xlu0 %v3224_v17, %s4050_s15 }
0x3244   :  { %v498_v45 = vpop.permute.xlu1 %497 }
0x3245   :  { %v500_v46 = vmul.f32 %v3855_v21, %v498_v45  ;;  %v907_v45 = vmul.f32 %v4799_v58, %v4315_v57 }
0x3247   :  { %502 = vrot.lane.b32.xlu0 %v500_v46, %s4050_s15 }
0x3248   :  { %v910_v27 = vpop.permute.xlu1 %909 }
0x3249   :  { %v912_v43 = vmul.f32 %v4799_v58, %v910_v27 }
0x324b   :  { %1733 = vrot.lane.b32.xlu0 %v3859_v29, %s4059_s5  ;;  %914 = vrot.lane.b32.xlu1 %v912_v43, %s4050_s15 }
0x324c   :  { %v2146_v3 = vpop.permute.xlu1 %2145 }
0x324d   :  { %v2148_v4 = vmul.f32 %v3861_v12, %v2146_v3 }
0x324f   :  { %2150 = vrot.lane.b32.xlu1 %v2148_v4, %s4050_s15 }
0x3250   :  { %v2558_v5 = vpop.permute.xlu1 %2557 }
0x3251   :  { %v2560_v52 = vmul.f32 %v4805_v44, %v2558_v5 }
0x3253   :  { %2562 = vrot.lane.b32.xlu0 %v2560_v52, %s4050_s15 }
0x3254   :  { %v1322_v33 = vpop.permute.xlu1 %1321 }
0x3255   :  { %v1324_v34 = vmul.f32 %v3865_v6, %v1322_v33 }
0x3257   :  { %1326 = vrot.lane.b32.xlu0 %v1324_v34, %s4050_s15 }
0x3258   :  { %v2970_v24 = vpop.permute.xlu1 %2969 }
0x32b5   :  { %v3227_v30 = vpop.permute.xlu0 %3226 }
0x32b6   :  { %3425 = vmatmul.mubr.msk.f32.vlgmr.msra.gmra.mxu0 %vm112_vm0, %v3227_v30 }
0x32b9   :  { %v503_v32 = vpop.permute.xlu0 %502 }
0x32ba   :  { %v505_v22 = vadd.f32 %v503_v32, %v495_v47 }
0x32bc   :  { %3870 = vtanh.f32 %v505_v22 }
0x32bd   :  { %v1734_v40 = vpop.permute.xlu0 %1733  ;;  %v915_v41 = vpop.permute.xlu1 %914 }
0x32be   :  { %v1736_v56 = vmul.f32 %v4812_v39, %v1734_v40  ;;  %v917_v46 = vadd.f32 %v915_v41, %v907_v45 }
0x32c0   :  { %1738 = vrot.lane.b32.xlu0 %v1736_v56, %s4050_s15 }
0x32c1   :  { %v2151_v19 = vpop.permute.xlu1 %2150 }
0x32c2   :  { %v2153_v0 = vadd.f32 %v2151_v19, %v2143_v49 }
0x32c4   :  { %3872 = vtanh.f32 %v2153_v0 }
0x32c5   :  { %v2563_v50 = vpop.permute.xlu0 %2562 }
0x32c9   :  { %v3871_v23 = vpop.eup %3870  ;;  %v1327_v38 = vpop.permute.xlu0 %1326 }
0x32ca   :  { %v1329_v11 = vadd.f32 %v1327_v38, %v1319_v25  ;;  %508 = vrot.lane.b32.xlu0 %v3871_v23, %s4059_s5 }
0x32cc   :  { %3874 = vtanh.f32 %v1329_v11 }
0x32d1   :  { %v3873_v1 = vpop.eup %3872 }
0x32d2   :  { %2156 = vrot.lane.b32.xlu0 %v3873_v1, %s4059_s5 }
0x32d9   :  { %v3875_v53 = vpop.eup %3874 }
0x32da   :  { %1332 = vrot.lane.b32.xlu0 %v3875_v53, %s4059_s5 }
0x3332   :  { %v1739_v59 = vpop.permute.xlu0 %1738 }
0x3333   :  { %v1741_v55 = vadd.f32 %v1739_v59, %v1731_v31 }
0x3335   :  { %3876 = vtanh.f32 %v1741_v55 }
0x3336   :  { %3878 = vpow2.f32 %v3422_v14 }
0x333c   :  { %v509_v8 = vpop.permute.xlu0 %508 }
0x333d   :  { %v511_v61 = vmul.f32 %v3855_v21, %v509_v8 }
0x3342   :  { %v3877_v60 = vpop.eup %3876 }
0x3343   :  { %1744 = vrot.lane.b32.xlu0 %v3877_v60, %s4059_s5  ;;  %v3879_v63 = vpop.eup %3878 }
0x3344   :  { %v2157_v2 = vpop.permute.xlu0 %2156  ;;  %v2963_v10 = vadd.f32 1.0, %v3879_v63 }
0x3345   :  { %v2159_v48 = vmul.f32 %v3861_v12, %v2157_v2 }
0x3347   :  { %3326 = vrot.lane.b32.xlu0 %v511_v61, %s4050_s15 }
0x334b   :  { %3338 = vrot.lane.b32.xlu0 %v2159_v48, %s4050_s15 }
0x334c   :  { %v1333_v51 = vpop.permute.xlu0 %1332 }
0x334d   :  { %v1335_v13 = vmul.f32 %v3865_v6, %v1333_v51 }
0x334f   :  { %3334 = vrot.lane.b32.xlu0 %v1335_v13, %s4061_s6 }
0x3376   :  { %v3296_v9 = vpop.f32.mrf.mxu0 }
0x3378   :  { %v3297_v26 = vpop.f32.mrf.mxu0 }
0x3379   :  { %v3300_v15 = vadd.f32 %v4769_v35, %v3297_v26  ;;  %v2555_v35 = vmul.f32 %v4805_v44, %v4640_v28 }
0x337b   :  { %3880 = vtanh.f32 %v3300_v15  ;;  %v3426_v18 = vmul.f32 -1.442695, %v3300_v15  ;;  %v2565_v27 = vadd.f32 %v2563_v50, %v2555_v35 }
0x337c   :  { %3882 = vrcp.f32 %v2963_v10 }
0x337d   :  { %3884 = vpow2.f32 %v3426_v18 }
0x3388   :  { %v3881_v16 = vpop.eup %3880 }
0x3389   :  { %3310 = vrot.lane.b32.xlu1 %v3881_v16, %s4059_s5  ;;  %v3883_v20 = vpop.eup %3882 }
0x338a   :  { %v2972_v17 = vmul.f32 %v3883_v20, %v2970_v24  ;;  %v3885_v21 = vpop.eup %3884  ;;  %v2967_v3 = vmul.f32 %v3883_v20, %v4710_v62 }
0x338b   :  { %v3304_v54 = vadd.f32 1.0, %v3885_v21 }
0x338d   :  { %2974 = vrot.lane.b32.xlu1 %v2972_v17, %s4050_s15  ;;  %3886 = vrcp.f32 %v3304_v54 }
0x338e   :  { %3888 = vtanh.f32 %v917_v46 }
0x338f   :  { %3890 = vtanh.f32 %v2565_v27 }
0x339a   :  { %v3887_v43 = vpop.eup %3886 }
0x339b   :  { %v3889_v52 = vpop.eup %3888  ;;  %v3308_v6 = vmul.f32 %v3887_v43, %v4771_v42 }
0x339c   :  { %v3891_v57 = vpop.eup %3890 }
0x33b5   :  { %v1745_v42 = vpop.permute.xlu0 %1744 }
0x33b6   :  { %v1747_v19 = vmul.f32 %v4812_v39, %v1745_v42 }
0x33b9   :  { %v3327_v32 = vpop.permute.xlu0 %3326 }
0x33bd   :  { %v3339_v40 = vpop.permute.xlu0 %3338 }
0x33c1   :  { %v3335_v49 = vpop.permute.xlu0 %3334 }
0x33fb   :  { %v3311_v29 = vpop.permute.xlu1 %3310 }
0x33fc   :  { %v3313_v12 = vmul.f32 %v3887_v43, %v3311_v29 }
0x33fe   :  { %3315 = vrot.lane.b32.xlu1 %v3313_v12, %s4050_s15 }
0x33ff   :  { %v2975_v4 = vpop.permute.xlu1 %2974 }
0x3400   :  { %v2977_v5 = vadd.f32 %v2975_v4, %v2967_v3 }
0x3402   :  { %3892 = vtanh.f32 %v2977_v5  ;;  %920 = vrot.lane.b32.xlu1 %v3889_v52, %s4059_s5 }
0x3406   :  { %2568 = vrot.lane.b32.xlu1 %v3891_v57, %s4059_s5 }
0x340f   :  { %v3893_v28 = vpop.eup %3892 }
0x3410   :  { %2980 = vrot.lane.b32.xlu1 %v3893_v28, %s4059_s5 }
0x3470   :  { %v3316_v33 = vpop.permute.xlu1 %3315 }
0x3471   :  { %v3318_v34 = vadd.f32 %v3316_v33, %v3308_v6 }
0x3473   :  { %3894 = vtanh.f32 %v3318_v34 }
0x3474   :  { %v921_v37 = vpop.permute.xlu1 %920 }
0x3475   :  { %v923_v62 = vmul.f32 %v4799_v58, %v921_v37 }
0x3477   :  { %3330 = vrot.lane.b32.xlu1 %v923_v62, %s4059_s5 }
0x3478   :  { %v2569_v7 = vpop.permute.xlu1 %2568 }
0x3479   :  { %v2571_v36 = vmul.f32 %v4805_v44, %v2569_v7 }
0x347b   :  { %3342 = vrot.lane.b32.xlu1 %v2571_v36, %s4059_s5 }
0x3480   :  { %v3895_v30 = vpop.eup %3894 }
0x3481   :  { %3321 = vrot.lane.b32.xlu1 %v3895_v30, %s4059_s5 }
0x3482   :  { %v2981_v47 = vpop.permute.xlu1 %2980 }
0x3483   :  { %v2983_v24 = vmul.f32 %v3883_v20, %v2981_v47 }
0x3485   :  { %3346 = vrot.lane.b32.xlu1 %v2983_v24, %s4061_s6 }
0x34e9   :  { %v3331_v22 = vpop.permute.xlu1 %3330 }
0x34ea   :  { %v3349_v58 = vsel %vm112_vm0, %v3327_v32, %v3331_v22 }
0x34eb   :  { %v3351_v44 = vsel %vm3350_vm4, %v3349_v58, %v3335_v49 }
0x34ec   :  { %v3353_v11 = vsel %vm3352_vm5, %v3351_v44, %v1747_v19 }
0x34ed   :  { %v3343_v41 = vpop.permute.xlu1 %3342 }
0x34ee   :  { %v3354_v0 = vsel %vm112_vm0, %v3339_v40, %v3343_v41 }
0x34f3   :  { %v3322_v56 = vpop.permute.xlu1 %3321 }
0x34f4   :  { %v3324_v50 = vmul.f32 %v3887_v43, %v3322_v56 }
0x34f7   :  { %v3347_v25 = vpop.permute.xlu1 %3346 }
0x34f8   :  { %v3355_v23 = vsel %vm3350_vm4, %v3354_v0, %v3347_v25 }
0x34f9   :  { %v3356_v38 = vsel %vm3352_vm5, %v3355_v23, %v3324_v50 }
0x34fa   :  { %v3359_v1 = vcombine.low %v3353_v11, %v3356_v38 }
0x34fc   :  { %3427 = vst.sshfl [vmem:[#allocation11] sm:$0x33 pattern:$0x76325410] %v3359_v1 }
0x34fd   :  { %4028 = shalt.err (!%p4025_p1)
}
0x34fe   :  { %3378 = dma.vmem_to_hbm [thread:$0]  %s3376_s11, 64, %s4860_s7, [#allocation4]  }
0x34ff   :  { %4043 = dma.done.wait [#allocation4], 64  }
0x3500   :  { %4044 = vsyncadd [#allocation4], 4294967232 }
0x3501   :  { %3382 = vsyncpa [#allocation3], 1 }
0x3502   :  { %3383 = vsyncpa [#allocation6], 1 }
0x3503   :  { %3384 = vsyncpa [#allocation9], 1 }
0x3504   :  { %3385 = vsyncpa [#allocation4], 1 }

</bundles_post_ra>
